<compile_context>
chip_gen: v7x
topology: tpu7x:2x2x1
jax: 0.10.0
libtpu: 0.0.40
codegen_flags: <defaults>
</compile_context>

<pallas_src>
import functools
import math
from math import ceil

import jax
import jax.numpy as jnp
from jax import lax
from jax.experimental import pallas as pl
from jax.experimental.pallas import tpu as pltpu


# ----------------------------------------------------------------------------
# Tiling helpers
# ----------------------------------------------------------------------------

def _pick_tile(dim, max_tile, align):
    """Largest multiple of `align` that divides `dim` and is <= max_tile.

    Falls back to the full dimension (always legal for BlockSpec: a block equal
    to the full array dim is exempt from the (8,128) divisibility rule).
    """
    if dim <= max_tile:
        return dim
    t = (max_tile // align) * align
    while t >= align:
        if dim % t == 0:
            return t
        t -= align
    return dim


# ----------------------------------------------------------------------------
# Pallas kernels
# ----------------------------------------------------------------------------

def _mm_kernel(*refs, activation, has_residual, has_ln):
    """Tiled matmul with optional fused (pre-)LayerNorm, bias, GELU, residual.

    Grid = (M/tm, N/tn, K/tk); K is the innermost ("arbitrary") reduction axis.
    Accumulation is f32 in a VMEM scratch; operands are bf16 on the MXU.
    """
    x_ref, w_ref, b_ref = refs[0], refs[1], refs[2]
    pos = 3
    if has_ln:
        g_ref, bt_ref = refs[pos], refs[pos + 1]
        pos += 2
    if has_residual:
        r_ref = refs[pos]
        pos += 1
    o_ref, acc_ref = refs[pos], refs[pos + 1]

    k = pl.program_id(2)
    nk = pl.num_programs(2)

    @pl.when(k == 0)
    def _():
        acc_ref[...] = jnp.zeros_like(acc_ref)

    x = x_ref[...]
    if has_ln:
        # LayerNorm fused into the matmul (requires tk == K, enforced by wrapper).
        xf = x.astype(jnp.float32)
        mu = jnp.mean(xf, axis=-1, keepdims=True)
        var = jnp.mean(jnp.square(xf - mu), axis=-1, keepdims=True)
        xf = (xf - mu) * lax.rsqrt(var + 1e-5)
        x = xf * g_ref[...] + bt_ref[...]
    x = x.astype(jnp.bfloat16)

    acc_ref[...] += jnp.dot(x, w_ref[...], preferred_element_type=jnp.float32)

    @pl.when(k == nk - 1)
    def _():
        y = acc_ref[...] + b_ref[...].astype(jnp.float32)
        if activation == "gelu":
            y = jax.nn.gelu(y, approximate=True)
        if has_residual:
            y = y + r_ref[...].astype(jnp.float32)
        o_ref[...] = y.astype(o_ref.dtype)


def linear(x, w, b=None, activation="none", residual=None, ln=None):
    """y = [LN](x) @ w + b, optional GELU, optional fused residual add.

    x: (..., K), w: (K, N).  ln = (gamma, beta) applies LayerNorm over K before
    the matmul (fused; forces the K-tile to span the full K dimension).
    """
    orig_shape = x.shape
    K = orig_shape[-1]
    M = math.prod(orig_shape[:-1])
    N = w.shape[1]
    out_dtype = x.dtype

    x2 = x.reshape(M, K)
    if ln is None:
        x2 = x2.astype(jnp.bfloat16)         # halve HBM traffic for activations
    w2 = w.astype(jnp.bfloat16)
    if b is None:
        b = jnp.zeros((N,), jnp.float32)
    b2 = b.astype(jnp.float32).reshape(1, N)

    tm = _pick_tile(M, 256, 8)
    tn = _pick_tile(N, 256, 128)
    # TODO(synk): two-pass LN to allow K-tiling when a fused-LN K is very large.
    tk = K if ln is not None else _pick_tile(K, 512, 128)

    in_specs = [
        pl.BlockSpec((tm, tk), lambda i, j, k: (i, k)),
        pl.BlockSpec((tk, tn), lambda i, j, k: (k, j)),
        pl.BlockSpec((1, tn), lambda i, j, k: (0, j)),
    ]
    args = [x2, w2, b2]
    if ln is not None:
        gamma, beta = ln
        in_specs += [pl.BlockSpec((1, tk), lambda i, j, k: (0, 0)),
                     pl.BlockSpec((1, tk), lambda i, j, k: (0, 0))]
        args += [gamma.astype(jnp.float32).reshape(1, K),
                 beta.astype(jnp.float32).reshape(1, K)]
    if residual is not None:
        in_specs.append(pl.BlockSpec((tm, tn), lambda i, j, k: (i, j)))
        args.append(residual.reshape(M, N))

    out = pl.pallas_call(
        functools.partial(_mm_kernel, activation=activation,
                          has_residual=residual is not None,
                          has_ln=ln is not None),
        out_shape=jax.ShapeDtypeStruct((M, N), out_dtype),
        grid=(M // tm, N // tn, K // tk),
        in_specs=in_specs,
        out_specs=pl.BlockSpec((tm, tn), lambda i, j, k: (i, j)),
        scratch_shapes=[pltpu.VMEM((tm, tn), jnp.float32)],
        compiler_params=pltpu.CompilerParams(
            dimension_semantics=("parallel", "parallel", "arbitrary")),
    )(*args)
    return out.reshape(orig_shape[:-1] + (N,))


def _flash_attn_kernel(q_ref, k_ref, v_ref, o_ref, m_ref, l_ref, acc_ref, *, scale):
    """Flash attention: online softmax over KV tiles for one (batch*head, q-tile)."""
    ki = pl.program_id(2)

    @pl.when(ki == 0)
    def _():
        m_ref[...] = jnp.full_like(m_ref, -jnp.inf)
        l_ref[...] = jnp.zeros_like(l_ref)
        acc_ref[...] = jnp.zeros_like(acc_ref)

    q = q_ref[0].astype(jnp.bfloat16)          # (tq, Dh)
    kk = k_ref[0].astype(jnp.bfloat16)         # (tkv, Dh)
    # Contract on the feature axis directly — avoids an explicit XLU transpose.
    s = lax.dot_general(q, kk, (((1,), (1,)), ((), ())),
                        preferred_element_type=jnp.float32) * scale   # (tq, tkv)

    m_prev = m_ref[...]
    m_new = jnp.maximum(m_prev, jnp.max(s, axis=-1, keepdims=True))
    alpha = jnp.exp(m_prev - m_new)
    p = jnp.exp(s - m_new)
    l_ref[...] = alpha * l_ref[...] + jnp.sum(p, axis=-1, keepdims=True)
    acc_ref[...] = alpha * acc_ref[...] + jnp.dot(
        p.astype(jnp.bfloat16), v_ref[0].astype(jnp.bfloat16),
        preferred_element_type=jnp.float32)
    m_ref[...] = m_new

    @pl.when(ki == pl.num_programs(2) - 1)
    def _():
        inv_l = pl.reciprocal(l_ref[...], approx=True)
        o_ref[0] = (acc_ref[...] * inv_l).astype(o_ref.dtype)


def attention(q, k, v):
    """Fused flash-style softmax attention.  q, k, v: (B*heads, T, Dh)."""
    BH, T, Dh = q.shape
    scale = 1.0 / math.sqrt(Dh)
    tq = _pick_tile(T, 512, 8)
    tkv = _pick_tile(T, 512, 8)
    # TODO(synk): process several heads per grid step so the lane width is
    # heads*Dh >= 128 when Dh is small.
    return pl.pallas_call(
        functools.partial(_flash_attn_kernel, scale=scale),
        out_shape=jax.ShapeDtypeStruct((BH, T, Dh), q.dtype),
        grid=(BH, T // tq, T // tkv),
        in_specs=[pl.BlockSpec((1, tq, Dh), lambda b, qi, ki: (b, qi, 0)),
                  pl.BlockSpec((1, tkv, Dh), lambda b, qi, ki: (b, ki, 0)),
                  pl.BlockSpec((1, tkv, Dh), lambda b, qi, ki: (b, ki, 0))],
        out_specs=pl.BlockSpec((1, tq, Dh), lambda b, qi, ki: (b, qi, 0)),
        scratch_shapes=[pltpu.VMEM((tq, 1), jnp.float32),
                        pltpu.VMEM((tq, 1), jnp.float32),
                        pltpu.VMEM((tq, Dh), jnp.float32)],
        compiler_params=pltpu.CompilerParams(
            dimension_semantics=("parallel", "parallel", "arbitrary")),
    )(q, k, v)


def _add_kernel(a_ref, b_ref, o_ref):
    o_ref[...] = a_ref[...] + b_ref[...]


def add(a, b):
    """Row-tiled elementwise add (only used for the final U-Net skip residual)."""
    shape = a.shape
    D = shape[-1]
    M = math.prod(shape[:-1])
    tm = _pick_tile(M, 1024, 8)
    out = pl.pallas_call(
        _add_kernel,
        out_shape=jax.ShapeDtypeStruct((M, D), a.dtype),
        grid=(M // tm,),
        in_specs=[pl.BlockSpec((tm, D), lambda i: (i, 0)),
                  pl.BlockSpec((tm, D), lambda i: (i, 0))],
        out_specs=pl.BlockSpec((tm, D), lambda i: (i, 0)),
        compiler_params=pltpu.CompilerParams(dimension_semantics=("parallel",)),
    )(a.reshape(M, D), b.reshape(M, D))
    return out.reshape(shape)


# ----------------------------------------------------------------------------
# Model building blocks (glue reshapes in plain JAX, compute in Pallas kernels)
# ----------------------------------------------------------------------------

def patch_embed(params, input_upper, input_surface, patch_size):
    pz, ph, pw = patch_size
    B, Z, H, W, Cu = input_upper.shape
    Zp, Hp, Wp = Z // pz, H // ph, W // pw

    # upper: Conv3d(kernel=stride=patch) == per-patch linear on (Cu,pz,ph,pw)-flat
    u = jnp.transpose(input_upper, (0, 4, 1, 2, 3))          # B,Cu,Z,H,W
    u = u.reshape(B, Cu, Zp, pz, Hp, ph, Wp, pw)
    u = jnp.transpose(u, (0, 2, 4, 6, 1, 3, 5, 7))
    u = u.reshape(B * Zp * Hp * Wp, Cu * pz * ph * pw)
    emb_u = linear(u, params["w_upper"], params["b_upper"]).reshape(B, Zp, Hp, Wp, -1)

    # surface: Conv2d(kernel=stride=patch[1:])
    s = input_surface[:, 0]                                   # B,H,W,Cs
    Cs = s.shape[-1]
    s = jnp.transpose(s, (0, 3, 1, 2)).reshape(B, Cs, Hp, ph, Wp, pw)
    s = jnp.transpose(s, (0, 2, 4, 1, 3, 5)).reshape(B * Hp * Wp, Cs * ph * pw)
    emb_s = linear(s, params["w_surface"], params["b_surface"]).reshape(B, 1, Hp, Wp, -1)

    x = jnp.concatenate([emb_u, emb_s], axis=1)               # B, Zp+1, Hp, Wp, D
    return x.reshape(B, (Zp + 1) * Hp * Wp, -1)


def downsample(params, x, inp_shape):
    Z, H, W = inp_shape
    B, _, C = x.shape
    x = x.reshape(B, Z, H // 2, 2, W // 2, 2, C)
    x = jnp.transpose(x, (0, 1, 2, 4, 3, 5, 6))
    x = x.reshape(B, Z * (H // 2) * (W // 2), 4 * C)
    # LayerNorm(4C) fused into the 4C -> 2C (bias-free) linear.
    return linear(x, params["w"], None, ln=(params["ln_g"], params["ln_b"]))


def upsample(params, x, inp_shape):
    Z, Hh, Ww = inp_shape
    B, _, C = x.shape
    x = linear(x, params["w1"], None)                         # C -> 2C (no bias)
    c = C // 2
    x = x.reshape(B, Z, Hh, Ww, 2, 2, c)
    x = jnp.transpose(x, (0, 1, 2, 4, 3, 5, 6)).reshape(B, Z, 2 * Hh, 2 * Ww, c)
    x = x.reshape(B, Z * 2 * Hh * 2 * Ww, c)
    # LayerNorm(C/2) fused into the C/2 -> C/2 (bias-free) linear.
    return linear(x, params["w2"], None, ln=(params["ln_g"], params["ln_b"]))


def earth_layer(lparams, x, dim, heads):
    """Simplified EarthSpecificLayer stand-in: pre-LN transformer blocks.

    LN is fused into the QKV / fc1 matmuls; residual adds are fused into the
    projection / fc2 matmul epilogues.
    """
    if "skip_reduce" in lparams:
        x = linear(x, lparams["skip_reduce"]["w"], lparams["skip_reduce"]["b"])
    Dh = dim // heads
    B, T, _ = x.shape
    for blk in lparams["blocks"]:
        # --- attention sub-block ---
        qkv = linear(x, blk["w_qkv"], blk["b_qkv"],
                     ln=(blk["ln1_g"], blk["ln1_b"]))
        qkv = qkv.reshape(B, T, 3, heads, Dh)
        # TODO(synk): do the head split inside the attention kernel (pl.ds per
        # head) instead of XLA transposes between pallas_calls.
        q = jnp.transpose(qkv[:, :, 0], (0, 2, 1, 3)).reshape(B * heads, T, Dh)
        k = jnp.transpose(qkv[:, :, 1], (0, 2, 1, 3)).reshape(B * heads, T, Dh)
        v = jnp.transpose(qkv[:, :, 2], (0, 2, 1, 3)).reshape(B * heads, T, Dh)
        o = attention(q, k, v).reshape(B, heads, T, Dh)
        o = jnp.transpose(o, (0, 2, 1, 3)).reshape(B, T, dim)
        x = linear(o, blk["w_proj"], blk["b_proj"], residual=x)
        # --- MLP sub-block ---
        h = linear(x, blk["w_fc1"], blk["b_fc1"], activation="gelu",
                   ln=(blk["ln2_g"], blk["ln2_b"]))
        x = linear(h, blk["w_fc2"], blk["b_fc2"], residual=x)
    return x


def patch_recover(params, x, inp_shape, patch_size, c_up, c_surf):
    Z, H, W = inp_shape
    pz, ph, pw = patch_size
    B, _, D = x.shape
    x = x.reshape(B, Z, H, W, D)

    # upper: ConvTranspose3d(kernel=stride=patch) == per-token linear + unpatchify
    xu = x[:, :-1].reshape(B * (Z - 1) * H * W, D)
    yu = linear(xu, params["w_upper"], params["b_upper"])
    yu = yu.reshape(B, Z - 1, H, W, c_up, pz, ph, pw)
    yu = jnp.transpose(yu, (0, 1, 5, 2, 6, 3, 7, 4))
    yu = yu.reshape(B, (Z - 1) * pz, H * ph, W * pw, c_up)

    # surface: ConvTranspose2d on the last z slice
    xs = x[:, -1].reshape(B * H * W, D)
    ys = linear(xs, params["w_surface"], params["b_surface"])
    ys = ys.reshape(B, H, W, c_surf, ph, pw)
    ys = jnp.transpose(ys, (0, 1, 4, 2, 5, 3)).reshape(B, H * ph, W * pw, c_surf)
    return yu, ys[:, None]


def pangu_forward(params, input_upper, input_surface, cfg):
    hierarchy = len(cfg["depths"])
    shapes = cfg["shapes"]
    specs = cfg["layer_specs"]          # static (dim, heads, depth, skip_concat)

    # smoothing layer == Identity (smoothing_kernel_size is None)
    x = patch_embed(params["patch_embed"], input_upper, input_surface, cfg["patch_size"])
    skip = x
    skips = []
    for i in range(hierarchy - 1):
        x = earth_layer(params["layers"][i], x, specs[i][0], specs[i][1])
        skips.append(x)
        x = downsample(params["downsample"][i], x, shapes[i])
    i = hierarchy - 1
    x = earth_layer(params["layers"][i], x, specs[i][0], specs[i][1])
    for i in range(hierarchy - 1):
        idx = hierarchy + i
        x = earth_layer(params["layers"][idx], x, specs[idx][0], specs[idx][1])
        x = upsample(params["upsample"][i], x, shapes[hierarchy - 1 - i])
        x = jnp.concatenate([skips.pop(), x], axis=-1)
    idx = 2 * hierarchy - 1
    x = earth_layer(params["layers"][idx], x, specs[idx][0], specs[idx][1])
    x = add(x, skip)
    out_upper, out_surface = patch_recover(
        params["patch_recover"], x, shapes[0], cfg["patch_size"],
        cfg["upper_channels"], cfg["surface_output_channels"])
    # final smoothing layer == Identity
    return out_upper, out_surface


# ----------------------------------------------------------------------------
# Static config / deterministic parameter initialization
# ----------------------------------------------------------------------------

def build_layer_specs(cfg):
    """Static per-layer metadata (dim, heads, depth, skip_concat)."""
    hierarchy = len(cfg["depths"])
    specs = []
    for i in range(hierarchy):                                    # encoder
        specs.append((cfg["dims"][i], cfg["heads"][i], cfg["depths"][i], False))
    for i in range(1, hierarchy + 1):                             # decoder
        j = hierarchy - i
        specs.append((cfg["dims"][j], cfg["heads"][j], cfg["depths"][j], i != 1))
    return specs


def _w(key, shape, scale=0.02):
    return scale * jax.random.normal(key, shape, dtype=jnp.float32)


def init_pangu_params(key, cfg):
    keys = iter(jax.random.split(key, 256))
    pz, ph, pw = cfg["patch_size"]
    D0 = cfg["dims"][0]
    Cu = cfg["upper_channels"]
    Csi = cfg["surface_input_channels"]
    Cso = cfg["surface_output_channels"]
    hierarchy = len(cfg["depths"])

    params = {
        "patch_embed": {
            "w_upper": _w(next(keys), (Cu * pz * ph * pw, D0)),
            "b_upper": jnp.zeros((D0,), jnp.float32),
            "w_surface": _w(next(keys), (Csi * ph * pw, D0)),
            "b_surface": jnp.zeros((D0,), jnp.float32),
        }
    }

    layers = []
    for dim, _h, depth, skip_concat in cfg["layer_specs"]:
        lp = {"blocks": []}                       # only array leaves in params
        if skip_concat:
            lp["skip_reduce"] = {"w": _w(next(keys), (2 * dim, dim)),
                                 "b": jnp.zeros((dim,), jnp.float32)}
        for _ in range(depth):
            lp["blocks"].append({
                "ln1_g": jnp.ones((dim,), jnp.float32), "ln1_b": jnp.zeros((dim,), jnp.float32),
                "w_qkv": _w(next(keys), (dim, 3 * dim)), "b_qkv": jnp.zeros((3 * dim,), jnp.float32),
                "w_proj": _w(next(keys), (dim, dim)), "b_proj": jnp.zeros((dim,), jnp.float32),
                "ln2_g": jnp.ones((dim,), jnp.float32), "ln2_b": jnp.zeros((dim,), jnp.float32),
                "w_fc1": _w(next(keys), (dim, 4 * dim)), "b_fc1": jnp.zeros((4 * dim,), jnp.float32),
                "w_fc2": _w(next(keys), (4 * dim, dim)), "b_fc2": jnp.zeros((dim,), jnp.float32),
            })
        layers.append(lp)
    params["layers"] = layers

    params["downsample"] = []
    for i in range(hierarchy - 1):
        d = cfg["dims"][i]
        params["downsample"].append({
            "ln_g": jnp.ones((4 * d,), jnp.float32),
            "ln_b": jnp.zeros((4 * d,), jnp.float32),
            "w": _w(next(keys), (4 * d, 2 * d)),
        })

    params["upsample"] = []
    for i in range(hierarchy - 1):
        d = cfg["dims"][hierarchy - 1 - i]
        params["upsample"].append({
            "w1": _w(next(keys), (d, 2 * d)),
            "ln_g": jnp.ones((d // 2,), jnp.float32),
            "ln_b": jnp.zeros((d // 2,), jnp.float32),
            "w2": _w(next(keys), (d // 2, d // 2)),
        })

    params["patch_recover"] = {
        "w_upper": _w(next(keys), (D0, Cu * pz * ph * pw)),
        "b_upper": jnp.zeros((Cu * pz * ph * pw,), jnp.float32),
        "w_surface": _w(next(keys), (D0, Cso * ph * pw)),
        "b_surface": jnp.zeros((Cso * ph * pw,), jnp.float32),
    }
    return params


# ----------------------------------------------------------------------------
# Main
# ----------------------------------------------------------------------------

if __name__ == "__main__":
    # Small config consistent with PanguModel.__init__
    B = 2
    image_hw = [8, 8]
    patch_size = (2, 2, 2)
    upper_levels = 2
    upper_channels = 3
    surface_input_channels = 4
    surface_output_channels = 4
    embed_dim = 32
    heads = [2, 4]
    depths = [1, 1]

    img_shape = (upper_levels, image_hw[0], image_hw[1])          # (2, 8, 8)
    inp_Z = ceil(img_shape[0] / patch_size[0]) + 1                # +1 surface slice
    inp_H = ceil(img_shape[1] / patch_size[1])
    inp_W = ceil(img_shape[2] / patch_size[2])
    hierarchy = len(depths)
    dims = [2 ** i * embed_dim for i in range(hierarchy)]
    shapes = [(inp_Z, ceil(inp_H / 2 ** i), ceil(inp_W / 2 ** i)) for i in range(hierarchy)]

    cfg = {
        "patch_size": patch_size,
        "upper_channels": upper_channels,
        "surface_input_channels": surface_input_channels,
        "surface_output_channels": surface_output_channels,
        "dims": dims,
        "heads": heads,
        "depths": depths,
        "shapes": shapes,
    }
    cfg["layer_specs"] = build_layer_specs(cfg)   # static (dim, heads, depth, skip)

    key = jax.random.PRNGKey(0)
    k_up, k_sf, k_par = jax.random.split(key, 3)
    input_upper = jax.random.normal(
        k_up, (B, upper_levels, image_hw[0], image_hw[1], upper_channels), jnp.float32)
    input_surface = jax.random.normal(
        k_sf, (B, 1, image_hw[0], image_hw[1], surface_input_channels), jnp.float32)

    params = init_pangu_params(k_par, cfg)

    fwd = jax.jit(functools.partial(pangu_forward, cfg=cfg))
    out_upper, out_surface = fwd(params, input_upper, input_surface)
    jax.block_until_ready((out_upper, out_surface))

    assert out_upper.shape == (B, upper_levels, image_hw[0], image_hw[1], upper_channels)
    assert out_surface.shape == (B, 1, image_hw[0], image_hw[1], surface_output_channels)
    print("KERNEL_OK")
</pallas_src>

<mosaic_0001>
module attributes {stable_mosaic.version = 11 : i64} {
  func.func @_mm_kernel(%arg0: i32, %arg1: i32, %arg2: i32, %arg3: memref<32x24xbf16, #tpu.memory_space<vmem>>, %arg4: memref<24x32xbf16, #tpu.memory_space<vmem>>, %arg5: memref<1x32xf32, #tpu.memory_space<vmem>>, %arg6: memref<32x32xf32, #tpu.memory_space<vmem>>, %arg7: memref<32x32xf32, #tpu.memory_space<vmem>>) attributes {dimension_semantics = [#tpu.dimension_semantics<parallel>, #tpu.dimension_semantics<parallel>, #tpu.dimension_semantics<arbitrary>], iteration_bounds = array<i64: 1, 1, 1>, scalar_prefetch = 0 : i64, scratch_operands = 1 : i64, tpu.core_type = #tpu.core_type<tc>, window_params = [{transform_indices = @transform_0, window_bounds = array<i64: 32, 24>}, {transform_indices = @transform_1, window_bounds = array<i64: 24, 32>}, {transform_indices = @transform_2, window_bounds = array<i64: 1, 32>}, {transform_indices = @transform_3, window_bounds = array<i64: 32, 32>}]} {
    %c0_i32 = arith.constant 0 : i32
    %0 = arith.cmpi eq, %arg2, %c0_i32 : i32
    %1 = arith.extui %0 : i1 to i32
    %c0_i32_0 = arith.constant 0 : i32
    %2 = arith.cmpi ne, %1, %c0_i32_0 : i32
    scf.if %2 {
      %cst_10 = arith.constant 0.000000e+00 : f32
      %12 = vector.broadcast %cst_10 : f32 to vector<32x32xf32>
      %c0_11 = arith.constant 0 : index
      %c0_12 = arith.constant 0 : index
      %13 = vector.load %arg7[%c0_11, %c0_12] : memref<32x32xf32, #tpu.memory_space<vmem>>, vector<32x32xf32>
      tpu.vector_store %arg7[%c0_11, %c0_12], %12 {strides = array<i32>} : memref<32x32xf32, #tpu.memory_space<vmem>>, vector<32x32xf32>,
    } else {
    }
    %c0 = arith.constant 0 : index
    %c0_1 = arith.constant 0 : index
    %3 = vector.load %arg3[%c0, %c0_1] : memref<32x24xbf16, #tpu.memory_space<vmem>>, vector<32x24xbf16>
    %c0_2 = arith.constant 0 : index
    %c0_3 = arith.constant 0 : index
    %4 = vector.load %arg7[%c0_2, %c0_3] : memref<32x32xf32, #tpu.memory_space<vmem>>, vector<32x32xf32>
    %c0_4 = arith.constant 0 : index
    %c0_5 = arith.constant 0 : index
    %5 = vector.load %arg4[%c0_4, %c0_5] : memref<24x32xbf16, #tpu.memory_space<vmem>>, vector<24x32xbf16>
    %cst = arith.constant dense<0.000000e+00> : vector<32x32xf32>
    %6 = tpu.matmul %3, %5, %cst {dimension_numbers = #tpu.dot_dimension_numbers<[1], [0], [0], [1], [0, 0, 1, 1], [], []>} : vector<32x24xbf16>, vector<24x32xbf16>, vector<32x32xf32> -> vector<32x32xf32>
    %7 = arith.addf %4, %6 : vector<32x32xf32>
    %c0_6 = arith.constant 0 : index
    %c0_7 = arith.constant 0 : index
    %8 = vector.load %arg7[%c0_6, %c0_7] : memref<32x32xf32, #tpu.memory_space<vmem>>, vector<32x32xf32>
    tpu.vector_store %arg7[%c0_6, %c0_7], %7 {strides = array<i32>} : memref<32x32xf32, #tpu.memory_space<vmem>>, vector<32x32xf32>,
    %c0_i32_8 = arith.constant 0 : i32
    %9 = arith.cmpi eq, %arg2, %c0_i32_8 : i32
    %10 = arith.extui %9 : i1 to i32
    %c0_i32_9 = arith.constant 0 : i32
    %11 = arith.cmpi ne, %10, %c0_i32_9 : i32
    scf.if %11 {
      %c0_10 = arith.constant 0 : index
      %c0_11 = arith.constant 0 : index
      %12 = vector.load %arg7[%c0_10, %c0_11] : memref<32x32xf32, #tpu.memory_space<vmem>>, vector<32x32xf32>
      %c0_12 = arith.constant 0 : index
      %c0_13 = arith.constant 0 : index
      %13 = vector.load %arg5[%c0_12, %c0_13] : memref<1x32xf32, #tpu.memory_space<vmem>>, vector<1x32xf32>
      %14 = vector.broadcast %13 : vector<1x32xf32> to vector<32x32xf32>
      %15 = arith.addf %12, %14 : vector<32x32xf32>
      %c0_14 = arith.constant 0 : index
      %c0_15 = arith.constant 0 : index
      %16 = vector.load %arg6[%c0_14, %c0_15] : memref<32x32xf32, #tpu.memory_space<vmem>>, vector<32x32xf32>
      tpu.vector_store %arg6[%c0_14, %c0_15], %15 {strides = array<i32>} : memref<32x32xf32, #tpu.memory_space<vmem>>, vector<32x32xf32>,
    } else {
    }
    return
  }
  func.func @transform_0(%arg0: i32, %arg1: i32, %arg2: i32) -> (i32, i32) {
    %c0_i32 = arith.constant 0 : i32
    return %arg0, %arg2 : i32, i32
  }
  func.func @transform_1(%arg0: i32, %arg1: i32, %arg2: i32) -> (i32, i32) {
    %c0_i32 = arith.constant 0 : i32
    return %arg2, %arg1 : i32, i32
  }
  func.func @transform_2(%arg0: i32, %arg1: i32, %arg2: i32) -> (i32, i32) {
    %c0_i32 = arith.constant 0 : i32
    %c0_i32_0 = arith.constant 0 : i32
    return %c0_i32, %arg1 : i32, i32
  }
  func.func @transform_3(%arg0: i32, %arg1: i32, %arg2: i32) -> (i32, i32) {
    %c0_i32 = arith.constant 0 : i32
    return %arg0, %arg1 : i32, i32
  }
}

module attributes {stable_mosaic.version = 11 : i64} {
  func.func @_mm_kernel(%arg0: i32, %arg1: i32, %arg2: i32, %arg3: memref<32x16xbf16, #tpu.memory_space<vmem>>, %arg4: memref<16x32xbf16, #tpu.memory_space<vmem>>, %arg5: memref<1x32xf32, #tpu.memory_space<vmem>>, %arg6: memref<32x32xf32, #tpu.memory_space<vmem>>, %arg7: memref<32x32xf32, #tpu.memory_space<vmem>>) attributes {dimension_semantics = [#tpu.dimension_semantics<parallel>, #tpu.dimension_semantics<parallel>, #tpu.dimension_semantics<arbitrary>], iteration_bounds = array<i64: 1, 1, 1>, scalar_prefetch = 0 : i64, scratch_operands = 1 : i64, tpu.core_type = #tpu.core_type<tc>, window_params = [{transform_indices = @transform_0, window_bounds = array<i64: 32, 16>}, {transform_indices = @transform_1, window_bounds = array<i64: 16, 32>}, {transform_indices = @transform_2, window_bounds = array<i64: 1, 32>}, {transform_indices = @transform_3, window_bounds = array<i64: 32, 32>}]} {
    %c0_i32 = arith.constant 0 : i32
    %0 = arith.cmpi eq, %arg2, %c0_i32 : i32
    %1 = arith.extui %0 : i1 to i32
    %c0_i32_0 = arith.constant 0 : i32
    %2 = arith.cmpi ne, %1, %c0_i32_0 : i32
    scf.if %2 {
      %cst_10 = arith.constant 0.000000e+00 : f32
      %12 = vector.broadcast %cst_10 : f32 to vector<32x32xf32>
      %c0_11 = arith.constant 0 : index
      %c0_12 = arith.constant 0 : index
      %13 = vector.load %arg7[%c0_11, %c0_12] : memref<32x32xf32, #tpu.memory_space<vmem>>, vector<32x32xf32>
      tpu.vector_store %arg7[%c0_11, %c0_12], %12 {strides = array<i32>} : memref<32x32xf32, #tpu.memory_space<vmem>>, vector<32x32xf32>,
    } else {
    }
    %c0 = arith.constant 0 : index
    %c0_1 = arith.constant 0 : index
    %3 = vector.load %arg3[%c0, %c0_1] : memref<32x16xbf16, #tpu.memory_space<vmem>>, vector<32x16xbf16>
    %c0_2 = arith.constant 0 : index
    %c0_3 = arith.constant 0 : index
    %4 = vector.load %arg7[%c0_2, %c0_3] : memref<32x32xf32, #tpu.memory_space<vmem>>, vector<32x32xf32>
    %c0_4 = arith.constant 0 : index
    %c0_5 = arith.constant 0 : index
    %5 = vector.load %arg4[%c0_4, %c0_5] : memref<16x32xbf16, #tpu.memory_space<vmem>>, vector<16x32xbf16>
    %cst = arith.constant dense<0.000000e+00> : vector<32x32xf32>
    %6 = tpu.matmul %3, %5, %cst {dimension_numbers = #tpu.dot_dimension_numbers<[1], [0], [0], [1], [0, 0, 1, 1], [], []>} : vector<32x16xbf16>, vector<16x32xbf16>, vector<32x32xf32> -> vector<32x32xf32>
    %7 = arith.addf %4, %6 : vector<32x32xf32>
    %c0_6 = arith.constant 0 : index
    %c0_7 = arith.constant 0 : index
    %8 = vector.load %arg7[%c0_6, %c0_7] : memref<32x32xf32, #tpu.memory_space<vmem>>, vector<32x32xf32>
    tpu.vector_store %arg7[%c0_6, %c0_7], %7 {strides = array<i32>} : memref<32x32xf32, #tpu.memory_space<vmem>>, vector<32x32xf32>,
    %c0_i32_8 = arith.constant 0 : i32
    %9 = arith.cmpi eq, %arg2, %c0_i32_8 : i32
    %10 = arith.extui %9 : i1 to i32
    %c0_i32_9 = arith.constant 0 : i32
    %11 = arith.cmpi ne, %10, %c0_i32_9 : i32
    scf.if %11 {
      %c0_10 = arith.constant 0 : index
      %c0_11 = arith.constant 0 : index
      %12 = vector.load %arg7[%c0_10, %c0_11] : memref<32x32xf32, #tpu.memory_space<vmem>>, vector<32x32xf32>
      %c0_12 = arith.constant 0 : index
      %c0_13 = arith.constant 0 : index
      %13 = vector.load %arg5[%c0_12, %c0_13] : memref<1x32xf32, #tpu.memory_space<vmem>>, vector<1x32xf32>
      %14 = vector.broadcast %13 : vector<1x32xf32> to vector<32x32xf32>
      %15 = arith.addf %12, %14 : vector<32x32xf32>
      %c0_14 = arith.constant 0 : index
      %c0_15 = arith.constant 0 : index
      %16 = vector.load %arg6[%c0_14, %c0_15] : memref<32x32xf32, #tpu.memory_space<vmem>>, vector<32x32xf32>
      tpu.vector_store %arg6[%c0_14, %c0_15], %15 {strides = array<i32>} : memref<32x32xf32, #tpu.memory_space<vmem>>, vector<32x32xf32>,
    } else {
    }
    return
  }
  func.func @transform_0(%arg0: i32, %arg1: i32, %arg2: i32) -> (i32, i32) {
    %c0_i32 = arith.constant 0 : i32
    return %arg0, %arg2 : i32, i32
  }
  func.func @transform_1(%arg0: i32, %arg1: i32, %arg2: i32) -> (i32, i32) {
    %c0_i32 = arith.constant 0 : i32
    return %arg2, %arg1 : i32, i32
  }
  func.func @transform_2(%arg0: i32, %arg1: i32, %arg2: i32) -> (i32, i32) {
    %c0_i32 = arith.constant 0 : i32
    %c0_i32_0 = arith.constant 0 : i32
    return %c0_i32, %arg1 : i32, i32
  }
  func.func @transform_3(%arg0: i32, %arg1: i32, %arg2: i32) -> (i32, i32) {
    %c0_i32 = arith.constant 0 : i32
    return %arg0, %arg1 : i32, i32
  }
}

module attributes {stable_mosaic.version = 11 : i64} {
  func.func @_mm_kernel(%arg0: i32, %arg1: i32, %arg2: i32, %arg3: memref<64x32xf32, #tpu.memory_space<vmem>>, %arg4: memref<32x96xbf16, #tpu.memory_space<vmem>>, %arg5: memref<1x96xf32, #tpu.memory_space<vmem>>, %arg6: memref<1x32xf32, #tpu.memory_space<vmem>>, %arg7: memref<1x32xf32, #tpu.memory_space<vmem>>, %arg8: memref<64x96xf32, #tpu.memory_space<vmem>>, %arg9: memref<64x96xf32, #tpu.memory_space<vmem>>) attributes {dimension_semantics = [#tpu.dimension_semantics<parallel>, #tpu.dimension_semantics<parallel>, #tpu.dimension_semantics<arbitrary>], iteration_bounds = array<i64: 1, 1, 1>, scalar_prefetch = 0 : i64, scratch_operands = 1 : i64, tpu.core_type = #tpu.core_type<tc>, window_params = [{transform_indices = @transform_0, window_bounds = array<i64: 64, 32>}, {transform_indices = @transform_1, window_bounds = array<i64: 32, 96>}, {transform_indices = @transform_2, window_bounds = array<i64: 1, 96>}, {pipeline_mode = #tpu.pipeline_mode<synchronous>, transform_indices = @transform_3, window_bounds = array<i64: 1, 32>}, {pipeline_mode = #tpu.pipeline_mode<synchronous>, transform_indices = @transform_4, window_bounds = array<i64: 1, 32>}, {transform_indices = @transform_5, window_bounds = array<i64: 64, 96>}]} {
    %c0_i32 = arith.constant 0 : i32
    %0 = arith.cmpi eq, %arg2, %c0_i32 : i32
    %1 = arith.extui %0 : i1 to i32
    %c0_i32_0 = arith.constant 0 : i32
    %2 = arith.cmpi ne, %1, %c0_i32_0 : i32
    scf.if %2 {
      %cst_19 = arith.constant 0.000000e+00 : f32
      %37 = vector.broadcast %cst_19 : f32 to vector<64x96xf32>
      %c0_20 = arith.constant 0 : index
      %c0_21 = arith.constant 0 : index
      %38 = vector.load %arg9[%c0_20, %c0_21] : memref<64x96xf32, #tpu.memory_space<vmem>>, vector<64x96xf32>
      tpu.vector_store %arg9[%c0_20, %c0_21], %37 {strides = array<i32>} : memref<64x96xf32, #tpu.memory_space<vmem>>, vector<64x96xf32>,
    } else {
    }
    %c0 = arith.constant 0 : index
    %c0_1 = arith.constant 0 : index
    %3 = vector.load %arg3[%c0, %c0_1] : memref<64x32xf32, #tpu.memory_space<vmem>>, vector<64x32xf32>
    %cst = arith.constant dense<0.000000e+00> : vector<64xf32>
    %4 = vector.multi_reduction <add>, %3, %cst [1] : vector<64x32xf32> to vector<64xf32>
    %5 = vector.shape_cast %4 : vector<64xf32> to vector<64x1xf32>
    %cst_2 = arith.constant 3.200000e+01 : f32
    %6 = vector.broadcast %cst_2 : f32 to vector<64x1xf32>
    %7 = arith.divf %5, %6 : vector<64x1xf32>
    %8 = vector.broadcast %7 : vector<64x1xf32> to vector<64x32xf32>
    %9 = arith.subf %3, %8 : vector<64x32xf32>
    %10 = arith.mulf %9, %9 : vector<64x32xf32>
    %cst_3 = arith.constant dense<0.000000e+00> : vector<64xf32>
    %11 = vector.multi_reduction <add>, %10, %cst_3 [1] : vector<64x32xf32> to vector<64xf32>
    %12 = vector.shape_cast %11 : vector<64xf32> to vector<64x1xf32>
    %cst_4 = arith.constant 3.200000e+01 : f32
    %13 = vector.broadcast %cst_4 : f32 to vector<64x1xf32>
    %14 = arith.divf %12, %13 : vector<64x1xf32>
    %15 = vector.broadcast %7 : vector<64x1xf32> to vector<64x32xf32>
    %16 = arith.subf %3, %15 : vector<64x32xf32>
    %cst_5 = arith.constant 9.99999974E-6 : f32
    %17 = vector.broadcast %cst_5 : f32 to vector<64x1xf32>
    %18 = arith.addf %14, %17 : vector<64x1xf32>
    %19 = math.rsqrt %18 : vector<64x1xf32>
    %20 = vector.broadcast %19 : vector<64x1xf32> to vector<64x32xf32>
    %21 = arith.mulf %16, %20 : vector<64x32xf32>
    %c0_6 = arith.constant 0 : index
    %c0_7 = arith.constant 0 : index
    %22 = vector.load %arg6[%c0_6, %c0_7] : memref<1x32xf32, #tpu.memory_space<vmem>>, vector<1x32xf32>
    %23 = vector.broadcast %22 : vector<1x32xf32> to vector<64x32xf32>
    %24 = arith.mulf %21, %23 : vector<64x32xf32>
    %c0_8 = arith.constant 0 : index
    %c0_9 = arith.constant 0 : index
    %25 = vector.load %arg7[%c0_8, %c0_9] : memref<1x32xf32, #tpu.memory_space<vmem>>, vector<1x32xf32>
    %26 = vector.broadcast %25 : vector<1x32xf32> to vector<64x32xf32>
    %27 = arith.addf %24, %26 : vector<64x32xf32>
    %28 = arith.truncf %27 : vector<64x32xf32> to vector<64x32xbf16>
    %c0_10 = arith.constant 0 : index
    %c0_11 = arith.constant 0 : index
    %29 = vector.load %arg9[%c0_10, %c0_11] : memref<64x96xf32, #tpu.memory_space<vmem>>, vector<64x96xf32>
    %c0_12 = arith.constant 0 : index
    %c0_13 = arith.constant 0 : index
    %30 = vector.load %arg4[%c0_12, %c0_13] : memref<32x96xbf16, #tpu.memory_space<vmem>>, vector<32x96xbf16>
    %cst_14 = arith.constant dense<0.000000e+00> : vector<64x96xf32>
    %31 = tpu.matmul %28, %30, %cst_14 {dimension_numbers = #tpu.dot_dimension_numbers<[1], [0], [0], [1], [0, 0, 1, 1], [], []>} : vector<64x32xbf16>, vector<32x96xbf16>, vector<64x96xf32> -> vector<64x96xf32>
    %32 = arith.addf %29, %31 : vector<64x96xf32>
    %c0_15 = arith.constant 0 : index
    %c0_16 = arith.constant 0 : index
    %33 = vector.load %arg9[%c0_15, %c0_16] : memref<64x96xf32, #tpu.memory_space<vmem>>, vector<64x96xf32>
    tpu.vector_store %arg9[%c0_15, %c0_16], %32 {strides = array<i32>} : memref<64x96xf32, #tpu.memory_space<vmem>>, vector<64x96xf32>,
    %c0_i32_17 = arith.constant 0 : i32
    %34 = arith.cmpi eq, %arg2, %c0_i32_17 : i32
    %35 = arith.extui %34 : i1 to i32
    %c0_i32_18 = arith.constant 0 : i32
    %36 = arith.cmpi ne, %35, %c0_i32_18 : i32
    scf.if %36 {
      %c0_19 = arith.constant 0 : index
      %c0_20 = arith.constant 0 : index
      %37 = vector.load %arg9[%c0_19, %c0_20] : memref<64x96xf32, #tpu.memory_space<vmem>>, vector<64x96xf32>
      %c0_21 = arith.constant 0 : index
      %c0_22 = arith.constant 0 : index
      %38 = vector.load %arg5[%c0_21, %c0_22] : memref<1x96xf32, #tpu.memory_space<vmem>>, vector<1x96xf32>
      %39 = vector.broadcast %38 : vector<1x96xf32> to vector<64x96xf32>
      %40 = arith.addf %37, %39 : vector<64x96xf32>
      %c0_23 = arith.constant 0 : index
      %c0_24 = arith.constant 0 : index
      %41 = vector.load %arg8[%c0_23, %c0_24] : memref<64x96xf32, #tpu.memory_space<vmem>>, vector<64x96xf32>
      tpu.vector_store %arg8[%c0_23, %c0_24], %40 {strides = array<i32>} : memref<64x96xf32, #tpu.memory_space<vmem>>, vector<64x96xf32>,
    } else {
    }
    return
  }
  func.func @transform_0(%arg0: i32, %arg1: i32, %arg2: i32) -> (i32, i32) {
    %c0_i32 = arith.constant 0 : i32
    return %arg0, %arg2 : i32, i32
  }
  func.func @transform_1(%arg0: i32, %arg1: i32, %arg2: i32) -> (i32, i32) {
    %c0_i32 = arith.constant 0 : i32
    return %arg2, %arg1 : i32, i32
  }
  func.func @transform_2(%arg0: i32, %arg1: i32, %arg2: i32) -> (i32, i32) {
    %c0_i32 = arith.constant 0 : i32
    %c0_i32_0 = arith.constant 0 : i32
    return %c0_i32, %arg1 : i32, i32
  }
  func.func @transform_3(%arg0: i32, %arg1: i32, %arg2: i32) -> (i32, i32) {
    %c0_i32 = arith.constant 0 : i32
    %c0_i32_0 = arith.constant 0 : i32
    %c0_i32_1 = arith.constant 0 : i32
    return %c0_i32, %c0_i32_0 : i32, i32
  }
  func.func @transform_4(%arg0: i32, %arg1: i32, %arg2: i32) -> (i32, i32) {
    %c0_i32 = arith.constant 0 : i32
    %c0_i32_0 = arith.constant 0 : i32
    %c0_i32_1 = arith.constant 0 : i32
    return %c0_i32, %c0_i32_0 : i32, i32
  }
  func.func @transform_5(%arg0: i32, %arg1: i32, %arg2: i32) -> (i32, i32) {
    %c0_i32 = arith.constant 0 : i32
    return %arg0, %arg1 : i32, i32
  }
}

module attributes {stable_mosaic.version = 11 : i64} {
  func.func @_flash_attn_kernel(%arg0: i32, %arg1: i32, %arg2: i32, %arg3: memref<1x32x16xf32, #tpu.memory_space<vmem>>, %arg4: memref<1x32x16xf32, #tpu.memory_space<vmem>>, %arg5: memref<1x32x16xf32, #tpu.memory_space<vmem>>, %arg6: memref<1x32x16xf32, #tpu.memory_space<vmem>>, %arg7: memref<32x1xf32, #tpu.memory_space<vmem>>, %arg8: memref<32x1xf32, #tpu.memory_space<vmem>>, %arg9: memref<32x16xf32, #tpu.memory_space<vmem>>) attributes {dimension_semantics = [#tpu.dimension_semantics<parallel>, #tpu.dimension_semantics<parallel>, #tpu.dimension_semantics<arbitrary>], iteration_bounds = array<i64: 4, 1, 1>, scalar_prefetch = 0 : i64, scratch_operands = 3 : i64, tpu.core_type = #tpu.core_type<tc>, window_params = [{transform_indices = @transform_0, window_bounds = array<i64: 1, 32, 16>}, {transform_indices = @transform_1, window_bounds = array<i64: 1, 32, 16>}, {transform_indices = @transform_2, window_bounds = array<i64: 1, 32, 16>}, {transform_indices = @transform_3, window_bounds = array<i64: 1, 32, 16>}]} {
    %c0_i32 = arith.constant 0 : i32
    %0 = arith.cmpi eq, %arg2, %c0_i32 : i32
    %1 = arith.extui %0 : i1 to i32
    %c0_i32_0 = arith.constant 0 : i32
    %2 = arith.cmpi ne, %1, %c0_i32_0 : i32
    scf.if %2 {
      %cst_27 = arith.constant 0xFF800000 : f32
      %41 = vector.broadcast %cst_27 : f32 to vector<32x1xf32>
      %c0_28 = arith.constant 0 : index
      %c0_29 = arith.constant 0 : index
      %42 = vector.load %arg7[%c0_28, %c0_29] : memref<32x1xf32, #tpu.memory_space<vmem>>, vector<32x1xf32>
      tpu.vector_store %arg7[%c0_28, %c0_29], %41 {strides = array<i32>} : memref<32x1xf32, #tpu.memory_space<vmem>>, vector<32x1xf32>,
      %cst_30 = arith.constant 0.000000e+00 : f32
      %43 = vector.broadcast %cst_30 : f32 to vector<32x1xf32>
      %c0_31 = arith.constant 0 : index
      %c0_32 = arith.constant 0 : index
      %44 = vector.load %arg8[%c0_31, %c0_32] : memref<32x1xf32, #tpu.memory_space<vmem>>, vector<32x1xf32>
      tpu.vector_store %arg8[%c0_31, %c0_32], %43 {strides = array<i32>} : memref<32x1xf32, #tpu.memory_space<vmem>>, vector<32x1xf32>,
      %cst_33 = arith.constant 0.000000e+00 : f32
      %45 = vector.broadcast %cst_33 : f32 to vector<32x16xf32>
      %c0_34 = arith.constant 0 : index
      %c0_35 = arith.constant 0 : index
      %46 = vector.load %arg9[%c0_34, %c0_35] : memref<32x16xf32, #tpu.memory_space<vmem>>, vector<32x16xf32>
      tpu.vector_store %arg9[%c0_34, %c0_35], %45 {strides = array<i32>} : memref<32x16xf32, #tpu.memory_space<vmem>>, vector<32x16xf32>,
    } else {
    }
    %c0 = arith.constant 0 : index
    %c0_1 = arith.constant 0 : index
    %c0_2 = arith.constant 0 : index
    %3 = vector.load %arg3[%c0, %c0_1, %c0_2] : memref<1x32x16xf32, #tpu.memory_space<vmem>>, vector<1x32x16xf32>
    %4 = vector.shape_cast %3 : vector<1x32x16xf32> to vector<32x16xf32>
    %5 = arith.truncf %4 : vector<32x16xf32> to vector<32x16xbf16>
    %c0_3 = arith.constant 0 : index
    %c0_4 = arith.constant 0 : index
    %c0_5 = arith.constant 0 : index
    %6 = vector.load %arg4[%c0_3, %c0_4, %c0_5] : memref<1x32x16xf32, #tpu.memory_space<vmem>>, vector<1x32x16xf32>
    %7 = vector.shape_cast %6 : vector<1x32x16xf32> to vector<32x16xf32>
    %8 = arith.truncf %7 : vector<32x16xf32> to vector<32x16xbf16>
    %cst = arith.constant dense<0.000000e+00> : vector<32x32xf32>
    %9 = tpu.matmul %5, %8, %cst {dimension_numbers = #tpu.dot_dimension_numbers<[1], [1], [0], [0], [0, 0, 1, 0], [], []>} : vector<32x16xbf16>, vector<32x16xbf16>, vector<32x32xf32> -> vector<32x32xf32>
    %cst_6 = arith.constant 2.500000e-01 : f32
    %10 = vector.broadcast %cst_6 : f32 to vector<32x32xf32>
    %11 = arith.mulf %9, %10 : vector<32x32xf32>
    %c0_7 = arith.constant 0 : index
    %c0_8 = arith.constant 0 : index
    %12 = vector.load %arg7[%c0_7, %c0_8] : memref<32x1xf32, #tpu.memory_space<vmem>>, vector<32x1xf32>
    %cst_9 = arith.constant dense<0xFF800000> : vector<32xf32>
    %13 = vector.multi_reduction <maximumf>, %11, %cst_9 [1] : vector<32x32xf32> to vector<32xf32>
    %14 = vector.shape_cast %13 : vector<32xf32> to vector<32x1xf32>
    %15 = arith.maximumf %12, %14 : vector<32x1xf32>
    %16 = arith.subf %12, %15 : vector<32x1xf32>
    %17 = math.exp %16 : vector<32x1xf32>
    %18 = vector.broadcast %15 : vector<32x1xf32> to vector<32x32xf32>
    %19 = arith.subf %11, %18 : vector<32x32xf32>
    %20 = math.exp %19 : vector<32x32xf32>
    %c0_10 = arith.constant 0 : index
    %c0_11 = arith.constant 0 : index
    %21 = vector.load %arg8[%c0_10, %c0_11] : memref<32x1xf32, #tpu.memory_space<vmem>>, vector<32x1xf32>
    %22 = arith.mulf %17, %21 : vector<32x1xf32>
    %cst_12 = arith.constant dense<0.000000e+00> : vector<32xf32>
    %23 = vector.multi_reduction <add>, %20, %cst_12 [1] : vector<32x32xf32> to vector<32xf32>
    %24 = vector.shape_cast %23 : vector<32xf32> to vector<32x1xf32>
    %25 = arith.addf %22, %24 : vector<32x1xf32>
    %c0_13 = arith.constant 0 : index
    %c0_14 = arith.constant 0 : index
    %26 = vector.load %arg8[%c0_13, %c0_14] : memref<32x1xf32, #tpu.memory_space<vmem>>, vector<32x1xf32>
    tpu.vector_store %arg8[%c0_13, %c0_14], %25 {strides = array<i32>} : memref<32x1xf32, #tpu.memory_space<vmem>>, vector<32x1xf32>,
    %c0_15 = arith.constant 0 : index
    %c0_16 = arith.constant 0 : index
    %27 = vector.load %arg9[%c0_15, %c0_16] : memref<32x16xf32, #tpu.memory_space<vmem>>, vector<32x16xf32>
    %28 = vector.broadcast %17 : vector<32x1xf32> to vector<32x16xf32>
    %29 = arith.mulf %28, %27 : vector<32x16xf32>
    %30 = arith.truncf %20 : vector<32x32xf32> to vector<32x32xbf16>
    %c0_17 = arith.constant 0 : index
    %c0_18 = arith.constant 0 : index
    %c0_19 = arith.constant 0 : index
    %31 = vector.load %arg5[%c0_17, %c0_18, %c0_19] : memref<1x32x16xf32, #tpu.memory_space<vmem>>, vector<1x32x16xf32>
    %32 = vector.shape_cast %31 : vector<1x32x16xf32> to vector<32x16xf32>
    %33 = arith.truncf %32 : vector<32x16xf32> to vector<32x16xbf16>
    %cst_20 = arith.constant dense<0.000000e+00> : vector<32x16xf32>
    %34 = tpu.matmul %30, %33, %cst_20 {dimension_numbers = #tpu.dot_dimension_numbers<[1], [0], [0], [1], [0, 0, 1, 1], [], []>} : vector<32x32xbf16>, vector<32x16xbf16>, vector<32x16xf32> -> vector<32x16xf32>
    %35 = arith.addf %29, %34 : vector<32x16xf32>
    %c0_21 = arith.constant 0 : index
    %c0_22 = arith.constant 0 : index
    %36 = vector.load %arg9[%c0_21, %c0_22] : memref<32x16xf32, #tpu.memory_space<vmem>>, vector<32x16xf32>
    tpu.vector_store %arg9[%c0_21, %c0_22], %35 {strides = array<i32>} : memref<32x16xf32, #tpu.memory_space<vmem>>, vector<32x16xf32>,
    %c0_23 = arith.constant 0 : index
    %c0_24 = arith.constant 0 : index
    %37 = vector.load %arg7[%c0_23, %c0_24] : memref<32x1xf32, #tpu.memory_space<vmem>>, vector<32x1xf32>
    tpu.vector_store %arg7[%c0_23, %c0_24], %15 {strides = array<i32>} : memref<32x1xf32, #tpu.memory_space<vmem>>, vector<32x1xf32>,
    %c0_i32_25 = arith.constant 0 : i32
    %38 = arith.cmpi eq, %arg2, %c0_i32_25 : i32
    %39 = arith.extui %38 : i1 to i32
    %c0_i32_26 = arith.constant 0 : i32
    %40 = arith.cmpi ne, %39, %c0_i32_26 : i32
    scf.if %40 {
      %c0_27 = arith.constant 0 : index
      %c0_28 = arith.constant 0 : index
      %41 = vector.load %arg8[%c0_27, %c0_28] : memref<32x1xf32, #tpu.memory_space<vmem>>, vector<32x1xf32>
      %42 = tpu.reciprocal %41 {approx = true} : vector<32x1xf32> -> vector<32x1xf32>
      %c0_29 = arith.constant 0 : index
      %c0_30 = arith.constant 0 : index
      %43 = vector.load %arg9[%c0_29, %c0_30] : memref<32x16xf32, #tpu.memory_space<vmem>>, vector<32x16xf32>
      %44 = vector.broadcast %42 : vector<32x1xf32> to vector<32x16xf32>
      %45 = arith.mulf %43, %44 : vector<32x16xf32>
      %c0_31 = arith.constant 0 : index
      %c0_32 = arith.constant 0 : index
      %c0_33 = arith.constant 0 : index
      %46 = vector.load %arg6[%c0_31, %c0_32, %c0_33] : memref<1x32x16xf32, #tpu.memory_space<vmem>>, vector<1x32x16xf32>
      %47 = vector.shape_cast %46 : vector<1x32x16xf32> to vector<32x16xf32>
      %48 = vector.shape_cast %45 : vector<32x16xf32> to vector<1x32x16xf32>
      tpu.vector_store %arg6[%c0_31, %c0_32, %c0_33], %48 {strides = array<i32>} : memref<1x32x16xf32, #tpu.memory_space<vmem>>, vector<1x32x16xf32>,
    } else {
    }
    return
  }
  func.func @transform_0(%arg0: i32, %arg1: i32, %arg2: i32) -> (i32, i32, i32) {
    %c0_i32 = arith.constant 0 : i32
    %c0_i32_0 = arith.constant 0 : i32
    return %arg0, %arg1, %c0_i32 : i32, i32, i32
  }
  func.func @transform_1(%arg0: i32, %arg1: i32, %arg2: i32) -> (i32, i32, i32) {
    %c0_i32 = arith.constant 0 : i32
    %c0_i32_0 = arith.constant 0 : i32
    return %arg0, %arg2, %c0_i32 : i32, i32, i32
  }
  func.func @transform_2(%arg0: i32, %arg1: i32, %arg2: i32) -> (i32, i32, i32) {
    %c0_i32 = arith.constant 0 : i32
    %c0_i32_0 = arith.constant 0 : i32
    return %arg0, %arg2, %c0_i32 : i32, i32, i32
  }
  func.func @transform_3(%arg0: i32, %arg1: i32, %arg2: i32) -> (i32, i32, i32) {
    %c0_i32 = arith.constant 0 : i32
    %c0_i32_0 = arith.constant 0 : i32
    return %arg0, %arg1, %c0_i32 : i32, i32, i32
  }
}

module attributes {stable_mosaic.version = 11 : i64} {
  func.func @_mm_kernel(%arg0: i32, %arg1: i32, %arg2: i32, %arg3: memref<64x32xbf16, #tpu.memory_space<vmem>>, %arg4: memref<32x32xbf16, #tpu.memory_space<vmem>>, %arg5: memref<1x32xf32, #tpu.memory_space<vmem>>, %arg6: memref<64x32xf32, #tpu.memory_space<vmem>>, %arg7: memref<64x32xf32, #tpu.memory_space<vmem>>, %arg8: memref<64x32xf32, #tpu.memory_space<vmem>>) attributes {dimension_semantics = [#tpu.dimension_semantics<parallel>, #tpu.dimension_semantics<parallel>, #tpu.dimension_semantics<arbitrary>], iteration_bounds = array<i64: 1, 1, 1>, scalar_prefetch = 0 : i64, scratch_operands = 1 : i64, tpu.core_type = #tpu.core_type<tc>, window_params = [{transform_indices = @transform_0, window_bounds = array<i64: 64, 32>}, {transform_indices = @transform_1, window_bounds = array<i64: 32, 32>}, {transform_indices = @transform_2, window_bounds = array<i64: 1, 32>}, {transform_indices = @transform_3, window_bounds = array<i64: 64, 32>}, {transform_indices = @transform_4, window_bounds = array<i64: 64, 32>}]} {
    %c0_i32 = arith.constant 0 : i32
    %0 = arith.cmpi eq, %arg2, %c0_i32 : i32
    %1 = arith.extui %0 : i1 to i32
    %c0_i32_0 = arith.constant 0 : i32
    %2 = arith.cmpi ne, %1, %c0_i32_0 : i32
    scf.if %2 {
      %cst_10 = arith.constant 0.000000e+00 : f32
      %12 = vector.broadcast %cst_10 : f32 to vector<64x32xf32>
      %c0_11 = arith.constant 0 : index
      %c0_12 = arith.constant 0 : index
      %13 = vector.load %arg8[%c0_11, %c0_12] : memref<64x32xf32, #tpu.memory_space<vmem>>, vector<64x32xf32>
      tpu.vector_store %arg8[%c0_11, %c0_12], %12 {strides = array<i32>} : memref<64x32xf32, #tpu.memory_space<vmem>>, vector<64x32xf32>,
    } else {
    }
    %c0 = arith.constant 0 : index
    %c0_1 = arith.constant 0 : index
    %3 = vector.load %arg3[%c0, %c0_1] : memref<64x32xbf16, #tpu.memory_space<vmem>>, vector<64x32xbf16>
    %c0_2 = arith.constant 0 : index
    %c0_3 = arith.constant 0 : index
    %4 = vector.load %arg8[%c0_2, %c0_3] : memref<64x32xf32, #tpu.memory_space<vmem>>, vector<64x32xf32>
    %c0_4 = arith.constant 0 : index
    %c0_5 = arith.constant 0 : index
    %5 = vector.load %arg4[%c0_4, %c0_5] : memref<32x32xbf16, #tpu.memory_space<vmem>>, vector<32x32xbf16>
    %cst = arith.constant dense<0.000000e+00> : vector<64x32xf32>
    %6 = tpu.matmul %3, %5, %cst {dimension_numbers = #tpu.dot_dimension_numbers<[1], [0], [0], [1], [0, 0, 1, 1], [], []>} : vector<64x32xbf16>, vector<32x32xbf16>, vector<64x32xf32> -> vector<64x32xf32>
    %7 = arith.addf %4, %6 : vector<64x32xf32>
    %c0_6 = arith.constant 0 : index
    %c0_7 = arith.constant 0 : index
    %8 = vector.load %arg8[%c0_6, %c0_7] : memref<64x32xf32, #tpu.memory_space<vmem>>, vector<64x32xf32>
    tpu.vector_store %arg8[%c0_6, %c0_7], %7 {strides = array<i32>} : memref<64x32xf32, #tpu.memory_space<vmem>>, vector<64x32xf32>,
    %c0_i32_8 = arith.constant 0 : i32
    %9 = arith.cmpi eq, %arg2, %c0_i32_8 : i32
    %10 = arith.extui %9 : i1 to i32
    %c0_i32_9 = arith.constant 0 : i32
    %11 = arith.cmpi ne, %10, %c0_i32_9 : i32
    scf.if %11 {
      %c0_10 = arith.constant 0 : index
      %c0_11 = arith.constant 0 : index
      %12 = vector.load %arg8[%c0_10, %c0_11] : memref<64x32xf32, #tpu.memory_space<vmem>>, vector<64x32xf32>
      %c0_12 = arith.constant 0 : index
      %c0_13 = arith.constant 0 : index
      %13 = vector.load %arg5[%c0_12, %c0_13] : memref<1x32xf32, #tpu.memory_space<vmem>>, vector<1x32xf32>
      %14 = vector.broadcast %13 : vector<1x32xf32> to vector<64x32xf32>
      %15 = arith.addf %12, %14 : vector<64x32xf32>
      %c0_14 = arith.constant 0 : index
      %c0_15 = arith.constant 0 : index
      %16 = vector.load %arg6[%c0_14, %c0_15] : memref<64x32xf32, #tpu.memory_space<vmem>>, vector<64x32xf32>
      %17 = arith.addf %15, %16 : vector<64x32xf32>
      %c0_16 = arith.constant 0 : index
      %c0_17 = arith.constant 0 : index
      %18 = vector.load %arg7[%c0_16, %c0_17] : memref<64x32xf32, #tpu.memory_space<vmem>>, vector<64x32xf32>
      tpu.vector_store %arg7[%c0_16, %c0_17], %17 {strides = array<i32>} : memref<64x32xf32, #tpu.memory_space<vmem>>, vector<64x32xf32>,
    } else {
    }
    return
  }
  func.func @transform_0(%arg0: i32, %arg1: i32, %arg2: i32) -> (i32, i32) {
    %c0_i32 = arith.constant 0 : i32
    return %arg0, %arg2 : i32, i32
  }
  func.func @transform_1(%arg0: i32, %arg1: i32, %arg2: i32) -> (i32, i32) {
    %c0_i32 = arith.constant 0 : i32
    return %arg2, %arg1 : i32, i32
  }
  func.func @transform_2(%arg0: i32, %arg1: i32, %arg2: i32) -> (i32, i32) {
    %c0_i32 = arith.constant 0 : i32
    %c0_i32_0 = arith.constant 0 : i32
    return %c0_i32, %arg1 : i32, i32
  }
  func.func @transform_3(%arg0: i32, %arg1: i32, %arg2: i32) -> (i32, i32) {
    %c0_i32 = arith.constant 0 : i32
    return %arg0, %arg1 : i32, i32
  }
  func.func @transform_4(%arg0: i32, %arg1: i32, %arg2: i32) -> (i32, i32) {
    %c0_i32 = arith.constant 0 : i32
    return %arg0, %arg1 : i32, i32
  }
}

module attributes {stable_mosaic.version = 11 : i64} {
  func.func @_mm_kernel(%arg0: i32, %arg1: i32, %arg2: i32, %arg3: memref<64x32xf32, #tpu.memory_space<vmem>>, %arg4: memref<32x128xbf16, #tpu.memory_space<vmem>>, %arg5: memref<1x128xf32, #tpu.memory_space<vmem>>, %arg6: memref<1x32xf32, #tpu.memory_space<vmem>>, %arg7: memref<1x32xf32, #tpu.memory_space<vmem>>, %arg8: memref<64x128xf32, #tpu.memory_space<vmem>>, %arg9: memref<64x128xf32, #tpu.memory_space<vmem>>) attributes {dimension_semantics = [#tpu.dimension_semantics<parallel>, #tpu.dimension_semantics<parallel>, #tpu.dimension_semantics<arbitrary>], iteration_bounds = array<i64: 1, 1, 1>, scalar_prefetch = 0 : i64, scratch_operands = 1 : i64, tpu.core_type = #tpu.core_type<tc>, window_params = [{transform_indices = @transform_0, window_bounds = array<i64: 64, 32>}, {transform_indices = @transform_1, window_bounds = array<i64: 32, 128>}, {transform_indices = @transform_2, window_bounds = array<i64: 1, 128>}, {pipeline_mode = #tpu.pipeline_mode<synchronous>, transform_indices = @transform_3, window_bounds = array<i64: 1, 32>}, {pipeline_mode = #tpu.pipeline_mode<synchronous>, transform_indices = @transform_4, window_bounds = array<i64: 1, 32>}, {transform_indices = @transform_5, window_bounds = array<i64: 64, 128>}]} {
    %c0_i32 = arith.constant 0 : i32
    %0 = arith.cmpi eq, %arg2, %c0_i32 : i32
    %1 = arith.extui %0 : i1 to i32
    %c0_i32_0 = arith.constant 0 : i32
    %2 = arith.cmpi ne, %1, %c0_i32_0 : i32
    scf.if %2 {
      %cst_19 = arith.constant 0.000000e+00 : f32
      %37 = vector.broadcast %cst_19 : f32 to vector<64x128xf32>
      %c0_20 = arith.constant 0 : index
      %c0_21 = arith.constant 0 : index
      %38 = vector.load %arg9[%c0_20, %c0_21] : memref<64x128xf32, #tpu.memory_space<vmem>>, vector<64x128xf32>
      tpu.vector_store %arg9[%c0_20, %c0_21], %37 {strides = array<i32>} : memref<64x128xf32, #tpu.memory_space<vmem>>, vector<64x128xf32>,
    } else {
    }
    %c0 = arith.constant 0 : index
    %c0_1 = arith.constant 0 : index
    %3 = vector.load %arg3[%c0, %c0_1] : memref<64x32xf32, #tpu.memory_space<vmem>>, vector<64x32xf32>
    %cst = arith.constant dense<0.000000e+00> : vector<64xf32>
    %4 = vector.multi_reduction <add>, %3, %cst [1] : vector<64x32xf32> to vector<64xf32>
    %5 = vector.shape_cast %4 : vector<64xf32> to vector<64x1xf32>
    %cst_2 = arith.constant 3.200000e+01 : f32
    %6 = vector.broadcast %cst_2 : f32 to vector<64x1xf32>
    %7 = arith.divf %5, %6 : vector<64x1xf32>
    %8 = vector.broadcast %7 : vector<64x1xf32> to vector<64x32xf32>
    %9 = arith.subf %3, %8 : vector<64x32xf32>
    %10 = arith.mulf %9, %9 : vector<64x32xf32>
    %cst_3 = arith.constant dense<0.000000e+00> : vector<64xf32>
    %11 = vector.multi_reduction <add>, %10, %cst_3 [1] : vector<64x32xf32> to vector<64xf32>
    %12 = vector.shape_cast %11 : vector<64xf32> to vector<64x1xf32>
    %cst_4 = arith.constant 3.200000e+01 : f32
    %13 = vector.broadcast %cst_4 : f32 to vector<64x1xf32>
    %14 = arith.divf %12, %13 : vector<64x1xf32>
    %15 = vector.broadcast %7 : vector<64x1xf32> to vector<64x32xf32>
    %16 = arith.subf %3, %15 : vector<64x32xf32>
    %cst_5 = arith.constant 9.99999974E-6 : f32
    %17 = vector.broadcast %cst_5 : f32 to vector<64x1xf32>
    %18 = arith.addf %14, %17 : vector<64x1xf32>
    %19 = math.rsqrt %18 : vector<64x1xf32>
    %20 = vector.broadcast %19 : vector<64x1xf32> to vector<64x32xf32>
    %21 = arith.mulf %16, %20 : vector<64x32xf32>
    %c0_6 = arith.constant 0 : index
    %c0_7 = arith.constant 0 : index
    %22 = vector.load %arg6[%c0_6, %c0_7] : memref<1x32xf32, #tpu.memory_space<vmem>>, vector<1x32xf32>
    %23 = vector.broadcast %22 : vector<1x32xf32> to vector<64x32xf32>
    %24 = arith.mulf %21, %23 : vector<64x32xf32>
    %c0_8 = arith.constant 0 : index
    %c0_9 = arith.constant 0 : index
    %25 = vector.load %arg7[%c0_8, %c0_9] : memref<1x32xf32, #tpu.memory_space<vmem>>, vector<1x32xf32>
    %26 = vector.broadcast %25 : vector<1x32xf32> to vector<64x32xf32>
    %27 = arith.addf %24, %26 : vector<64x32xf32>
    %28 = arith.truncf %27 : vector<64x32xf32> to vector<64x32xbf16>
    %c0_10 = arith.constant 0 : index
    %c0_11 = arith.constant 0 : index
    %29 = vector.load %arg9[%c0_10, %c0_11] : memref<64x128xf32, #tpu.memory_space<vmem>>, vector<64x128xf32>
    %c0_12 = arith.constant 0 : index
    %c0_13 = arith.constant 0 : index
    %30 = vector.load %arg4[%c0_12, %c0_13] : memref<32x128xbf16, #tpu.memory_space<vmem>>, vector<32x128xbf16>
    %cst_14 = arith.constant dense<0.000000e+00> : vector<64x128xf32>
    %31 = tpu.matmul %28, %30, %cst_14 {dimension_numbers = #tpu.dot_dimension_numbers<[1], [0], [0], [1], [0, 0, 1, 1], [], []>} : vector<64x32xbf16>, vector<32x128xbf16>, vector<64x128xf32> -> vector<64x128xf32>
    %32 = arith.addf %29, %31 : vector<64x128xf32>
    %c0_15 = arith.constant 0 : index
    %c0_16 = arith.constant 0 : index
    %33 = vector.load %arg9[%c0_15, %c0_16] : memref<64x128xf32, #tpu.memory_space<vmem>>, vector<64x128xf32>
    tpu.vector_store %arg9[%c0_15, %c0_16], %32 {strides = array<i32>} : memref<64x128xf32, #tpu.memory_space<vmem>>, vector<64x128xf32>,
    %c0_i32_17 = arith.constant 0 : i32
    %34 = arith.cmpi eq, %arg2, %c0_i32_17 : i32
    %35 = arith.extui %34 : i1 to i32
    %c0_i32_18 = arith.constant 0 : i32
    %36 = arith.cmpi ne, %35, %c0_i32_18 : i32
    scf.if %36 {
      %c0_19 = arith.constant 0 : index
      %c0_20 = arith.constant 0 : index
      %37 = vector.load %arg9[%c0_19, %c0_20] : memref<64x128xf32, #tpu.memory_space<vmem>>, vector<64x128xf32>
      %c0_21 = arith.constant 0 : index
      %c0_22 = arith.constant 0 : index
      %38 = vector.load %arg5[%c0_21, %c0_22] : memref<1x128xf32, #tpu.memory_space<vmem>>, vector<1x128xf32>
      %39 = vector.broadcast %38 : vector<1x128xf32> to vector<64x128xf32>
      %40 = arith.addf %37, %39 : vector<64x128xf32>
      %41 = arith.mulf %40, %40 : vector<64x128xf32>
      %42 = arith.mulf %40, %41 : vector<64x128xf32>
      %cst_23 = arith.constant 4.471500e-02 : f32
      %43 = vector.broadcast %cst_23 : f32 to vector<64x128xf32>
      %44 = arith.mulf %43, %42 : vector<64x128xf32>
      %45 = arith.addf %40, %44 : vector<64x128xf32>
      %cst_24 = arith.constant 0.797884583 : f32
      %46 = vector.broadcast %cst_24 : f32 to vector<64x128xf32>
      %47 = arith.mulf %46, %45 : vector<64x128xf32>
      %48 = math.tanh %47 : vector<64x128xf32>
      %cst_25 = arith.constant 1.000000e+00 : f32
      %49 = vector.broadcast %cst_25 : f32 to vector<64x128xf32>
      %50 = arith.addf %49, %48 : vector<64x128xf32>
      %cst_26 = arith.constant 5.000000e-01 : f32
      %51 = vector.broadcast %cst_26 : f32 to vector<64x128xf32>
      %52 = arith.mulf %51, %50 : vector<64x128xf32>
      %53 = arith.mulf %40, %52 : vector<64x128xf32>
      %c0_27 = arith.constant 0 : index
      %c0_28 = arith.constant 0 : index
      %54 = vector.load %arg8[%c0_27, %c0_28] : memref<64x128xf32, #tpu.memory_space<vmem>>, vector<64x128xf32>
      tpu.vector_store %arg8[%c0_27, %c0_28], %53 {strides = array<i32>} : memref<64x128xf32, #tpu.memory_space<vmem>>, vector<64x128xf32>,
    } else {
    }
    return
  }
  func.func @transform_0(%arg0: i32, %arg1: i32, %arg2: i32) -> (i32, i32) {
    %c0_i32 = arith.constant 0 : i32
    return %arg0, %arg2 : i32, i32
  }
  func.func @transform_1(%arg0: i32, %arg1: i32, %arg2: i32) -> (i32, i32) {
    %c0_i32 = arith.constant 0 : i32
    return %arg2, %arg1 : i32, i32
  }
  func.func @transform_2(%arg0: i32, %arg1: i32, %arg2: i32) -> (i32, i32) {
    %c0_i32 = arith.constant 0 : i32
    %c0_i32_0 = arith.constant 0 : i32
    return %c0_i32, %arg1 : i32, i32
  }
  func.func @transform_3(%arg0: i32, %arg1: i32, %arg2: i32) -> (i32, i32) {
    %c0_i32 = arith.constant 0 : i32
    %c0_i32_0 = arith.constant 0 : i32
    %c0_i32_1 = arith.constant 0 : i32
    return %c0_i32, %c0_i32_0 : i32, i32
  }
  func.func @transform_4(%arg0: i32, %arg1: i32, %arg2: i32) -> (i32, i32) {
    %c0_i32 = arith.constant 0 : i32
    %c0_i32_0 = arith.constant 0 : i32
    %c0_i32_1 = arith.constant 0 : i32
    return %c0_i32, %c0_i32_0 : i32, i32
  }
  func.func @transform_5(%arg0: i32, %arg1: i32, %arg2: i32) -> (i32, i32) {
    %c0_i32 = arith.constant 0 : i32
    return %arg0, %arg1 : i32, i32
  }
}

module attributes {stable_mosaic.version = 11 : i64} {
  func.func @_mm_kernel(%arg0: i32, %arg1: i32, %arg2: i32, %arg3: memref<64x128xbf16, #tpu.memory_space<vmem>>, %arg4: memref<128x32xbf16, #tpu.memory_space<vmem>>, %arg5: memref<1x32xf32, #tpu.memory_space<vmem>>, %arg6: memref<64x32xf32, #tpu.memory_space<vmem>>, %arg7: memref<64x32xf32, #tpu.memory_space<vmem>>, %arg8: memref<64x32xf32, #tpu.memory_space<vmem>>) attributes {dimension_semantics = [#tpu.dimension_semantics<parallel>, #tpu.dimension_semantics<parallel>, #tpu.dimension_semantics<arbitrary>], iteration_bounds = array<i64: 1, 1, 1>, scalar_prefetch = 0 : i64, scratch_operands = 1 : i64, tpu.core_type = #tpu.core_type<tc>, window_params = [{transform_indices = @transform_0, window_bounds = array<i64: 64, 128>}, {transform_indices = @transform_1, window_bounds = array<i64: 128, 32>}, {transform_indices = @transform_2, window_bounds = array<i64: 1, 32>}, {transform_indices = @transform_3, window_bounds = array<i64: 64, 32>}, {transform_indices = @transform_4, window_bounds = array<i64: 64, 32>}]} {
    %c0_i32 = arith.constant 0 : i32
    %0 = arith.cmpi eq, %arg2, %c0_i32 : i32
    %1 = arith.extui %0 : i1 to i32
    %c0_i32_0 = arith.constant 0 : i32
    %2 = arith.cmpi ne, %1, %c0_i32_0 : i32
    scf.if %2 {
      %cst_10 = arith.constant 0.000000e+00 : f32
      %12 = vector.broadcast %cst_10 : f32 to vector<64x32xf32>
      %c0_11 = arith.constant 0 : index
      %c0_12 = arith.constant 0 : index
      %13 = vector.load %arg8[%c0_11, %c0_12] : memref<64x32xf32, #tpu.memory_space<vmem>>, vector<64x32xf32>
      tpu.vector_store %arg8[%c0_11, %c0_12], %12 {strides = array<i32>} : memref<64x32xf32, #tpu.memory_space<vmem>>, vector<64x32xf32>,
    } else {
    }
    %c0 = arith.constant 0 : index
    %c0_1 = arith.constant 0 : index
    %3 = vector.load %arg3[%c0, %c0_1] : memref<64x128xbf16, #tpu.memory_space<vmem>>, vector<64x128xbf16>
    %c0_2 = arith.constant 0 : index
    %c0_3 = arith.constant 0 : index
    %4 = vector.load %arg8[%c0_2, %c0_3] : memref<64x32xf32, #tpu.memory_space<vmem>>, vector<64x32xf32>
    %c0_4 = arith.constant 0 : index
    %c0_5 = arith.constant 0 : index
    %5 = vector.load %arg4[%c0_4, %c0_5] : memref<128x32xbf16, #tpu.memory_space<vmem>>, vector<128x32xbf16>
    %cst = arith.constant dense<0.000000e+00> : vector<64x32xf32>
    %6 = tpu.matmul %3, %5, %cst {dimension_numbers = #tpu.dot_dimension_numbers<[1], [0], [0], [1], [0, 0, 1, 1], [], []>} : vector<64x128xbf16>, vector<128x32xbf16>, vector<64x32xf32> -> vector<64x32xf32>
    %7 = arith.addf %4, %6 : vector<64x32xf32>
    %c0_6 = arith.constant 0 : index
    %c0_7 = arith.constant 0 : index
    %8 = vector.load %arg8[%c0_6, %c0_7] : memref<64x32xf32, #tpu.memory_space<vmem>>, vector<64x32xf32>
    tpu.vector_store %arg8[%c0_6, %c0_7], %7 {strides = array<i32>} : memref<64x32xf32, #tpu.memory_space<vmem>>, vector<64x32xf32>,
    %c0_i32_8 = arith.constant 0 : i32
    %9 = arith.cmpi eq, %arg2, %c0_i32_8 : i32
    %10 = arith.extui %9 : i1 to i32
    %c0_i32_9 = arith.constant 0 : i32
    %11 = arith.cmpi ne, %10, %c0_i32_9 : i32
    scf.if %11 {
      %c0_10 = arith.constant 0 : index
      %c0_11 = arith.constant 0 : index
      %12 = vector.load %arg8[%c0_10, %c0_11] : memref<64x32xf32, #tpu.memory_space<vmem>>, vector<64x32xf32>
      %c0_12 = arith.constant 0 : index
      %c0_13 = arith.constant 0 : index
      %13 = vector.load %arg5[%c0_12, %c0_13] : memref<1x32xf32, #tpu.memory_space<vmem>>, vector<1x32xf32>
      %14 = vector.broadcast %13 : vector<1x32xf32> to vector<64x32xf32>
      %15 = arith.addf %12, %14 : vector<64x32xf32>
      %c0_14 = arith.constant 0 : index
      %c0_15 = arith.constant 0 : index
      %16 = vector.load %arg6[%c0_14, %c0_15] : memref<64x32xf32, #tpu.memory_space<vmem>>, vector<64x32xf32>
      %17 = arith.addf %15, %16 : vector<64x32xf32>
      %c0_16 = arith.constant 0 : index
      %c0_17 = arith.constant 0 : index
      %18 = vector.load %arg7[%c0_16, %c0_17] : memref<64x32xf32, #tpu.memory_space<vmem>>, vector<64x32xf32>
      tpu.vector_store %arg7[%c0_16, %c0_17], %17 {strides = array<i32>} : memref<64x32xf32, #tpu.memory_space<vmem>>, vector<64x32xf32>,
    } else {
    }
    return
  }
  func.func @transform_0(%arg0: i32, %arg1: i32, %arg2: i32) -> (i32, i32) {
    %c0_i32 = arith.constant 0 : i32
    return %arg0, %arg2 : i32, i32
  }
  func.func @transform_1(%arg0: i32, %arg1: i32, %arg2: i32) -> (i32, i32) {
    %c0_i32 = arith.constant 0 : i32
    return %arg2, %arg1 : i32, i32
  }
  func.func @transform_2(%arg0: i32, %arg1: i32, %arg2: i32) -> (i32, i32) {
    %c0_i32 = arith.constant 0 : i32
    %c0_i32_0 = arith.constant 0 : i32
    return %c0_i32, %arg1 : i32, i32
  }
  func.func @transform_3(%arg0: i32, %arg1: i32, %arg2: i32) -> (i32, i32) {
    %c0_i32 = arith.constant 0 : i32
    return %arg0, %arg1 : i32, i32
  }
  func.func @transform_4(%arg0: i32, %arg1: i32, %arg2: i32) -> (i32, i32) {
    %c0_i32 = arith.constant 0 : i32
    return %arg0, %arg1 : i32, i32
  }
}

module attributes {stable_mosaic.version = 11 : i64} {
  func.func @_mm_kernel(%arg0: i32, %arg1: i32, %arg2: i32, %arg3: memref<16x128xf32, #tpu.memory_space<vmem>>, %arg4: memref<128x64xbf16, #tpu.memory_space<vmem>>, %arg5: memref<1x64xf32, #tpu.memory_space<vmem>>, %arg6: memref<1x128xf32, #tpu.memory_space<vmem>>, %arg7: memref<1x128xf32, #tpu.memory_space<vmem>>, %arg8: memref<16x64xf32, #tpu.memory_space<vmem>>, %arg9: memref<16x64xf32, #tpu.memory_space<vmem>>) attributes {dimension_semantics = [#tpu.dimension_semantics<parallel>, #tpu.dimension_semantics<parallel>, #tpu.dimension_semantics<arbitrary>], iteration_bounds = array<i64: 1, 1, 1>, scalar_prefetch = 0 : i64, scratch_operands = 1 : i64, tpu.core_type = #tpu.core_type<tc>, window_params = [{transform_indices = @transform_0, window_bounds = array<i64: 16, 128>}, {transform_indices = @transform_1, window_bounds = array<i64: 128, 64>}, {transform_indices = @transform_2, window_bounds = array<i64: 1, 64>}, {pipeline_mode = #tpu.pipeline_mode<synchronous>, transform_indices = @transform_3, window_bounds = array<i64: 1, 128>}, {pipeline_mode = #tpu.pipeline_mode<synchronous>, transform_indices = @transform_4, window_bounds = array<i64: 1, 128>}, {transform_indices = @transform_5, window_bounds = array<i64: 16, 64>}]} {
    %c0_i32 = arith.constant 0 : i32
    %0 = arith.cmpi eq, %arg2, %c0_i32 : i32
    %1 = arith.extui %0 : i1 to i32
    %c0_i32_0 = arith.constant 0 : i32
    %2 = arith.cmpi ne, %1, %c0_i32_0 : i32
    scf.if %2 {
      %cst_19 = arith.constant 0.000000e+00 : f32
      %37 = vector.broadcast %cst_19 : f32 to vector<16x64xf32>
      %c0_20 = arith.constant 0 : index
      %c0_21 = arith.constant 0 : index
      %38 = vector.load %arg9[%c0_20, %c0_21] : memref<16x64xf32, #tpu.memory_space<vmem>>, vector<16x64xf32>
      tpu.vector_store %arg9[%c0_20, %c0_21], %37 {strides = array<i32>} : memref<16x64xf32, #tpu.memory_space<vmem>>, vector<16x64xf32>,
    } else {
    }
    %c0 = arith.constant 0 : index
    %c0_1 = arith.constant 0 : index
    %3 = vector.load %arg3[%c0, %c0_1] : memref<16x128xf32, #tpu.memory_space<vmem>>, vector<16x128xf32>
    %cst = arith.constant dense<0.000000e+00> : vector<16xf32>
    %4 = vector.multi_reduction <add>, %3, %cst [1] : vector<16x128xf32> to vector<16xf32>
    %5 = vector.shape_cast %4 : vector<16xf32> to vector<16x1xf32>
    %cst_2 = arith.constant 1.280000e+02 : f32
    %6 = vector.broadcast %cst_2 : f32 to vector<16x1xf32>
    %7 = arith.divf %5, %6 : vector<16x1xf32>
    %8 = vector.broadcast %7 : vector<16x1xf32> to vector<16x128xf32>
    %9 = arith.subf %3, %8 : vector<16x128xf32>
    %10 = arith.mulf %9, %9 : vector<16x128xf32>
    %cst_3 = arith.constant dense<0.000000e+00> : vector<16xf32>
    %11 = vector.multi_reduction <add>, %10, %cst_3 [1] : vector<16x128xf32> to vector<16xf32>
    %12 = vector.shape_cast %11 : vector<16xf32> to vector<16x1xf32>
    %cst_4 = arith.constant 1.280000e+02 : f32
    %13 = vector.broadcast %cst_4 : f32 to vector<16x1xf32>
    %14 = arith.divf %12, %13 : vector<16x1xf32>
    %15 = vector.broadcast %7 : vector<16x1xf32> to vector<16x128xf32>
    %16 = arith.subf %3, %15 : vector<16x128xf32>
    %cst_5 = arith.constant 9.99999974E-6 : f32
    %17 = vector.broadcast %cst_5 : f32 to vector<16x1xf32>
    %18 = arith.addf %14, %17 : vector<16x1xf32>
    %19 = math.rsqrt %18 : vector<16x1xf32>
    %20 = vector.broadcast %19 : vector<16x1xf32> to vector<16x128xf32>
    %21 = arith.mulf %16, %20 : vector<16x128xf32>
    %c0_6 = arith.constant 0 : index
    %c0_7 = arith.constant 0 : index
    %22 = vector.load %arg6[%c0_6, %c0_7] : memref<1x128xf32, #tpu.memory_space<vmem>>, vector<1x128xf32>
    %23 = vector.broadcast %22 : vector<1x128xf32> to vector<16x128xf32>
    %24 = arith.mulf %21, %23 : vector<16x128xf32>
    %c0_8 = arith.constant 0 : index
    %c0_9 = arith.constant 0 : index
    %25 = vector.load %arg7[%c0_8, %c0_9] : memref<1x128xf32, #tpu.memory_space<vmem>>, vector<1x128xf32>
    %26 = vector.broadcast %25 : vector<1x128xf32> to vector<16x128xf32>
    %27 = arith.addf %24, %26 : vector<16x128xf32>
    %28 = arith.truncf %27 : vector<16x128xf32> to vector<16x128xbf16>
    %c0_10 = arith.constant 0 : index
    %c0_11 = arith.constant 0 : index
    %29 = vector.load %arg9[%c0_10, %c0_11] : memref<16x64xf32, #tpu.memory_space<vmem>>, vector<16x64xf32>
    %c0_12 = arith.constant 0 : index
    %c0_13 = arith.constant 0 : index
    %30 = vector.load %arg4[%c0_12, %c0_13] : memref<128x64xbf16, #tpu.memory_space<vmem>>, vector<128x64xbf16>
    %cst_14 = arith.constant dense<0.000000e+00> : vector<16x64xf32>
    %31 = tpu.matmul %28, %30, %cst_14 {dimension_numbers = #tpu.dot_dimension_numbers<[1], [0], [0], [1], [0, 0, 1, 1], [], []>} : vector<16x128xbf16>, vector<128x64xbf16>, vector<16x64xf32> -> vector<16x64xf32>
    %32 = arith.addf %29, %31 : vector<16x64xf32>
    %c0_15 = arith.constant 0 : index
    %c0_16 = arith.constant 0 : index
    %33 = vector.load %arg9[%c0_15, %c0_16] : memref<16x64xf32, #tpu.memory_space<vmem>>, vector<16x64xf32>
    tpu.vector_store %arg9[%c0_15, %c0_16], %32 {strides = array<i32>} : memref<16x64xf32, #tpu.memory_space<vmem>>, vector<16x64xf32>,
    %c0_i32_17 = arith.constant 0 : i32
    %34 = arith.cmpi eq, %arg2, %c0_i32_17 : i32
    %35 = arith.extui %34 : i1 to i32
    %c0_i32_18 = arith.constant 0 : i32
    %36 = arith.cmpi ne, %35, %c0_i32_18 : i32
    scf.if %36 {
      %c0_19 = arith.constant 0 : index
      %c0_20 = arith.constant 0 : index
      %37 = vector.load %arg9[%c0_19, %c0_20] : memref<16x64xf32, #tpu.memory_space<vmem>>, vector<16x64xf32>
      %c0_21 = arith.constant 0 : index
      %c0_22 = arith.constant 0 : index
      %38 = vector.load %arg5[%c0_21, %c0_22] : memref<1x64xf32, #tpu.memory_space<vmem>>, vector<1x64xf32>
      %39 = vector.broadcast %38 : vector<1x64xf32> to vector<16x64xf32>
      %40 = arith.addf %37, %39 : vector<16x64xf32>
      %c0_23 = arith.constant 0 : index
      %c0_24 = arith.constant 0 : index
      %41 = vector.load %arg8[%c0_23, %c0_24] : memref<16x64xf32, #tpu.memory_space<vmem>>, vector<16x64xf32>
      tpu.vector_store %arg8[%c0_23, %c0_24], %40 {strides = array<i32>} : memref<16x64xf32, #tpu.memory_space<vmem>>, vector<16x64xf32>,
    } else {
    }
    return
  }
  func.func @transform_0(%arg0: i32, %arg1: i32, %arg2: i32) -> (i32, i32) {
    %c0_i32 = arith.constant 0 : i32
    return %arg0, %arg2 : i32, i32
  }
  func.func @transform_1(%arg0: i32, %arg1: i32, %arg2: i32) -> (i32, i32) {
    %c0_i32 = arith.constant 0 : i32
    return %arg2, %arg1 : i32, i32
  }
  func.func @transform_2(%arg0: i32, %arg1: i32, %arg2: i32) -> (i32, i32) {
    %c0_i32 = arith.constant 0 : i32
    %c0_i32_0 = arith.constant 0 : i32
    return %c0_i32, %arg1 : i32, i32
  }
  func.func @transform_3(%arg0: i32, %arg1: i32, %arg2: i32) -> (i32, i32) {
    %c0_i32 = arith.constant 0 : i32
    %c0_i32_0 = arith.constant 0 : i32
    %c0_i32_1 = arith.constant 0 : i32
    return %c0_i32, %c0_i32_0 : i32, i32
  }
  func.func @transform_4(%arg0: i32, %arg1: i32, %arg2: i32) -> (i32, i32) {
    %c0_i32 = arith.constant 0 : i32
    %c0_i32_0 = arith.constant 0 : i32
    %c0_i32_1 = arith.constant 0 : i32
    return %c0_i32, %c0_i32_0 : i32, i32
  }
  func.func @transform_5(%arg0: i32, %arg1: i32, %arg2: i32) -> (i32, i32) {
    %c0_i32 = arith.constant 0 : i32
    return %arg0, %arg1 : i32, i32
  }
}

module attributes {stable_mosaic.version = 11 : i64} {
  func.func @_mm_kernel(%arg0: i32, %arg1: i32, %arg2: i32, %arg3: memref<16x64xf32, #tpu.memory_space<vmem>>, %arg4: memref<64x192xbf16, #tpu.memory_space<vmem>>, %arg5: memref<1x192xf32, #tpu.memory_space<vmem>>, %arg6: memref<1x64xf32, #tpu.memory_space<vmem>>, %arg7: memref<1x64xf32, #tpu.memory_space<vmem>>, %arg8: memref<16x192xf32, #tpu.memory_space<vmem>>, %arg9: memref<16x192xf32, #tpu.memory_space<vmem>>) attributes {dimension_semantics = [#tpu.dimension_semantics<parallel>, #tpu.dimension_semantics<parallel>, #tpu.dimension_semantics<arbitrary>], iteration_bounds = array<i64: 1, 1, 1>, scalar_prefetch = 0 : i64, scratch_operands = 1 : i64, tpu.core_type = #tpu.core_type<tc>, window_params = [{transform_indices = @transform_0, window_bounds = array<i64: 16, 64>}, {transform_indices = @transform_1, window_bounds = array<i64: 64, 192>}, {transform_indices = @transform_2, window_bounds = array<i64: 1, 192>}, {pipeline_mode = #tpu.pipeline_mode<synchronous>, transform_indices = @transform_3, window_bounds = array<i64: 1, 64>}, {pipeline_mode = #tpu.pipeline_mode<synchronous>, transform_indices = @transform_4, window_bounds = array<i64: 1, 64>}, {transform_indices = @transform_5, window_bounds = array<i64: 16, 192>}]} {
    %c0_i32 = arith.constant 0 : i32
    %0 = arith.cmpi eq, %arg2, %c0_i32 : i32
    %1 = arith.extui %0 : i1 to i32
    %c0_i32_0 = arith.constant 0 : i32
    %2 = arith.cmpi ne, %1, %c0_i32_0 : i32
    scf.if %2 {
      %cst_19 = arith.constant 0.000000e+00 : f32
      %37 = vector.broadcast %cst_19 : f32 to vector<16x192xf32>
      %c0_20 = arith.constant 0 : index
      %c0_21 = arith.constant 0 : index
      %38 = vector.load %arg9[%c0_20, %c0_21] : memref<16x192xf32, #tpu.memory_space<vmem>>, vector<16x192xf32>
      tpu.vector_store %arg9[%c0_20, %c0_21], %37 {strides = array<i32>} : memref<16x192xf32, #tpu.memory_space<vmem>>, vector<16x192xf32>,
    } else {
    }
    %c0 = arith.constant 0 : index
    %c0_1 = arith.constant 0 : index
    %3 = vector.load %arg3[%c0, %c0_1] : memref<16x64xf32, #tpu.memory_space<vmem>>, vector<16x64xf32>
    %cst = arith.constant dense<0.000000e+00> : vector<16xf32>
    %4 = vector.multi_reduction <add>, %3, %cst [1] : vector<16x64xf32> to vector<16xf32>
    %5 = vector.shape_cast %4 : vector<16xf32> to vector<16x1xf32>
    %cst_2 = arith.constant 6.400000e+01 : f32
    %6 = vector.broadcast %cst_2 : f32 to vector<16x1xf32>
    %7 = arith.divf %5, %6 : vector<16x1xf32>
    %8 = vector.broadcast %7 : vector<16x1xf32> to vector<16x64xf32>
    %9 = arith.subf %3, %8 : vector<16x64xf32>
    %10 = arith.mulf %9, %9 : vector<16x64xf32>
    %cst_3 = arith.constant dense<0.000000e+00> : vector<16xf32>
    %11 = vector.multi_reduction <add>, %10, %cst_3 [1] : vector<16x64xf32> to vector<16xf32>
    %12 = vector.shape_cast %11 : vector<16xf32> to vector<16x1xf32>
    %cst_4 = arith.constant 6.400000e+01 : f32
    %13 = vector.broadcast %cst_4 : f32 to vector<16x1xf32>
    %14 = arith.divf %12, %13 : vector<16x1xf32>
    %15 = vector.broadcast %7 : vector<16x1xf32> to vector<16x64xf32>
    %16 = arith.subf %3, %15 : vector<16x64xf32>
    %cst_5 = arith.constant 9.99999974E-6 : f32
    %17 = vector.broadcast %cst_5 : f32 to vector<16x1xf32>
    %18 = arith.addf %14, %17 : vector<16x1xf32>
    %19 = math.rsqrt %18 : vector<16x1xf32>
    %20 = vector.broadcast %19 : vector<16x1xf32> to vector<16x64xf32>
    %21 = arith.mulf %16, %20 : vector<16x64xf32>
    %c0_6 = arith.constant 0 : index
    %c0_7 = arith.constant 0 : index
    %22 = vector.load %arg6[%c0_6, %c0_7] : memref<1x64xf32, #tpu.memory_space<vmem>>, vector<1x64xf32>
    %23 = vector.broadcast %22 : vector<1x64xf32> to vector<16x64xf32>
    %24 = arith.mulf %21, %23 : vector<16x64xf32>
    %c0_8 = arith.constant 0 : index
    %c0_9 = arith.constant 0 : index
    %25 = vector.load %arg7[%c0_8, %c0_9] : memref<1x64xf32, #tpu.memory_space<vmem>>, vector<1x64xf32>
    %26 = vector.broadcast %25 : vector<1x64xf32> to vector<16x64xf32>
    %27 = arith.addf %24, %26 : vector<16x64xf32>
    %28 = arith.truncf %27 : vector<16x64xf32> to vector<16x64xbf16>
    %c0_10 = arith.constant 0 : index
    %c0_11 = arith.constant 0 : index
    %29 = vector.load %arg9[%c0_10, %c0_11] : memref<16x192xf32, #tpu.memory_space<vmem>>, vector<16x192xf32>
    %c0_12 = arith.constant 0 : index
    %c0_13 = arith.constant 0 : index
    %30 = vector.load %arg4[%c0_12, %c0_13] : memref<64x192xbf16, #tpu.memory_space<vmem>>, vector<64x192xbf16>
    %cst_14 = arith.constant dense<0.000000e+00> : vector<16x192xf32>
    %31 = tpu.matmul %28, %30, %cst_14 {dimension_numbers = #tpu.dot_dimension_numbers<[1], [0], [0], [1], [0, 0, 1, 1], [], []>} : vector<16x64xbf16>, vector<64x192xbf16>, vector<16x192xf32> -> vector<16x192xf32>
    %32 = arith.addf %29, %31 : vector<16x192xf32>
    %c0_15 = arith.constant 0 : index
    %c0_16 = arith.constant 0 : index
    %33 = vector.load %arg9[%c0_15, %c0_16] : memref<16x192xf32, #tpu.memory_space<vmem>>, vector<16x192xf32>
    tpu.vector_store %arg9[%c0_15, %c0_16], %32 {strides = array<i32>} : memref<16x192xf32, #tpu.memory_space<vmem>>, vector<16x192xf32>,
    %c0_i32_17 = arith.constant 0 : i32
    %34 = arith.cmpi eq, %arg2, %c0_i32_17 : i32
    %35 = arith.extui %34 : i1 to i32
    %c0_i32_18 = arith.constant 0 : i32
    %36 = arith.cmpi ne, %35, %c0_i32_18 : i32
    scf.if %36 {
      %c0_19 = arith.constant 0 : index
      %c0_20 = arith.constant 0 : index
      %37 = vector.load %arg9[%c0_19, %c0_20] : memref<16x192xf32, #tpu.memory_space<vmem>>, vector<16x192xf32>
      %c0_21 = arith.constant 0 : index
      %c0_22 = arith.constant 0 : index
      %38 = vector.load %arg5[%c0_21, %c0_22] : memref<1x192xf32, #tpu.memory_space<vmem>>, vector<1x192xf32>
      %39 = vector.broadcast %38 : vector<1x192xf32> to vector<16x192xf32>
      %40 = arith.addf %37, %39 : vector<16x192xf32>
      %c0_23 = arith.constant 0 : index
      %c0_24 = arith.constant 0 : index
      %41 = vector.load %arg8[%c0_23, %c0_24] : memref<16x192xf32, #tpu.memory_space<vmem>>, vector<16x192xf32>
      tpu.vector_store %arg8[%c0_23, %c0_24], %40 {strides = array<i32>} : memref<16x192xf32, #tpu.memory_space<vmem>>, vector<16x192xf32>,
    } else {
    }
    return
  }
  func.func @transform_0(%arg0: i32, %arg1: i32, %arg2: i32) -> (i32, i32) {
    %c0_i32 = arith.constant 0 : i32
    return %arg0, %arg2 : i32, i32
  }
  func.func @transform_1(%arg0: i32, %arg1: i32, %arg2: i32) -> (i32, i32) {
    %c0_i32 = arith.constant 0 : i32
    return %arg2, %arg1 : i32, i32
  }
  func.func @transform_2(%arg0: i32, %arg1: i32, %arg2: i32) -> (i32, i32) {
    %c0_i32 = arith.constant 0 : i32
    %c0_i32_0 = arith.constant 0 : i32
    return %c0_i32, %arg1 : i32, i32
  }
  func.func @transform_3(%arg0: i32, %arg1: i32, %arg2: i32) -> (i32, i32) {
    %c0_i32 = arith.constant 0 : i32
    %c0_i32_0 = arith.constant 0 : i32
    %c0_i32_1 = arith.constant 0 : i32
    return %c0_i32, %c0_i32_0 : i32, i32
  }
  func.func @transform_4(%arg0: i32, %arg1: i32, %arg2: i32) -> (i32, i32) {
    %c0_i32 = arith.constant 0 : i32
    %c0_i32_0 = arith.constant 0 : i32
    %c0_i32_1 = arith.constant 0 : i32
    return %c0_i32, %c0_i32_0 : i32, i32
  }
  func.func @transform_5(%arg0: i32, %arg1: i32, %arg2: i32) -> (i32, i32) {
    %c0_i32 = arith.constant 0 : i32
    return %arg0, %arg1 : i32, i32
  }
}

module attributes {stable_mosaic.version = 11 : i64} {
  func.func @_flash_attn_kernel(%arg0: i32, %arg1: i32, %arg2: i32, %arg3: memref<1x8x16xf32, #tpu.memory_space<vmem>>, %arg4: memref<1x8x16xf32, #tpu.memory_space<vmem>>, %arg5: memref<1x8x16xf32, #tpu.memory_space<vmem>>, %arg6: memref<1x8x16xf32, #tpu.memory_space<vmem>>, %arg7: memref<8x1xf32, #tpu.memory_space<vmem>>, %arg8: memref<8x1xf32, #tpu.memory_space<vmem>>, %arg9: memref<8x16xf32, #tpu.memory_space<vmem>>) attributes {dimension_semantics = [#tpu.dimension_semantics<parallel>, #tpu.dimension_semantics<parallel>, #tpu.dimension_semantics<arbitrary>], iteration_bounds = array<i64: 8, 1, 1>, scalar_prefetch = 0 : i64, scratch_operands = 3 : i64, tpu.core_type = #tpu.core_type<tc>, window_params = [{transform_indices = @transform_0, window_bounds = array<i64: 1, 8, 16>}, {transform_indices = @transform_1, window_bounds = array<i64: 1, 8, 16>}, {transform_indices = @transform_2, window_bounds = array<i64: 1, 8, 16>}, {transform_indices = @transform_3, window_bounds = array<i64: 1, 8, 16>}]} {
    %c0_i32 = arith.constant 0 : i32
    %0 = arith.cmpi eq, %arg2, %c0_i32 : i32
    %1 = arith.extui %0 : i1 to i32
    %c0_i32_0 = arith.constant 0 : i32
    %2 = arith.cmpi ne, %1, %c0_i32_0 : i32
    scf.if %2 {
      %cst_27 = arith.constant 0xFF800000 : f32
      %41 = vector.broadcast %cst_27 : f32 to vector<8x1xf32>
      %c0_28 = arith.constant 0 : index
      %c0_29 = arith.constant 0 : index
      %42 = vector.load %arg7[%c0_28, %c0_29] : memref<8x1xf32, #tpu.memory_space<vmem>>, vector<8x1xf32>
      tpu.vector_store %arg7[%c0_28, %c0_29], %41 {strides = array<i32>} : memref<8x1xf32, #tpu.memory_space<vmem>>, vector<8x1xf32>,
      %cst_30 = arith.constant 0.000000e+00 : f32
      %43 = vector.broadcast %cst_30 : f32 to vector<8x1xf32>
      %c0_31 = arith.constant 0 : index
      %c0_32 = arith.constant 0 : index
      %44 = vector.load %arg8[%c0_31, %c0_32] : memref<8x1xf32, #tpu.memory_space<vmem>>, vector<8x1xf32>
      tpu.vector_store %arg8[%c0_31, %c0_32], %43 {strides = array<i32>} : memref<8x1xf32, #tpu.memory_space<vmem>>, vector<8x1xf32>,
      %cst_33 = arith.constant 0.000000e+00 : f32
      %45 = vector.broadcast %cst_33 : f32 to vector<8x16xf32>
      %c0_34 = arith.constant 0 : index
      %c0_35 = arith.constant 0 : index
      %46 = vector.load %arg9[%c0_34, %c0_35] : memref<8x16xf32, #tpu.memory_space<vmem>>, vector<8x16xf32>
      tpu.vector_store %arg9[%c0_34, %c0_35], %45 {strides = array<i32>} : memref<8x16xf32, #tpu.memory_space<vmem>>, vector<8x16xf32>,
    } else {
    }
    %c0 = arith.constant 0 : index
    %c0_1 = arith.constant 0 : index
    %c0_2 = arith.constant 0 : index
    %3 = vector.load %arg3[%c0, %c0_1, %c0_2] : memref<1x8x16xf32, #tpu.memory_space<vmem>>, vector<1x8x16xf32>
    %4 = vector.shape_cast %3 : vector<1x8x16xf32> to vector<8x16xf32>
    %5 = arith.truncf %4 : vector<8x16xf32> to vector<8x16xbf16>
    %c0_3 = arith.constant 0 : index
    %c0_4 = arith.constant 0 : index
    %c0_5 = arith.constant 0 : index
    %6 = vector.load %arg4[%c0_3, %c0_4, %c0_5] : memref<1x8x16xf32, #tpu.memory_space<vmem>>, vector<1x8x16xf32>
    %7 = vector.shape_cast %6 : vector<1x8x16xf32> to vector<8x16xf32>
    %8 = arith.truncf %7 : vector<8x16xf32> to vector<8x16xbf16>
    %cst = arith.constant dense<0.000000e+00> : vector<8x8xf32>
    %9 = tpu.matmul %5, %8, %cst {dimension_numbers = #tpu.dot_dimension_numbers<[1], [1], [0], [0], [0, 0, 1, 0], [], []>} : vector<8x16xbf16>, vector<8x16xbf16>, vector<8x8xf32> -> vector<8x8xf32>
    %cst_6 = arith.constant 2.500000e-01 : f32
    %10 = vector.broadcast %cst_6 : f32 to vector<8x8xf32>
    %11 = arith.mulf %9, %10 : vector<8x8xf32>
    %c0_7 = arith.constant 0 : index
    %c0_8 = arith.constant 0 : index
    %12 = vector.load %arg7[%c0_7, %c0_8] : memref<8x1xf32, #tpu.memory_space<vmem>>, vector<8x1xf32>
    %cst_9 = arith.constant dense<0xFF800000> : vector<8xf32>
    %13 = vector.multi_reduction <maximumf>, %11, %cst_9 [1] : vector<8x8xf32> to vector<8xf32>
    %14 = vector.shape_cast %13 : vector<8xf32> to vector<8x1xf32>
    %15 = arith.maximumf %12, %14 : vector<8x1xf32>
    %16 = arith.subf %12, %15 : vector<8x1xf32>
    %17 = math.exp %16 : vector<8x1xf32>
    %18 = vector.broadcast %15 : vector<8x1xf32> to vector<8x8xf32>
    %19 = arith.subf %11, %18 : vector<8x8xf32>
    %20 = math.exp %19 : vector<8x8xf32>
    %c0_10 = arith.constant 0 : index
    %c0_11 = arith.constant 0 : index
    %21 = vector.load %arg8[%c0_10, %c0_11] : memref<8x1xf32, #tpu.memory_space<vmem>>, vector<8x1xf32>
    %22 = arith.mulf %17, %21 : vector<8x1xf32>
    %cst_12 = arith.constant dense<0.000000e+00> : vector<8xf32>
    %23 = vector.multi_reduction <add>, %20, %cst_12 [1] : vector<8x8xf32> to vector<8xf32>
    %24 = vector.shape_cast %23 : vector<8xf32> to vector<8x1xf32>
    %25 = arith.addf %22, %24 : vector<8x1xf32>
    %c0_13 = arith.constant 0 : index
    %c0_14 = arith.constant 0 : index
    %26 = vector.load %arg8[%c0_13, %c0_14] : memref<8x1xf32, #tpu.memory_space<vmem>>, vector<8x1xf32>
    tpu.vector_store %arg8[%c0_13, %c0_14], %25 {strides = array<i32>} : memref<8x1xf32, #tpu.memory_space<vmem>>, vector<8x1xf32>,
    %c0_15 = arith.constant 0 : index
    %c0_16 = arith.constant 0 : index
    %27 = vector.load %arg9[%c0_15, %c0_16] : memref<8x16xf32, #tpu.memory_space<vmem>>, vector<8x16xf32>
    %28 = vector.broadcast %17 : vector<8x1xf32> to vector<8x16xf32>
    %29 = arith.mulf %28, %27 : vector<8x16xf32>
    %30 = arith.truncf %20 : vector<8x8xf32> to vector<8x8xbf16>
    %c0_17 = arith.constant 0 : index
    %c0_18 = arith.constant 0 : index
    %c0_19 = arith.constant 0 : index
    %31 = vector.load %arg5[%c0_17, %c0_18, %c0_19] : memref<1x8x16xf32, #tpu.memory_space<vmem>>, vector<1x8x16xf32>
    %32 = vector.shape_cast %31 : vector<1x8x16xf32> to vector<8x16xf32>
    %33 = arith.truncf %32 : vector<8x16xf32> to vector<8x16xbf16>
    %cst_20 = arith.constant dense<0.000000e+00> : vector<8x16xf32>
    %34 = tpu.matmul %30, %33, %cst_20 {dimension_numbers = #tpu.dot_dimension_numbers<[1], [0], [0], [1], [0, 0, 1, 1], [], []>} : vector<8x8xbf16>, vector<8x16xbf16>, vector<8x16xf32> -> vector<8x16xf32>
    %35 = arith.addf %29, %34 : vector<8x16xf32>
    %c0_21 = arith.constant 0 : index
    %c0_22 = arith.constant 0 : index
    %36 = vector.load %arg9[%c0_21, %c0_22] : memref<8x16xf32, #tpu.memory_space<vmem>>, vector<8x16xf32>
    tpu.vector_store %arg9[%c0_21, %c0_22], %35 {strides = array<i32>} : memref<8x16xf32, #tpu.memory_space<vmem>>, vector<8x16xf32>,
    %c0_23 = arith.constant 0 : index
    %c0_24 = arith.constant 0 : index
    %37 = vector.load %arg7[%c0_23, %c0_24] : memref<8x1xf32, #tpu.memory_space<vmem>>, vector<8x1xf32>
    tpu.vector_store %arg7[%c0_23, %c0_24], %15 {strides = array<i32>} : memref<8x1xf32, #tpu.memory_space<vmem>>, vector<8x1xf32>,
    %c0_i32_25 = arith.constant 0 : i32
    %38 = arith.cmpi eq, %arg2, %c0_i32_25 : i32
    %39 = arith.extui %38 : i1 to i32
    %c0_i32_26 = arith.constant 0 : i32
    %40 = arith.cmpi ne, %39, %c0_i32_26 : i32
    scf.if %40 {
      %c0_27 = arith.constant 0 : index
      %c0_28 = arith.constant 0 : index
      %41 = vector.load %arg8[%c0_27, %c0_28] : memref<8x1xf32, #tpu.memory_space<vmem>>, vector<8x1xf32>
      %42 = tpu.reciprocal %41 {approx = true} : vector<8x1xf32> -> vector<8x1xf32>
      %c0_29 = arith.constant 0 : index
      %c0_30 = arith.constant 0 : index
      %43 = vector.load %arg9[%c0_29, %c0_30] : memref<8x16xf32, #tpu.memory_space<vmem>>, vector<8x16xf32>
      %44 = vector.broadcast %42 : vector<8x1xf32> to vector<8x16xf32>
      %45 = arith.mulf %43, %44 : vector<8x16xf32>
      %c0_31 = arith.constant 0 : index
      %c0_32 = arith.constant 0 : index
      %c0_33 = arith.constant 0 : index
      %46 = vector.load %arg6[%c0_31, %c0_32, %c0_33] : memref<1x8x16xf32, #tpu.memory_space<vmem>>, vector<1x8x16xf32>
      %47 = vector.shape_cast %46 : vector<1x8x16xf32> to vector<8x16xf32>
      %48 = vector.shape_cast %45 : vector<8x16xf32> to vector<1x8x16xf32>
      tpu.vector_store %arg6[%c0_31, %c0_32, %c0_33], %48 {strides = array<i32>} : memref<1x8x16xf32, #tpu.memory_space<vmem>>, vector<1x8x16xf32>,
    } else {
    }
    return
  }
  func.func @transform_0(%arg0: i32, %arg1: i32, %arg2: i32) -> (i32, i32, i32) {
    %c0_i32 = arith.constant 0 : i32
    %c0_i32_0 = arith.constant 0 : i32
    return %arg0, %arg1, %c0_i32 : i32, i32, i32
  }
  func.func @transform_1(%arg0: i32, %arg1: i32, %arg2: i32) -> (i32, i32, i32) {
    %c0_i32 = arith.constant 0 : i32
    %c0_i32_0 = arith.constant 0 : i32
    return %arg0, %arg2, %c0_i32 : i32, i32, i32
  }
  func.func @transform_2(%arg0: i32, %arg1: i32, %arg2: i32) -> (i32, i32, i32) {
    %c0_i32 = arith.constant 0 : i32
    %c0_i32_0 = arith.constant 0 : i32
    return %arg0, %arg2, %c0_i32 : i32, i32, i32
  }
  func.func @transform_3(%arg0: i32, %arg1: i32, %arg2: i32) -> (i32, i32, i32) {
    %c0_i32 = arith.constant 0 : i32
    %c0_i32_0 = arith.constant 0 : i32
    return %arg0, %arg1, %c0_i32 : i32, i32, i32
  }
}

module attributes {stable_mosaic.version = 11 : i64} {
  func.func @_mm_kernel(%arg0: i32, %arg1: i32, %arg2: i32, %arg3: memref<16x64xbf16, #tpu.memory_space<vmem>>, %arg4: memref<64x64xbf16, #tpu.memory_space<vmem>>, %arg5: memref<1x64xf32, #tpu.memory_space<vmem>>, %arg6: memref<16x64xf32, #tpu.memory_space<vmem>>, %arg7: memref<16x64xf32, #tpu.memory_space<vmem>>, %arg8: memref<16x64xf32, #tpu.memory_space<vmem>>) attributes {dimension_semantics = [#tpu.dimension_semantics<parallel>, #tpu.dimension_semantics<parallel>, #tpu.dimension_semantics<arbitrary>], iteration_bounds = array<i64: 1, 1, 1>, scalar_prefetch = 0 : i64, scratch_operands = 1 : i64, tpu.core_type = #tpu.core_type<tc>, window_params = [{transform_indices = @transform_0, window_bounds = array<i64: 16, 64>}, {transform_indices = @transform_1, window_bounds = array<i64: 64, 64>}, {transform_indices = @transform_2, window_bounds = array<i64: 1, 64>}, {transform_indices = @transform_3, window_bounds = array<i64: 16, 64>}, {transform_indices = @transform_4, window_bounds = array<i64: 16, 64>}]} {
    %c0_i32 = arith.constant 0 : i32
    %0 = arith.cmpi eq, %arg2, %c0_i32 : i32
    %1 = arith.extui %0 : i1 to i32
    %c0_i32_0 = arith.constant 0 : i32
    %2 = arith.cmpi ne, %1, %c0_i32_0 : i32
    scf.if %2 {
      %cst_10 = arith.constant 0.000000e+00 : f32
      %12 = vector.broadcast %cst_10 : f32 to vector<16x64xf32>
      %c0_11 = arith.constant 0 : index
      %c0_12 = arith.constant 0 : index
      %13 = vector.load %arg8[%c0_11, %c0_12] : memref<16x64xf32, #tpu.memory_space<vmem>>, vector<16x64xf32>
      tpu.vector_store %arg8[%c0_11, %c0_12], %12 {strides = array<i32>} : memref<16x64xf32, #tpu.memory_space<vmem>>, vector<16x64xf32>,
    } else {
    }
    %c0 = arith.constant 0 : index
    %c0_1 = arith.constant 0 : index
    %3 = vector.load %arg3[%c0, %c0_1] : memref<16x64xbf16, #tpu.memory_space<vmem>>, vector<16x64xbf16>
    %c0_2 = arith.constant 0 : index
    %c0_3 = arith.constant 0 : index
    %4 = vector.load %arg8[%c0_2, %c0_3] : memref<16x64xf32, #tpu.memory_space<vmem>>, vector<16x64xf32>
    %c0_4 = arith.constant 0 : index
    %c0_5 = arith.constant 0 : index
    %5 = vector.load %arg4[%c0_4, %c0_5] : memref<64x64xbf16, #tpu.memory_space<vmem>>, vector<64x64xbf16>
    %cst = arith.constant dense<0.000000e+00> : vector<16x64xf32>
    %6 = tpu.matmul %3, %5, %cst {dimension_numbers = #tpu.dot_dimension_numbers<[1], [0], [0], [1], [0, 0, 1, 1], [], []>} : vector<16x64xbf16>, vector<64x64xbf16>, vector<16x64xf32> -> vector<16x64xf32>
    %7 = arith.addf %4, %6 : vector<16x64xf32>
    %c0_6 = arith.constant 0 : index
    %c0_7 = arith.constant 0 : index
    %8 = vector.load %arg8[%c0_6, %c0_7] : memref<16x64xf32, #tpu.memory_space<vmem>>, vector<16x64xf32>
    tpu.vector_store %arg8[%c0_6, %c0_7], %7 {strides = array<i32>} : memref<16x64xf32, #tpu.memory_space<vmem>>, vector<16x64xf32>,
    %c0_i32_8 = arith.constant 0 : i32
    %9 = arith.cmpi eq, %arg2, %c0_i32_8 : i32
    %10 = arith.extui %9 : i1 to i32
    %c0_i32_9 = arith.constant 0 : i32
    %11 = arith.cmpi ne, %10, %c0_i32_9 : i32
    scf.if %11 {
      %c0_10 = arith.constant 0 : index
      %c0_11 = arith.constant 0 : index
      %12 = vector.load %arg8[%c0_10, %c0_11] : memref<16x64xf32, #tpu.memory_space<vmem>>, vector<16x64xf32>
      %c0_12 = arith.constant 0 : index
      %c0_13 = arith.constant 0 : index
      %13 = vector.load %arg5[%c0_12, %c0_13] : memref<1x64xf32, #tpu.memory_space<vmem>>, vector<1x64xf32>
      %14 = vector.broadcast %13 : vector<1x64xf32> to vector<16x64xf32>
      %15 = arith.addf %12, %14 : vector<16x64xf32>
      %c0_14 = arith.constant 0 : index
      %c0_15 = arith.constant 0 : index
      %16 = vector.load %arg6[%c0_14, %c0_15] : memref<16x64xf32, #tpu.memory_space<vmem>>, vector<16x64xf32>
      %17 = arith.addf %15, %16 : vector<16x64xf32>
      %c0_16 = arith.constant 0 : index
      %c0_17 = arith.constant 0 : index
      %18 = vector.load %arg7[%c0_16, %c0_17] : memref<16x64xf32, #tpu.memory_space<vmem>>, vector<16x64xf32>
      tpu.vector_store %arg7[%c0_16, %c0_17], %17 {strides = array<i32>} : memref<16x64xf32, #tpu.memory_space<vmem>>, vector<16x64xf32>,
    } else {
    }
    return
  }
  func.func @transform_0(%arg0: i32, %arg1: i32, %arg2: i32) -> (i32, i32) {
    %c0_i32 = arith.constant 0 : i32
    return %arg0, %arg2 : i32, i32
  }
  func.func @transform_1(%arg0: i32, %arg1: i32, %arg2: i32) -> (i32, i32) {
    %c0_i32 = arith.constant 0 : i32
    return %arg2, %arg1 : i32, i32
  }
  func.func @transform_2(%arg0: i32, %arg1: i32, %arg2: i32) -> (i32, i32) {
    %c0_i32 = arith.constant 0 : i32
    %c0_i32_0 = arith.constant 0 : i32
    return %c0_i32, %arg1 : i32, i32
  }
  func.func @transform_3(%arg0: i32, %arg1: i32, %arg2: i32) -> (i32, i32) {
    %c0_i32 = arith.constant 0 : i32
    return %arg0, %arg1 : i32, i32
  }
  func.func @transform_4(%arg0: i32, %arg1: i32, %arg2: i32) -> (i32, i32) {
    %c0_i32 = arith.constant 0 : i32
    return %arg0, %arg1 : i32, i32
  }
}

module attributes {stable_mosaic.version = 11 : i64} {
  func.func @_mm_kernel(%arg0: i32, %arg1: i32, %arg2: i32, %arg3: memref<16x64xf32, #tpu.memory_space<vmem>>, %arg4: memref<64x256xbf16, #tpu.memory_space<vmem>>, %arg5: memref<1x256xf32, #tpu.memory_space<vmem>>, %arg6: memref<1x64xf32, #tpu.memory_space<vmem>>, %arg7: memref<1x64xf32, #tpu.memory_space<vmem>>, %arg8: memref<16x256xf32, #tpu.memory_space<vmem>>, %arg9: memref<16x256xf32, #tpu.memory_space<vmem>>) attributes {dimension_semantics = [#tpu.dimension_semantics<parallel>, #tpu.dimension_semantics<parallel>, #tpu.dimension_semantics<arbitrary>], iteration_bounds = array<i64: 1, 1, 1>, scalar_prefetch = 0 : i64, scratch_operands = 1 : i64, tpu.core_type = #tpu.core_type<tc>, window_params = [{transform_indices = @transform_0, window_bounds = array<i64: 16, 64>}, {transform_indices = @transform_1, window_bounds = array<i64: 64, 256>}, {transform_indices = @transform_2, window_bounds = array<i64: 1, 256>}, {pipeline_mode = #tpu.pipeline_mode<synchronous>, transform_indices = @transform_3, window_bounds = array<i64: 1, 64>}, {pipeline_mode = #tpu.pipeline_mode<synchronous>, transform_indices = @transform_4, window_bounds = array<i64: 1, 64>}, {transform_indices = @transform_5, window_bounds = array<i64: 16, 256>}]} {
    %c0_i32 = arith.constant 0 : i32
    %0 = arith.cmpi eq, %arg2, %c0_i32 : i32
    %1 = arith.extui %0 : i1 to i32
    %c0_i32_0 = arith.constant 0 : i32
    %2 = arith.cmpi ne, %1, %c0_i32_0 : i32
    scf.if %2 {
      %cst_19 = arith.constant 0.000000e+00 : f32
      %37 = vector.broadcast %cst_19 : f32 to vector<16x256xf32>
      %c0_20 = arith.constant 0 : index
      %c0_21 = arith.constant 0 : index
      %38 = vector.load %arg9[%c0_20, %c0_21] : memref<16x256xf32, #tpu.memory_space<vmem>>, vector<16x256xf32>
      tpu.vector_store %arg9[%c0_20, %c0_21], %37 {strides = array<i32>} : memref<16x256xf32, #tpu.memory_space<vmem>>, vector<16x256xf32>,
    } else {
    }
    %c0 = arith.constant 0 : index
    %c0_1 = arith.constant 0 : index
    %3 = vector.load %arg3[%c0, %c0_1] : memref<16x64xf32, #tpu.memory_space<vmem>>, vector<16x64xf32>
    %cst = arith.constant dense<0.000000e+00> : vector<16xf32>
    %4 = vector.multi_reduction <add>, %3, %cst [1] : vector<16x64xf32> to vector<16xf32>
    %5 = vector.shape_cast %4 : vector<16xf32> to vector<16x1xf32>
    %cst_2 = arith.constant 6.400000e+01 : f32
    %6 = vector.broadcast %cst_2 : f32 to vector<16x1xf32>
    %7 = arith.divf %5, %6 : vector<16x1xf32>
    %8 = vector.broadcast %7 : vector<16x1xf32> to vector<16x64xf32>
    %9 = arith.subf %3, %8 : vector<16x64xf32>
    %10 = arith.mulf %9, %9 : vector<16x64xf32>
    %cst_3 = arith.constant dense<0.000000e+00> : vector<16xf32>
    %11 = vector.multi_reduction <add>, %10, %cst_3 [1] : vector<16x64xf32> to vector<16xf32>
    %12 = vector.shape_cast %11 : vector<16xf32> to vector<16x1xf32>
    %cst_4 = arith.constant 6.400000e+01 : f32
    %13 = vector.broadcast %cst_4 : f32 to vector<16x1xf32>
    %14 = arith.divf %12, %13 : vector<16x1xf32>
    %15 = vector.broadcast %7 : vector<16x1xf32> to vector<16x64xf32>
    %16 = arith.subf %3, %15 : vector<16x64xf32>
    %cst_5 = arith.constant 9.99999974E-6 : f32
    %17 = vector.broadcast %cst_5 : f32 to vector<16x1xf32>
    %18 = arith.addf %14, %17 : vector<16x1xf32>
    %19 = math.rsqrt %18 : vector<16x1xf32>
    %20 = vector.broadcast %19 : vector<16x1xf32> to vector<16x64xf32>
    %21 = arith.mulf %16, %20 : vector<16x64xf32>
    %c0_6 = arith.constant 0 : index
    %c0_7 = arith.constant 0 : index
    %22 = vector.load %arg6[%c0_6, %c0_7] : memref<1x64xf32, #tpu.memory_space<vmem>>, vector<1x64xf32>
    %23 = vector.broadcast %22 : vector<1x64xf32> to vector<16x64xf32>
    %24 = arith.mulf %21, %23 : vector<16x64xf32>
    %c0_8 = arith.constant 0 : index
    %c0_9 = arith.constant 0 : index
    %25 = vector.load %arg7[%c0_8, %c0_9] : memref<1x64xf32, #tpu.memory_space<vmem>>, vector<1x64xf32>
    %26 = vector.broadcast %25 : vector<1x64xf32> to vector<16x64xf32>
    %27 = arith.addf %24, %26 : vector<16x64xf32>
    %28 = arith.truncf %27 : vector<16x64xf32> to vector<16x64xbf16>
    %c0_10 = arith.constant 0 : index
    %c0_11 = arith.constant 0 : index
    %29 = vector.load %arg9[%c0_10, %c0_11] : memref<16x256xf32, #tpu.memory_space<vmem>>, vector<16x256xf32>
    %c0_12 = arith.constant 0 : index
    %c0_13 = arith.constant 0 : index
    %30 = vector.load %arg4[%c0_12, %c0_13] : memref<64x256xbf16, #tpu.memory_space<vmem>>, vector<64x256xbf16>
    %cst_14 = arith.constant dense<0.000000e+00> : vector<16x256xf32>
    %31 = tpu.matmul %28, %30, %cst_14 {dimension_numbers = #tpu.dot_dimension_numbers<[1], [0], [0], [1], [0, 0, 1, 1], [], []>} : vector<16x64xbf16>, vector<64x256xbf16>, vector<16x256xf32> -> vector<16x256xf32>
    %32 = arith.addf %29, %31 : vector<16x256xf32>
    %c0_15 = arith.constant 0 : index
    %c0_16 = arith.constant 0 : index
    %33 = vector.load %arg9[%c0_15, %c0_16] : memref<16x256xf32, #tpu.memory_space<vmem>>, vector<16x256xf32>
    tpu.vector_store %arg9[%c0_15, %c0_16], %32 {strides = array<i32>} : memref<16x256xf32, #tpu.memory_space<vmem>>, vector<16x256xf32>,
    %c0_i32_17 = arith.constant 0 : i32
    %34 = arith.cmpi eq, %arg2, %c0_i32_17 : i32
    %35 = arith.extui %34 : i1 to i32
    %c0_i32_18 = arith.constant 0 : i32
    %36 = arith.cmpi ne, %35, %c0_i32_18 : i32
    scf.if %36 {
      %c0_19 = arith.constant 0 : index
      %c0_20 = arith.constant 0 : index
      %37 = vector.load %arg9[%c0_19, %c0_20] : memref<16x256xf32, #tpu.memory_space<vmem>>, vector<16x256xf32>
      %c0_21 = arith.constant 0 : index
      %c0_22 = arith.constant 0 : index
      %38 = vector.load %arg5[%c0_21, %c0_22] : memref<1x256xf32, #tpu.memory_space<vmem>>, vector<1x256xf32>
      %39 = vector.broadcast %38 : vector<1x256xf32> to vector<16x256xf32>
      %40 = arith.addf %37, %39 : vector<16x256xf32>
      %41 = arith.mulf %40, %40 : vector<16x256xf32>
      %42 = arith.mulf %40, %41 : vector<16x256xf32>
      %cst_23 = arith.constant 4.471500e-02 : f32
      %43 = vector.broadcast %cst_23 : f32 to vector<16x256xf32>
      %44 = arith.mulf %43, %42 : vector<16x256xf32>
      %45 = arith.addf %40, %44 : vector<16x256xf32>
      %cst_24 = arith.constant 0.797884583 : f32
      %46 = vector.broadcast %cst_24 : f32 to vector<16x256xf32>
      %47 = arith.mulf %46, %45 : vector<16x256xf32>
      %48 = math.tanh %47 : vector<16x256xf32>
      %cst_25 = arith.constant 1.000000e+00 : f32
      %49 = vector.broadcast %cst_25 : f32 to vector<16x256xf32>
      %50 = arith.addf %49, %48 : vector<16x256xf32>
      %cst_26 = arith.constant 5.000000e-01 : f32
      %51 = vector.broadcast %cst_26 : f32 to vector<16x256xf32>
      %52 = arith.mulf %51, %50 : vector<16x256xf32>
      %53 = arith.mulf %40, %52 : vector<16x256xf32>
      %c0_27 = arith.constant 0 : index
      %c0_28 = arith.constant 0 : index
      %54 = vector.load %arg8[%c0_27, %c0_28] : memref<16x256xf32, #tpu.memory_space<vmem>>, vector<16x256xf32>
      tpu.vector_store %arg8[%c0_27, %c0_28], %53 {strides = array<i32>} : memref<16x256xf32, #tpu.memory_space<vmem>>, vector<16x256xf32>,
    } else {
    }
    return
  }
  func.func @transform_0(%arg0: i32, %arg1: i32, %arg2: i32) -> (i32, i32) {
    %c0_i32 = arith.constant 0 : i32
    return %arg0, %arg2 : i32, i32
  }
  func.func @transform_1(%arg0: i32, %arg1: i32, %arg2: i32) -> (i32, i32) {
    %c0_i32 = arith.constant 0 : i32
    return %arg2, %arg1 : i32, i32
  }
  func.func @transform_2(%arg0: i32, %arg1: i32, %arg2: i32) -> (i32, i32) {
    %c0_i32 = arith.constant 0 : i32
    %c0_i32_0 = arith.constant 0 : i32
    return %c0_i32, %arg1 : i32, i32
  }
  func.func @transform_3(%arg0: i32, %arg1: i32, %arg2: i32) -> (i32, i32) {
    %c0_i32 = arith.constant 0 : i32
    %c0_i32_0 = arith.constant 0 : i32
    %c0_i32_1 = arith.constant 0 : i32
    return %c0_i32, %c0_i32_0 : i32, i32
  }
  func.func @transform_4(%arg0: i32, %arg1: i32, %arg2: i32) -> (i32, i32) {
    %c0_i32 = arith.constant 0 : i32
    %c0_i32_0 = arith.constant 0 : i32
    %c0_i32_1 = arith.constant 0 : i32
    return %c0_i32, %c0_i32_0 : i32, i32
  }
  func.func @transform_5(%arg0: i32, %arg1: i32, %arg2: i32) -> (i32, i32) {
    %c0_i32 = arith.constant 0 : i32
    return %arg0, %arg1 : i32, i32
  }
}

module attributes {stable_mosaic.version = 11 : i64} {
  func.func @_mm_kernel(%arg0: i32, %arg1: i32, %arg2: i32, %arg3: memref<16x256xbf16, #tpu.memory_space<vmem>>, %arg4: memref<256x64xbf16, #tpu.memory_space<vmem>>, %arg5: memref<1x64xf32, #tpu.memory_space<vmem>>, %arg6: memref<16x64xf32, #tpu.memory_space<vmem>>, %arg7: memref<16x64xf32, #tpu.memory_space<vmem>>, %arg8: memref<16x64xf32, #tpu.memory_space<vmem>>) attributes {dimension_semantics = [#tpu.dimension_semantics<parallel>, #tpu.dimension_semantics<parallel>, #tpu.dimension_semantics<arbitrary>], iteration_bounds = array<i64: 1, 1, 1>, scalar_prefetch = 0 : i64, scratch_operands = 1 : i64, tpu.core_type = #tpu.core_type<tc>, window_params = [{transform_indices = @transform_0, window_bounds = array<i64: 16, 256>}, {transform_indices = @transform_1, window_bounds = array<i64: 256, 64>}, {transform_indices = @transform_2, window_bounds = array<i64: 1, 64>}, {transform_indices = @transform_3, window_bounds = array<i64: 16, 64>}, {transform_indices = @transform_4, window_bounds = array<i64: 16, 64>}]} {
    %c0_i32 = arith.constant 0 : i32
    %0 = arith.cmpi eq, %arg2, %c0_i32 : i32
    %1 = arith.extui %0 : i1 to i32
    %c0_i32_0 = arith.constant 0 : i32
    %2 = arith.cmpi ne, %1, %c0_i32_0 : i32
    scf.if %2 {
      %cst_10 = arith.constant 0.000000e+00 : f32
      %12 = vector.broadcast %cst_10 : f32 to vector<16x64xf32>
      %c0_11 = arith.constant 0 : index
      %c0_12 = arith.constant 0 : index
      %13 = vector.load %arg8[%c0_11, %c0_12] : memref<16x64xf32, #tpu.memory_space<vmem>>, vector<16x64xf32>
      tpu.vector_store %arg8[%c0_11, %c0_12], %12 {strides = array<i32>} : memref<16x64xf32, #tpu.memory_space<vmem>>, vector<16x64xf32>,
    } else {
    }
    %c0 = arith.constant 0 : index
    %c0_1 = arith.constant 0 : index
    %3 = vector.load %arg3[%c0, %c0_1] : memref<16x256xbf16, #tpu.memory_space<vmem>>, vector<16x256xbf16>
    %c0_2 = arith.constant 0 : index
    %c0_3 = arith.constant 0 : index
    %4 = vector.load %arg8[%c0_2, %c0_3] : memref<16x64xf32, #tpu.memory_space<vmem>>, vector<16x64xf32>
    %c0_4 = arith.constant 0 : index
    %c0_5 = arith.constant 0 : index
    %5 = vector.load %arg4[%c0_4, %c0_5] : memref<256x64xbf16, #tpu.memory_space<vmem>>, vector<256x64xbf16>
    %cst = arith.constant dense<0.000000e+00> : vector<16x64xf32>
    %6 = tpu.matmul %3, %5, %cst {dimension_numbers = #tpu.dot_dimension_numbers<[1], [0], [0], [1], [0, 0, 1, 1], [], []>} : vector<16x256xbf16>, vector<256x64xbf16>, vector<16x64xf32> -> vector<16x64xf32>
    %7 = arith.addf %4, %6 : vector<16x64xf32>
    %c0_6 = arith.constant 0 : index
    %c0_7 = arith.constant 0 : index
    %8 = vector.load %arg8[%c0_6, %c0_7] : memref<16x64xf32, #tpu.memory_space<vmem>>, vector<16x64xf32>
    tpu.vector_store %arg8[%c0_6, %c0_7], %7 {strides = array<i32>} : memref<16x64xf32, #tpu.memory_space<vmem>>, vector<16x64xf32>,
    %c0_i32_8 = arith.constant 0 : i32
    %9 = arith.cmpi eq, %arg2, %c0_i32_8 : i32
    %10 = arith.extui %9 : i1 to i32
    %c0_i32_9 = arith.constant 0 : i32
    %11 = arith.cmpi ne, %10, %c0_i32_9 : i32
    scf.if %11 {
      %c0_10 = arith.constant 0 : index
      %c0_11 = arith.constant 0 : index
      %12 = vector.load %arg8[%c0_10, %c0_11] : memref<16x64xf32, #tpu.memory_space<vmem>>, vector<16x64xf32>
      %c0_12 = arith.constant 0 : index
      %c0_13 = arith.constant 0 : index
      %13 = vector.load %arg5[%c0_12, %c0_13] : memref<1x64xf32, #tpu.memory_space<vmem>>, vector<1x64xf32>
      %14 = vector.broadcast %13 : vector<1x64xf32> to vector<16x64xf32>
      %15 = arith.addf %12, %14 : vector<16x64xf32>
      %c0_14 = arith.constant 0 : index
      %c0_15 = arith.constant 0 : index
      %16 = vector.load %arg6[%c0_14, %c0_15] : memref<16x64xf32, #tpu.memory_space<vmem>>, vector<16x64xf32>
      %17 = arith.addf %15, %16 : vector<16x64xf32>
      %c0_16 = arith.constant 0 : index
      %c0_17 = arith.constant 0 : index
      %18 = vector.load %arg7[%c0_16, %c0_17] : memref<16x64xf32, #tpu.memory_space<vmem>>, vector<16x64xf32>
      tpu.vector_store %arg7[%c0_16, %c0_17], %17 {strides = array<i32>} : memref<16x64xf32, #tpu.memory_space<vmem>>, vector<16x64xf32>,
    } else {
    }
    return
  }
  func.func @transform_0(%arg0: i32, %arg1: i32, %arg2: i32) -> (i32, i32) {
    %c0_i32 = arith.constant 0 : i32
    return %arg0, %arg2 : i32, i32
  }
  func.func @transform_1(%arg0: i32, %arg1: i32, %arg2: i32) -> (i32, i32) {
    %c0_i32 = arith.constant 0 : i32
    return %arg2, %arg1 : i32, i32
  }
  func.func @transform_2(%arg0: i32, %arg1: i32, %arg2: i32) -> (i32, i32) {
    %c0_i32 = arith.constant 0 : i32
    %c0_i32_0 = arith.constant 0 : i32
    return %c0_i32, %arg1 : i32, i32
  }
  func.func @transform_3(%arg0: i32, %arg1: i32, %arg2: i32) -> (i32, i32) {
    %c0_i32 = arith.constant 0 : i32
    return %arg0, %arg1 : i32, i32
  }
  func.func @transform_4(%arg0: i32, %arg1: i32, %arg2: i32) -> (i32, i32) {
    %c0_i32 = arith.constant 0 : i32
    return %arg0, %arg1 : i32, i32
  }
}

module attributes {stable_mosaic.version = 11 : i64} {
  func.func @_mm_kernel(%arg0: i32, %arg1: i32, %arg2: i32, %arg3: memref<16x64xbf16, #tpu.memory_space<vmem>>, %arg4: memref<64x128xbf16, #tpu.memory_space<vmem>>, %arg5: memref<1x128xf32, #tpu.memory_space<vmem>>, %arg6: memref<16x128xf32, #tpu.memory_space<vmem>>, %arg7: memref<16x128xf32, #tpu.memory_space<vmem>>) attributes {dimension_semantics = [#tpu.dimension_semantics<parallel>, #tpu.dimension_semantics<parallel>, #tpu.dimension_semantics<arbitrary>], iteration_bounds = array<i64: 1, 1, 1>, scalar_prefetch = 0 : i64, scratch_operands = 1 : i64, tpu.core_type = #tpu.core_type<tc>, window_params = [{transform_indices = @transform_0, window_bounds = array<i64: 16, 64>}, {transform_indices = @transform_1, window_bounds = array<i64: 64, 128>}, {transform_indices = @transform_2, window_bounds = array<i64: 1, 128>}, {transform_indices = @transform_3, window_bounds = array<i64: 16, 128>}]} {
    %c0_i32 = arith.constant 0 : i32
    %0 = arith.cmpi eq, %arg2, %c0_i32 : i32
    %1 = arith.extui %0 : i1 to i32
    %c0_i32_0 = arith.constant 0 : i32
    %2 = arith.cmpi ne, %1, %c0_i32_0 : i32
    scf.if %2 {
      %cst_10 = arith.constant 0.000000e+00 : f32
      %12 = vector.broadcast %cst_10 : f32 to vector<16x128xf32>
      %c0_11 = arith.constant 0 : index
      %c0_12 = arith.constant 0 : index
      %13 = vector.load %arg7[%c0_11, %c0_12] : memref<16x128xf32, #tpu.memory_space<vmem>>, vector<16x128xf32>
      tpu.vector_store %arg7[%c0_11, %c0_12], %12 {strides = array<i32>} : memref<16x128xf32, #tpu.memory_space<vmem>>, vector<16x128xf32>,
    } else {
    }
    %c0 = arith.constant 0 : index
    %c0_1 = arith.constant 0 : index
    %3 = vector.load %arg3[%c0, %c0_1] : memref<16x64xbf16, #tpu.memory_space<vmem>>, vector<16x64xbf16>
    %c0_2 = arith.constant 0 : index
    %c0_3 = arith.constant 0 : index
    %4 = vector.load %arg7[%c0_2, %c0_3] : memref<16x128xf32, #tpu.memory_space<vmem>>, vector<16x128xf32>
    %c0_4 = arith.constant 0 : index
    %c0_5 = arith.constant 0 : index
    %5 = vector.load %arg4[%c0_4, %c0_5] : memref<64x128xbf16, #tpu.memory_space<vmem>>, vector<64x128xbf16>
    %cst = arith.constant dense<0.000000e+00> : vector<16x128xf32>
    %6 = tpu.matmul %3, %5, %cst {dimension_numbers = #tpu.dot_dimension_numbers<[1], [0], [0], [1], [0, 0, 1, 1], [], []>} : vector<16x64xbf16>, vector<64x128xbf16>, vector<16x128xf32> -> vector<16x128xf32>
    %7 = arith.addf %4, %6 : vector<16x128xf32>
    %c0_6 = arith.constant 0 : index
    %c0_7 = arith.constant 0 : index
    %8 = vector.load %arg7[%c0_6, %c0_7] : memref<16x128xf32, #tpu.memory_space<vmem>>, vector<16x128xf32>
    tpu.vector_store %arg7[%c0_6, %c0_7], %7 {strides = array<i32>} : memref<16x128xf32, #tpu.memory_space<vmem>>, vector<16x128xf32>,
    %c0_i32_8 = arith.constant 0 : i32
    %9 = arith.cmpi eq, %arg2, %c0_i32_8 : i32
    %10 = arith.extui %9 : i1 to i32
    %c0_i32_9 = arith.constant 0 : i32
    %11 = arith.cmpi ne, %10, %c0_i32_9 : i32
    scf.if %11 {
      %c0_10 = arith.constant 0 : index
      %c0_11 = arith.constant 0 : index
      %12 = vector.load %arg7[%c0_10, %c0_11] : memref<16x128xf32, #tpu.memory_space<vmem>>, vector<16x128xf32>
      %c0_12 = arith.constant 0 : index
      %c0_13 = arith.constant 0 : index
      %13 = vector.load %arg5[%c0_12, %c0_13] : memref<1x128xf32, #tpu.memory_space<vmem>>, vector<1x128xf32>
      %14 = vector.broadcast %13 : vector<1x128xf32> to vector<16x128xf32>
      %15 = arith.addf %12, %14 : vector<16x128xf32>
      %c0_14 = arith.constant 0 : index
      %c0_15 = arith.constant 0 : index
      %16 = vector.load %arg6[%c0_14, %c0_15] : memref<16x128xf32, #tpu.memory_space<vmem>>, vector<16x128xf32>
      tpu.vector_store %arg6[%c0_14, %c0_15], %15 {strides = array<i32>} : memref<16x128xf32, #tpu.memory_space<vmem>>, vector<16x128xf32>,
    } else {
    }
    return
  }
  func.func @transform_0(%arg0: i32, %arg1: i32, %arg2: i32) -> (i32, i32) {
    %c0_i32 = arith.constant 0 : i32
    return %arg0, %arg2 : i32, i32
  }
  func.func @transform_1(%arg0: i32, %arg1: i32, %arg2: i32) -> (i32, i32) {
    %c0_i32 = arith.constant 0 : i32
    return %arg2, %arg1 : i32, i32
  }
  func.func @transform_2(%arg0: i32, %arg1: i32, %arg2: i32) -> (i32, i32) {
    %c0_i32 = arith.constant 0 : i32
    %c0_i32_0 = arith.constant 0 : i32
    return %c0_i32, %arg1 : i32, i32
  }
  func.func @transform_3(%arg0: i32, %arg1: i32, %arg2: i32) -> (i32, i32) {
    %c0_i32 = arith.constant 0 : i32
    return %arg0, %arg1 : i32, i32
  }
}

module attributes {stable_mosaic.version = 11 : i64} {
  func.func @_mm_kernel(%arg0: i32, %arg1: i32, %arg2: i32, %arg3: memref<64x32xf32, #tpu.memory_space<vmem>>, %arg4: memref<32x32xbf16, #tpu.memory_space<vmem>>, %arg5: memref<1x32xf32, #tpu.memory_space<vmem>>, %arg6: memref<1x32xf32, #tpu.memory_space<vmem>>, %arg7: memref<1x32xf32, #tpu.memory_space<vmem>>, %arg8: memref<64x32xf32, #tpu.memory_space<vmem>>, %arg9: memref<64x32xf32, #tpu.memory_space<vmem>>) attributes {dimension_semantics = [#tpu.dimension_semantics<parallel>, #tpu.dimension_semantics<parallel>, #tpu.dimension_semantics<arbitrary>], iteration_bounds = array<i64: 1, 1, 1>, scalar_prefetch = 0 : i64, scratch_operands = 1 : i64, tpu.core_type = #tpu.core_type<tc>, window_params = [{transform_indices = @transform_0, window_bounds = array<i64: 64, 32>}, {transform_indices = @transform_1, window_bounds = array<i64: 32, 32>}, {transform_indices = @transform_2, window_bounds = array<i64: 1, 32>}, {pipeline_mode = #tpu.pipeline_mode<synchronous>, transform_indices = @transform_3, window_bounds = array<i64: 1, 32>}, {pipeline_mode = #tpu.pipeline_mode<synchronous>, transform_indices = @transform_4, window_bounds = array<i64: 1, 32>}, {transform_indices = @transform_5, window_bounds = array<i64: 64, 32>}]} {
    %c0_i32 = arith.constant 0 : i32
    %0 = arith.cmpi eq, %arg2, %c0_i32 : i32
    %1 = arith.extui %0 : i1 to i32
    %c0_i32_0 = arith.constant 0 : i32
    %2 = arith.cmpi ne, %1, %c0_i32_0 : i32
    scf.if %2 {
      %cst_19 = arith.constant 0.000000e+00 : f32
      %37 = vector.broadcast %cst_19 : f32 to vector<64x32xf32>
      %c0_20 = arith.constant 0 : index
      %c0_21 = arith.constant 0 : index
      %38 = vector.load %arg9[%c0_20, %c0_21] : memref<64x32xf32, #tpu.memory_space<vmem>>, vector<64x32xf32>
      tpu.vector_store %arg9[%c0_20, %c0_21], %37 {strides = array<i32>} : memref<64x32xf32, #tpu.memory_space<vmem>>, vector<64x32xf32>,
    } else {
    }
    %c0 = arith.constant 0 : index
    %c0_1 = arith.constant 0 : index
    %3 = vector.load %arg3[%c0, %c0_1] : memref<64x32xf32, #tpu.memory_space<vmem>>, vector<64x32xf32>
    %cst = arith.constant dense<0.000000e+00> : vector<64xf32>
    %4 = vector.multi_reduction <add>, %3, %cst [1] : vector<64x32xf32> to vector<64xf32>
    %5 = vector.shape_cast %4 : vector<64xf32> to vector<64x1xf32>
    %cst_2 = arith.constant 3.200000e+01 : f32
    %6 = vector.broadcast %cst_2 : f32 to vector<64x1xf32>
    %7 = arith.divf %5, %6 : vector<64x1xf32>
    %8 = vector.broadcast %7 : vector<64x1xf32> to vector<64x32xf32>
    %9 = arith.subf %3, %8 : vector<64x32xf32>
    %10 = arith.mulf %9, %9 : vector<64x32xf32>
    %cst_3 = arith.constant dense<0.000000e+00> : vector<64xf32>
    %11 = vector.multi_reduction <add>, %10, %cst_3 [1] : vector<64x32xf32> to vector<64xf32>
    %12 = vector.shape_cast %11 : vector<64xf32> to vector<64x1xf32>
    %cst_4 = arith.constant 3.200000e+01 : f32
    %13 = vector.broadcast %cst_4 : f32 to vector<64x1xf32>
    %14 = arith.divf %12, %13 : vector<64x1xf32>
    %15 = vector.broadcast %7 : vector<64x1xf32> to vector<64x32xf32>
    %16 = arith.subf %3, %15 : vector<64x32xf32>
    %cst_5 = arith.constant 9.99999974E-6 : f32
    %17 = vector.broadcast %cst_5 : f32 to vector<64x1xf32>
    %18 = arith.addf %14, %17 : vector<64x1xf32>
    %19 = math.rsqrt %18 : vector<64x1xf32>
    %20 = vector.broadcast %19 : vector<64x1xf32> to vector<64x32xf32>
    %21 = arith.mulf %16, %20 : vector<64x32xf32>
    %c0_6 = arith.constant 0 : index
    %c0_7 = arith.constant 0 : index
    %22 = vector.load %arg6[%c0_6, %c0_7] : memref<1x32xf32, #tpu.memory_space<vmem>>, vector<1x32xf32>
    %23 = vector.broadcast %22 : vector<1x32xf32> to vector<64x32xf32>
    %24 = arith.mulf %21, %23 : vector<64x32xf32>
    %c0_8 = arith.constant 0 : index
    %c0_9 = arith.constant 0 : index
    %25 = vector.load %arg7[%c0_8, %c0_9] : memref<1x32xf32, #tpu.memory_space<vmem>>, vector<1x32xf32>
    %26 = vector.broadcast %25 : vector<1x32xf32> to vector<64x32xf32>
    %27 = arith.addf %24, %26 : vector<64x32xf32>
    %28 = arith.truncf %27 : vector<64x32xf32> to vector<64x32xbf16>
    %c0_10 = arith.constant 0 : index
    %c0_11 = arith.constant 0 : index
    %29 = vector.load %arg9[%c0_10, %c0_11] : memref<64x32xf32, #tpu.memory_space<vmem>>, vector<64x32xf32>
    %c0_12 = arith.constant 0 : index
    %c0_13 = arith.constant 0 : index
    %30 = vector.load %arg4[%c0_12, %c0_13] : memref<32x32xbf16, #tpu.memory_space<vmem>>, vector<32x32xbf16>
    %cst_14 = arith.constant dense<0.000000e+00> : vector<64x32xf32>
    %31 = tpu.matmul %28, %30, %cst_14 {dimension_numbers = #tpu.dot_dimension_numbers<[1], [0], [0], [1], [0, 0, 1, 1], [], []>} : vector<64x32xbf16>, vector<32x32xbf16>, vector<64x32xf32> -> vector<64x32xf32>
    %32 = arith.addf %29, %31 : vector<64x32xf32>
    %c0_15 = arith.constant 0 : index
    %c0_16 = arith.constant 0 : index
    %33 = vector.load %arg9[%c0_15, %c0_16] : memref<64x32xf32, #tpu.memory_space<vmem>>, vector<64x32xf32>
    tpu.vector_store %arg9[%c0_15, %c0_16], %32 {strides = array<i32>} : memref<64x32xf32, #tpu.memory_space<vmem>>, vector<64x32xf32>,
    %c0_i32_17 = arith.constant 0 : i32
    %34 = arith.cmpi eq, %arg2, %c0_i32_17 : i32
    %35 = arith.extui %34 : i1 to i32
    %c0_i32_18 = arith.constant 0 : i32
    %36 = arith.cmpi ne, %35, %c0_i32_18 : i32
    scf.if %36 {
      %c0_19 = arith.constant 0 : index
      %c0_20 = arith.constant 0 : index
      %37 = vector.load %arg9[%c0_19, %c0_20] : memref<64x32xf32, #tpu.memory_space<vmem>>, vector<64x32xf32>
      %c0_21 = arith.constant 0 : index
      %c0_22 = arith.constant 0 : index
      %38 = vector.load %arg5[%c0_21, %c0_22] : memref<1x32xf32, #tpu.memory_space<vmem>>, vector<1x32xf32>
      %39 = vector.broadcast %38 : vector<1x32xf32> to vector<64x32xf32>
      %40 = arith.addf %37, %39 : vector<64x32xf32>
      %c0_23 = arith.constant 0 : index
      %c0_24 = arith.constant 0 : index
      %41 = vector.load %arg8[%c0_23, %c0_24] : memref<64x32xf32, #tpu.memory_space<vmem>>, vector<64x32xf32>
      tpu.vector_store %arg8[%c0_23, %c0_24], %40 {strides = array<i32>} : memref<64x32xf32, #tpu.memory_space<vmem>>, vector<64x32xf32>,
    } else {
    }
    return
  }
  func.func @transform_0(%arg0: i32, %arg1: i32, %arg2: i32) -> (i32, i32) {
    %c0_i32 = arith.constant 0 : i32
    return %arg0, %arg2 : i32, i32
  }
  func.func @transform_1(%arg0: i32, %arg1: i32, %arg2: i32) -> (i32, i32) {
    %c0_i32 = arith.constant 0 : i32
    return %arg2, %arg1 : i32, i32
  }
  func.func @transform_2(%arg0: i32, %arg1: i32, %arg2: i32) -> (i32, i32) {
    %c0_i32 = arith.constant 0 : i32
    %c0_i32_0 = arith.constant 0 : i32
    return %c0_i32, %arg1 : i32, i32
  }
  func.func @transform_3(%arg0: i32, %arg1: i32, %arg2: i32) -> (i32, i32) {
    %c0_i32 = arith.constant 0 : i32
    %c0_i32_0 = arith.constant 0 : i32
    %c0_i32_1 = arith.constant 0 : i32
    return %c0_i32, %c0_i32_0 : i32, i32
  }
  func.func @transform_4(%arg0: i32, %arg1: i32, %arg2: i32) -> (i32, i32) {
    %c0_i32 = arith.constant 0 : i32
    %c0_i32_0 = arith.constant 0 : i32
    %c0_i32_1 = arith.constant 0 : i32
    return %c0_i32, %c0_i32_0 : i32, i32
  }
  func.func @transform_5(%arg0: i32, %arg1: i32, %arg2: i32) -> (i32, i32) {
    %c0_i32 = arith.constant 0 : i32
    return %arg0, %arg1 : i32, i32
  }
}

module attributes {stable_mosaic.version = 11 : i64} {
  func.func @_mm_kernel(%arg0: i32, %arg1: i32, %arg2: i32, %arg3: memref<64x64xbf16, #tpu.memory_space<vmem>>, %arg4: memref<64x32xbf16, #tpu.memory_space<vmem>>, %arg5: memref<1x32xf32, #tpu.memory_space<vmem>>, %arg6: memref<64x32xf32, #tpu.memory_space<vmem>>, %arg7: memref<64x32xf32, #tpu.memory_space<vmem>>) attributes {dimension_semantics = [#tpu.dimension_semantics<parallel>, #tpu.dimension_semantics<parallel>, #tpu.dimension_semantics<arbitrary>], iteration_bounds = array<i64: 1, 1, 1>, scalar_prefetch = 0 : i64, scratch_operands = 1 : i64, tpu.core_type = #tpu.core_type<tc>, window_params = [{transform_indices = @transform_0, window_bounds = array<i64: 64, 64>}, {transform_indices = @transform_1, window_bounds = array<i64: 64, 32>}, {transform_indices = @transform_2, window_bounds = array<i64: 1, 32>}, {transform_indices = @transform_3, window_bounds = array<i64: 64, 32>}]} {
    %c0_i32 = arith.constant 0 : i32
    %0 = arith.cmpi eq, %arg2, %c0_i32 : i32
    %1 = arith.extui %0 : i1 to i32
    %c0_i32_0 = arith.constant 0 : i32
    %2 = arith.cmpi ne, %1, %c0_i32_0 : i32
    scf.if %2 {
      %cst_10 = arith.constant 0.000000e+00 : f32
      %12 = vector.broadcast %cst_10 : f32 to vector<64x32xf32>
      %c0_11 = arith.constant 0 : index
      %c0_12 = arith.constant 0 : index
      %13 = vector.load %arg7[%c0_11, %c0_12] : memref<64x32xf32, #tpu.memory_space<vmem>>, vector<64x32xf32>
      tpu.vector_store %arg7[%c0_11, %c0_12], %12 {strides = array<i32>} : memref<64x32xf32, #tpu.memory_space<vmem>>, vector<64x32xf32>,
    } else {
    }
    %c0 = arith.constant 0 : index
    %c0_1 = arith.constant 0 : index
    %3 = vector.load %arg3[%c0, %c0_1] : memref<64x64xbf16, #tpu.memory_space<vmem>>, vector<64x64xbf16>
    %c0_2 = arith.constant 0 : index
    %c0_3 = arith.constant 0 : index
    %4 = vector.load %arg7[%c0_2, %c0_3] : memref<64x32xf32, #tpu.memory_space<vmem>>, vector<64x32xf32>
    %c0_4 = arith.constant 0 : index
    %c0_5 = arith.constant 0 : index
    %5 = vector.load %arg4[%c0_4, %c0_5] : memref<64x32xbf16, #tpu.memory_space<vmem>>, vector<64x32xbf16>
    %cst = arith.constant dense<0.000000e+00> : vector<64x32xf32>
    %6 = tpu.matmul %3, %5, %cst {dimension_numbers = #tpu.dot_dimension_numbers<[1], [0], [0], [1], [0, 0, 1, 1], [], []>} : vector<64x64xbf16>, vector<64x32xbf16>, vector<64x32xf32> -> vector<64x32xf32>
    %7 = arith.addf %4, %6 : vector<64x32xf32>
    %c0_6 = arith.constant 0 : index
    %c0_7 = arith.constant 0 : index
    %8 = vector.load %arg7[%c0_6, %c0_7] : memref<64x32xf32, #tpu.memory_space<vmem>>, vector<64x32xf32>
    tpu.vector_store %arg7[%c0_6, %c0_7], %7 {strides = array<i32>} : memref<64x32xf32, #tpu.memory_space<vmem>>, vector<64x32xf32>,
    %c0_i32_8 = arith.constant 0 : i32
    %9 = arith.cmpi eq, %arg2, %c0_i32_8 : i32
    %10 = arith.extui %9 : i1 to i32
    %c0_i32_9 = arith.constant 0 : i32
    %11 = arith.cmpi ne, %10, %c0_i32_9 : i32
    scf.if %11 {
      %c0_10 = arith.constant 0 : index
      %c0_11 = arith.constant 0 : index
      %12 = vector.load %arg7[%c0_10, %c0_11] : memref<64x32xf32, #tpu.memory_space<vmem>>, vector<64x32xf32>
      %c0_12 = arith.constant 0 : index
      %c0_13 = arith.constant 0 : index
      %13 = vector.load %arg5[%c0_12, %c0_13] : memref<1x32xf32, #tpu.memory_space<vmem>>, vector<1x32xf32>
      %14 = vector.broadcast %13 : vector<1x32xf32> to vector<64x32xf32>
      %15 = arith.addf %12, %14 : vector<64x32xf32>
      %c0_14 = arith.constant 0 : index
      %c0_15 = arith.constant 0 : index
      %16 = vector.load %arg6[%c0_14, %c0_15] : memref<64x32xf32, #tpu.memory_space<vmem>>, vector<64x32xf32>
      tpu.vector_store %arg6[%c0_14, %c0_15], %15 {strides = array<i32>} : memref<64x32xf32, #tpu.memory_space<vmem>>, vector<64x32xf32>,
    } else {
    }
    return
  }
  func.func @transform_0(%arg0: i32, %arg1: i32, %arg2: i32) -> (i32, i32) {
    %c0_i32 = arith.constant 0 : i32
    return %arg0, %arg2 : i32, i32
  }
  func.func @transform_1(%arg0: i32, %arg1: i32, %arg2: i32) -> (i32, i32) {
    %c0_i32 = arith.constant 0 : i32
    return %arg2, %arg1 : i32, i32
  }
  func.func @transform_2(%arg0: i32, %arg1: i32, %arg2: i32) -> (i32, i32) {
    %c0_i32 = arith.constant 0 : i32
    %c0_i32_0 = arith.constant 0 : i32
    return %c0_i32, %arg1 : i32, i32
  }
  func.func @transform_3(%arg0: i32, %arg1: i32, %arg2: i32) -> (i32, i32) {
    %c0_i32 = arith.constant 0 : i32
    return %arg0, %arg1 : i32, i32
  }
}

module attributes {stable_mosaic.version = 11 : i64} {
  func.func @_add_kernel(%arg0: i32, %arg1: memref<64x32xf32, #tpu.memory_space<vmem>>, %arg2: memref<64x32xf32, #tpu.memory_space<vmem>>, %arg3: memref<64x32xf32, #tpu.memory_space<vmem>>) attributes {dimension_semantics = [#tpu.dimension_semantics<parallel>], iteration_bounds = array<i64: 1>, scalar_prefetch = 0 : i64, scratch_operands = 0 : i64, tpu.core_type = #tpu.core_type<tc>, window_params = [{transform_indices = @transform_0, window_bounds = array<i64: 64, 32>}, {transform_indices = @transform_1, window_bounds = array<i64: 64, 32>}, {transform_indices = @transform_2, window_bounds = array<i64: 64, 32>}]} {
    %c0 = arith.constant 0 : index
    %c0_0 = arith.constant 0 : index
    %0 = vector.load %arg1[%c0, %c0_0] : memref<64x32xf32, #tpu.memory_space<vmem>>, vector<64x32xf32>
    %c0_1 = arith.constant 0 : index
    %c0_2 = arith.constant 0 : index
    %1 = vector.load %arg2[%c0_1, %c0_2] : memref<64x32xf32, #tpu.memory_space<vmem>>, vector<64x32xf32>
    %2 = arith.addf %0, %1 : vector<64x32xf32>
    %c0_3 = arith.constant 0 : index
    %c0_4 = arith.constant 0 : index
    %3 = vector.load %arg3[%c0_3, %c0_4] : memref<64x32xf32, #tpu.memory_space<vmem>>, vector<64x32xf32>
    tpu.vector_store %arg3[%c0_3, %c0_4], %2 {strides = array<i32>} : memref<64x32xf32, #tpu.memory_space<vmem>>, vector<64x32xf32>,
    return
  }
  func.func @transform_0(%arg0: i32) -> (i32, i32) {
    %c0_i32 = arith.constant 0 : i32
    %c0_i32_0 = arith.constant 0 : i32
    return %arg0, %c0_i32 : i32, i32
  }
  func.func @transform_1(%arg0: i32) -> (i32, i32) {
    %c0_i32 = arith.constant 0 : i32
    %c0_i32_0 = arith.constant 0 : i32
    return %arg0, %c0_i32 : i32, i32
  }
  func.func @transform_2(%arg0: i32) -> (i32, i32) {
    %c0_i32 = arith.constant 0 : i32
    %c0_i32_0 = arith.constant 0 : i32
    return %arg0, %c0_i32 : i32, i32
  }
}

module attributes {stable_mosaic.version = 11 : i64} {
  func.func @_mm_kernel(%arg0: i32, %arg1: i32, %arg2: i32, %arg3: memref<32x32xbf16, #tpu.memory_space<vmem>>, %arg4: memref<32x24xbf16, #tpu.memory_space<vmem>>, %arg5: memref<1x24xf32, #tpu.memory_space<vmem>>, %arg6: memref<32x24xf32, #tpu.memory_space<vmem>>, %arg7: memref<32x24xf32, #tpu.memory_space<vmem>>) attributes {dimension_semantics = [#tpu.dimension_semantics<parallel>, #tpu.dimension_semantics<parallel>, #tpu.dimension_semantics<arbitrary>], iteration_bounds = array<i64: 1, 1, 1>, scalar_prefetch = 0 : i64, scratch_operands = 1 : i64, tpu.core_type = #tpu.core_type<tc>, window_params = [{transform_indices = @transform_0, window_bounds = array<i64: 32, 32>}, {transform_indices = @transform_1, window_bounds = array<i64: 32, 24>}, {transform_indices = @transform_2, window_bounds = array<i64: 1, 24>}, {transform_indices = @transform_3, window_bounds = array<i64: 32, 24>}]} {
    %c0_i32 = arith.constant 0 : i32
    %0 = arith.cmpi eq, %arg2, %c0_i32 : i32
    %1 = arith.extui %0 : i1 to i32
    %c0_i32_0 = arith.constant 0 : i32
    %2 = arith.cmpi ne, %1, %c0_i32_0 : i32
    scf.if %2 {
      %cst_10 = arith.constant 0.000000e+00 : f32
      %12 = vector.broadcast %cst_10 : f32 to vector<32x24xf32>
      %c0_11 = arith.constant 0 : index
      %c0_12 = arith.constant 0 : index
      %13 = vector.load %arg7[%c0_11, %c0_12] : memref<32x24xf32, #tpu.memory_space<vmem>>, vector<32x24xf32>
      tpu.vector_store %arg7[%c0_11, %c0_12], %12 {strides = array<i32>} : memref<32x24xf32, #tpu.memory_space<vmem>>, vector<32x24xf32>,
    } else {
    }
    %c0 = arith.constant 0 : index
    %c0_1 = arith.constant 0 : index
    %3 = vector.load %arg3[%c0, %c0_1] : memref<32x32xbf16, #tpu.memory_space<vmem>>, vector<32x32xbf16>
    %c0_2 = arith.constant 0 : index
    %c0_3 = arith.constant 0 : index
    %4 = vector.load %arg7[%c0_2, %c0_3] : memref<32x24xf32, #tpu.memory_space<vmem>>, vector<32x24xf32>
    %c0_4 = arith.constant 0 : index
    %c0_5 = arith.constant 0 : index
    %5 = vector.load %arg4[%c0_4, %c0_5] : memref<32x24xbf16, #tpu.memory_space<vmem>>, vector<32x24xbf16>
    %cst = arith.constant dense<0.000000e+00> : vector<32x24xf32>
    %6 = tpu.matmul %3, %5, %cst {dimension_numbers = #tpu.dot_dimension_numbers<[1], [0], [0], [1], [0, 0, 1, 1], [], []>} : vector<32x32xbf16>, vector<32x24xbf16>, vector<32x24xf32> -> vector<32x24xf32>
    %7 = arith.addf %4, %6 : vector<32x24xf32>
    %c0_6 = arith.constant 0 : index
    %c0_7 = arith.constant 0 : index
    %8 = vector.load %arg7[%c0_6, %c0_7] : memref<32x24xf32, #tpu.memory_space<vmem>>, vector<32x24xf32>
    tpu.vector_store %arg7[%c0_6, %c0_7], %7 {strides = array<i32>} : memref<32x24xf32, #tpu.memory_space<vmem>>, vector<32x24xf32>,
    %c0_i32_8 = arith.constant 0 : i32
    %9 = arith.cmpi eq, %arg2, %c0_i32_8 : i32
    %10 = arith.extui %9 : i1 to i32
    %c0_i32_9 = arith.constant 0 : i32
    %11 = arith.cmpi ne, %10, %c0_i32_9 : i32
    scf.if %11 {
      %c0_10 = arith.constant 0 : index
      %c0_11 = arith.constant 0 : index
      %12 = vector.load %arg7[%c0_10, %c0_11] : memref<32x24xf32, #tpu.memory_space<vmem>>, vector<32x24xf32>
      %c0_12 = arith.constant 0 : index
      %c0_13 = arith.constant 0 : index
      %13 = vector.load %arg5[%c0_12, %c0_13] : memref<1x24xf32, #tpu.memory_space<vmem>>, vector<1x24xf32>
      %14 = vector.broadcast %13 : vector<1x24xf32> to vector<32x24xf32>
      %15 = arith.addf %12, %14 : vector<32x24xf32>
      %c0_14 = arith.constant 0 : index
      %c0_15 = arith.constant 0 : index
      %16 = vector.load %arg6[%c0_14, %c0_15] : memref<32x24xf32, #tpu.memory_space<vmem>>, vector<32x24xf32>
      tpu.vector_store %arg6[%c0_14, %c0_15], %15 {strides = array<i32>} : memref<32x24xf32, #tpu.memory_space<vmem>>, vector<32x24xf32>,
    } else {
    }
    return
  }
  func.func @transform_0(%arg0: i32, %arg1: i32, %arg2: i32) -> (i32, i32) {
    %c0_i32 = arith.constant 0 : i32
    return %arg0, %arg2 : i32, i32
  }
  func.func @transform_1(%arg0: i32, %arg1: i32, %arg2: i32) -> (i32, i32) {
    %c0_i32 = arith.constant 0 : i32
    return %arg2, %arg1 : i32, i32
  }
  func.func @transform_2(%arg0: i32, %arg1: i32, %arg2: i32) -> (i32, i32) {
    %c0_i32 = arith.constant 0 : i32
    %c0_i32_0 = arith.constant 0 : i32
    return %c0_i32, %arg1 : i32, i32
  }
  func.func @transform_3(%arg0: i32, %arg1: i32, %arg2: i32) -> (i32, i32) {
    %c0_i32 = arith.constant 0 : i32
    return %arg0, %arg1 : i32, i32
  }
}

module attributes {stable_mosaic.version = 11 : i64} {
  func.func @_mm_kernel(%arg0: i32, %arg1: i32, %arg2: i32, %arg3: memref<32x32xbf16, #tpu.memory_space<vmem>>, %arg4: memref<32x16xbf16, #tpu.memory_space<vmem>>, %arg5: memref<1x16xf32, #tpu.memory_space<vmem>>, %arg6: memref<32x16xf32, #tpu.memory_space<vmem>>, %arg7: memref<32x16xf32, #tpu.memory_space<vmem>>) attributes {dimension_semantics = [#tpu.dimension_semantics<parallel>, #tpu.dimension_semantics<parallel>, #tpu.dimension_semantics<arbitrary>], iteration_bounds = array<i64: 1, 1, 1>, scalar_prefetch = 0 : i64, scratch_operands = 1 : i64, tpu.core_type = #tpu.core_type<tc>, window_params = [{transform_indices = @transform_0, window_bounds = array<i64: 32, 32>}, {transform_indices = @transform_1, window_bounds = array<i64: 32, 16>}, {transform_indices = @transform_2, window_bounds = array<i64: 1, 16>}, {transform_indices = @transform_3, window_bounds = array<i64: 32, 16>}]} {
    %c0_i32 = arith.constant 0 : i32
    %0 = arith.cmpi eq, %arg2, %c0_i32 : i32
    %1 = arith.extui %0 : i1 to i32
    %c0_i32_0 = arith.constant 0 : i32
    %2 = arith.cmpi ne, %1, %c0_i32_0 : i32
    scf.if %2 {
      %cst_10 = arith.constant 0.000000e+00 : f32
      %12 = vector.broadcast %cst_10 : f32 to vector<32x16xf32>
      %c0_11 = arith.constant 0 : index
      %c0_12 = arith.constant 0 : index
      %13 = vector.load %arg7[%c0_11, %c0_12] : memref<32x16xf32, #tpu.memory_space<vmem>>, vector<32x16xf32>
      tpu.vector_store %arg7[%c0_11, %c0_12], %12 {strides = array<i32>} : memref<32x16xf32, #tpu.memory_space<vmem>>, vector<32x16xf32>,
    } else {
    }
    %c0 = arith.constant 0 : index
    %c0_1 = arith.constant 0 : index
    %3 = vector.load %arg3[%c0, %c0_1] : memref<32x32xbf16, #tpu.memory_space<vmem>>, vector<32x32xbf16>
    %c0_2 = arith.constant 0 : index
    %c0_3 = arith.constant 0 : index
    %4 = vector.load %arg7[%c0_2, %c0_3] : memref<32x16xf32, #tpu.memory_space<vmem>>, vector<32x16xf32>
    %c0_4 = arith.constant 0 : index
    %c0_5 = arith.constant 0 : index
    %5 = vector.load %arg4[%c0_4, %c0_5] : memref<32x16xbf16, #tpu.memory_space<vmem>>, vector<32x16xbf16>
    %cst = arith.constant dense<0.000000e+00> : vector<32x16xf32>
    %6 = tpu.matmul %3, %5, %cst {dimension_numbers = #tpu.dot_dimension_numbers<[1], [0], [0], [1], [0, 0, 1, 1], [], []>} : vector<32x32xbf16>, vector<32x16xbf16>, vector<32x16xf32> -> vector<32x16xf32>
    %7 = arith.addf %4, %6 : vector<32x16xf32>
    %c0_6 = arith.constant 0 : index
    %c0_7 = arith.constant 0 : index
    %8 = vector.load %arg7[%c0_6, %c0_7] : memref<32x16xf32, #tpu.memory_space<vmem>>, vector<32x16xf32>
    tpu.vector_store %arg7[%c0_6, %c0_7], %7 {strides = array<i32>} : memref<32x16xf32, #tpu.memory_space<vmem>>, vector<32x16xf32>,
    %c0_i32_8 = arith.constant 0 : i32
    %9 = arith.cmpi eq, %arg2, %c0_i32_8 : i32
    %10 = arith.extui %9 : i1 to i32
    %c0_i32_9 = arith.constant 0 : i32
    %11 = arith.cmpi ne, %10, %c0_i32_9 : i32
    scf.if %11 {
      %c0_10 = arith.constant 0 : index
      %c0_11 = arith.constant 0 : index
      %12 = vector.load %arg7[%c0_10, %c0_11] : memref<32x16xf32, #tpu.memory_space<vmem>>, vector<32x16xf32>
      %c0_12 = arith.constant 0 : index
      %c0_13 = arith.constant 0 : index
      %13 = vector.load %arg5[%c0_12, %c0_13] : memref<1x16xf32, #tpu.memory_space<vmem>>, vector<1x16xf32>
      %14 = vector.broadcast %13 : vector<1x16xf32> to vector<32x16xf32>
      %15 = arith.addf %12, %14 : vector<32x16xf32>
      %c0_14 = arith.constant 0 : index
      %c0_15 = arith.constant 0 : index
      %16 = vector.load %arg6[%c0_14, %c0_15] : memref<32x16xf32, #tpu.memory_space<vmem>>, vector<32x16xf32>
      tpu.vector_store %arg6[%c0_14, %c0_15], %15 {strides = array<i32>} : memref<32x16xf32, #tpu.memory_space<vmem>>, vector<32x16xf32>,
    } else {
    }
    return
  }
  func.func @transform_0(%arg0: i32, %arg1: i32, %arg2: i32) -> (i32, i32) {
    %c0_i32 = arith.constant 0 : i32
    return %arg0, %arg2 : i32, i32
  }
  func.func @transform_1(%arg0: i32, %arg1: i32, %arg2: i32) -> (i32, i32) {
    %c0_i32 = arith.constant 0 : i32
    return %arg2, %arg1 : i32, i32
  }
  func.func @transform_2(%arg0: i32, %arg1: i32, %arg2: i32) -> (i32, i32) {
    %c0_i32 = arith.constant 0 : i32
    %c0_i32_0 = arith.constant 0 : i32
    return %c0_i32, %arg1 : i32, i32
  }
  func.func @transform_3(%arg0: i32, %arg1: i32, %arg2: i32) -> (i32, i32) {
    %c0_i32 = arith.constant 0 : i32
    return %arg0, %arg1 : i32, i32
  }
}

</mosaic_0001>

<bundles_post_ra>
// kernel: pangu_forward.29
= control target key start
LH: loop header
LB: loop body
LE: loop exit
PB: predicated region body
PF: predicated region fallthrough
CT: control target
= control target key end

     0   :  { %vm19_vm0 = vcmask 261120   ;;  %v174_v0 = vmov 0.0   ;;  %vm54_vm1 = vcmask 195584   ;;  %vm61_vm2 = vcmask 1043456   ;;  %s234_s1 = inlined_call_operand.vmem [shape: bf16[24,32], index: 1, kind: input, shape index: {}]   ;;  %s235_s0 = inlined_call_operand.vmem [shape: bf16[32,24], index: 0, kind: input, shape index: {}]   ;;  %s236_s2 = inlined_call_operand.vmem [shape: f32[1,32], index: 2, kind: input, shape index: {}]   ;;  %s237_s3 = inlined_call_operand.vmem [shape: f32[32,32], index: 3, kind: output, shape index: {}]  }
   0x1   :  { %22 = vst.msk [vmem:[#allocation2 + $0x10] sm:$0xff] %vm19_vm0, %v174_v0  ;;  %20 = vst.msk [vmem:[#allocation2] sm:$0xff] %vm19_vm0, %v174_v0  ;;  %v170_v1 = vld [vmem:[%s234_s1] sm:$0xff]   ;;  %v171_v2 = vld [vmem:[%s234_s1 + $0x8] ss:$0 sps:$4 sm:$0xff]  }
   0x2   :  { %21 = vst.msk [vmem:[#allocation2 + $0x8] sm:$0xff] %vm19_vm0, %v174_v0  ;;  %23 = vst.msk [vmem:[#allocation2 + $0x18] sm:$0xff] %vm19_vm0, %v174_v0  ;;  %v172_v3 = vld [vmem:[%s235_s0] sm:$0xff]   ;;  %160 = vmatprep.subr.bf16.mxu0 %v170_v1  ;;  %v63_v4 = vsel %vm61_vm2, %v171_v2, 0  ;;  %v173_v5 = vld [vmem:[%s235_s0 + $0x8] sm:$0xff]  }
   0x3   :  { %161 = vmatpush3.bf16.msra.mxu0 %v170_v1  ;;  %164 = vmatprep.mubr.msk.bf16.mxu0 %vm54_vm1, %v172_v3  ;;  %v155_v18 = vld [vmem:[%s236_s2] ss:$0 sm:$0xff] }
   0x4   :  { %168 = vmatprep.subr.msk.bf16.mxu0 %vm61_vm2, %v171_v2 }
   0x7   :  { %163 = vmatpush3.bf16.msra.mxu0 %v63_v4 }
   0x8   :  { %v30_v6 = vld [vmem:[#allocation2 + $0x10] sm:$0xff]  ;;  %v28_v7 = vld [vmem:[#allocation2] sm:$0xff] }
   0x9   :  { %v31_v9 = vld [vmem:[#allocation2 + $0x18] sm:$0xff]  ;;  %v29_v12 = vld [vmem:[#allocation2 + $0x8] sm:$0xff] }
   0xa   :  { %165 = vmatmul.mubr.msk.bf16.vlgmr.msra.gmra.mrb[0].mxu0 %vm54_vm1, %v173_v5 }
  0xdd   :  { %v166_v8 = vpop.f32.mrb[0].mxu0 }
  0xde   :  { %v116_v10 = vadd.f32 %v166_v8, %v30_v6  ;;  %v99_v11 = vpop.f32.mrb[1].mxu0 }
  0xdf   :  { %v114_v13 = vadd.f32 %v99_v11, %v28_v7  ;;  %v167_v14 = vpop.f32.mrb[2].mxu0 }
  0xe0   :  { %121 = vst.msk [vmem:[#allocation2 + $0x10] sm:$0xff] %vm19_vm0, %v116_v10  ;;  %v117_v15 = vadd.f32 %v167_v14, %v31_v9  ;;  %v102_v16 = vpop.f32.mrb[3].mxu0 }
  0xe1   :  { %119 = vst.msk [vmem:[#allocation2] sm:$0xff] %vm19_vm0, %v114_v13  ;;  %v115_v17 = vadd.f32 %v102_v16, %v29_v12 }
  0xe2   :  { %122 = vst.msk [vmem:[#allocation2 + $0x18] sm:$0xff] %vm19_vm0, %v117_v15 }
  0xe3   :  { %120 = vst.msk [vmem:[#allocation2 + $0x8] sm:$0xff] %vm19_vm0, %v115_v17 }
  0xe7   :  { %v128_v19 = vld [vmem:[#allocation2 + $0x10] sm:$0xff] }
  0xe8   :  { %v139_v20 = vadd.f32 %v155_v18, %v128_v19  ;;  %v126_v21 = vld [vmem:[#allocation2] sm:$0xff] }
  0xe9   :  { %v137_v22 = vadd.f32 %v155_v18, %v126_v21  ;;  %v129_v23 = vld [vmem:[#allocation2 + $0x18] sm:$0xff] }
  0xea   :  { %143 = vst.msk [vmem:[%s237_s3 + $0x10] sm:$0xff] %vm19_vm0, %v139_v20  ;;  %v140_v24 = vadd.f32 %v155_v18, %v129_v23  ;;  %v127_v25 = vld [vmem:[#allocation2 + $0x8] sm:$0xff] }
  0xeb   :  { %141 = vst.msk [vmem:[%s237_s3] sm:$0xff] %vm19_vm0, %v137_v22  ;;  %v138_v26 = vadd.f32 %v155_v18, %v127_v25 }
  0xec   :  { %144 = vst.msk [vmem:[%s237_s3 + $0x18] sm:$0xff] %vm19_vm0, %v140_v24 }
  0xed   :  { %142 = vst.msk [vmem:[%s237_s3 + $0x8] sm:$0xff] %vm19_vm0, %v138_v26 }

// kernel: pangu_forward.30
= control target key start
LH: loop header
LB: loop body
LE: loop exit
PB: predicated region body
PF: predicated region fallthrough
CT: control target
= control target key end

     0   :  { %vm19_vm0 = vcmask 261120   ;;  %vm50_vm1 = vcmask 130048   ;;  %v160_v1 = vmov 0.0   ;;  %s217_s1 = inlined_call_operand.vmem [shape: bf16[16,32], index: 1, kind: input, shape index: {}]   ;;  %s218_s0 = inlined_call_operand.vmem [shape: bf16[32,16], index: 0, kind: input, shape index: {}]   ;;  %s219_s2 = inlined_call_operand.vmem [shape: f32[1,32], index: 2, kind: input, shape index: {}]   ;;  %s220_s3 = inlined_call_operand.vmem [shape: f32[32,32], index: 3, kind: output, shape index: {}]  }
   0x1   :  { %v157_v0 = vld [vmem:[%s217_s1] sm:$0xff]   ;;  %22 = vst.msk [vmem:[#allocation2 + $0x10] sm:$0xff] %vm19_vm0, %v160_v1  ;;  %20 = vst.msk [vmem:[#allocation2] sm:$0xff] %vm19_vm0, %v160_v1  ;;  %v159_v3 = vld [vmem:[%s218_s0 + $0x8] sm:$0xff]  }
   0x2   :  { %21 = vst.msk [vmem:[#allocation2 + $0x8] sm:$0xff] %vm19_vm0, %v160_v1  ;;  %23 = vst.msk [vmem:[#allocation2 + $0x18] sm:$0xff] %vm19_vm0, %v160_v1  ;;  %v158_v2 = vld [vmem:[%s218_s0] sm:$0xff]   ;;  %150 = vmatprep.subr.bf16.mxu0 %v157_v0 }
   0x3   :  { %151 = vmatpush3.bf16.msra.mxu0 %v157_v0  ;;  %152 = vmatprep.mubr.msk.bf16.mxu0 %vm50_vm1, %v158_v2  ;;  %v146_v16 = vld [vmem:[%s219_s2] ss:$0 sm:$0xff] }
   0x6   :  { %153 = vmatmul.mubr.msk.bf16.vlgmr.msra.gmra.mrb[0].mxu0 %vm50_vm1, %v159_v3 }
   0x8   :  { %v30_v4 = vld [vmem:[#allocation2 + $0x10] sm:$0xff]  ;;  %v28_v5 = vld [vmem:[#allocation2] sm:$0xff] }
   0x9   :  { %v31_v7 = vld [vmem:[#allocation2 + $0x18] sm:$0xff]  ;;  %v29_v10 = vld [vmem:[#allocation2 + $0x8] sm:$0xff] }
  0xd9   :  { %v154_v6 = vpop.f32.mrb[0].mxu0 }
  0xda   :  { %v108_v8 = vadd.f32 %v154_v6, %v30_v4  ;;  %v91_v9 = vpop.f32.mrb[1].mxu0 }
  0xdb   :  { %v106_v11 = vadd.f32 %v91_v9, %v28_v5  ;;  %v155_v12 = vpop.f32.mrb[2].mxu0 }
  0xdc   :  { %113 = vst.msk [vmem:[#allocation2 + $0x10] sm:$0xff] %vm19_vm0, %v108_v8  ;;  %v109_v13 = vadd.f32 %v155_v12, %v31_v7  ;;  %v94_v14 = vpop.f32.mrb[3].mxu0 }
  0xdd   :  { %111 = vst.msk [vmem:[#allocation2] sm:$0xff] %vm19_vm0, %v106_v11  ;;  %v107_v15 = vadd.f32 %v94_v14, %v29_v10 }
  0xde   :  { %114 = vst.msk [vmem:[#allocation2 + $0x18] sm:$0xff] %vm19_vm0, %v109_v13 }
  0xdf   :  { %112 = vst.msk [vmem:[#allocation2 + $0x8] sm:$0xff] %vm19_vm0, %v107_v15 }
  0xe3   :  { %v120_v17 = vld [vmem:[#allocation2 + $0x10] sm:$0xff] }
  0xe4   :  { %v131_v18 = vadd.f32 %v146_v16, %v120_v17  ;;  %v118_v19 = vld [vmem:[#allocation2] sm:$0xff] }
  0xe5   :  { %v129_v20 = vadd.f32 %v146_v16, %v118_v19  ;;  %v121_v21 = vld [vmem:[#allocation2 + $0x18] sm:$0xff] }
  0xe6   :  { %135 = vst.msk [vmem:[%s220_s3 + $0x10] sm:$0xff] %vm19_vm0, %v131_v18  ;;  %v132_v22 = vadd.f32 %v146_v16, %v121_v21  ;;  %v119_v23 = vld [vmem:[#allocation2 + $0x8] sm:$0xff] }
  0xe7   :  { %133 = vst.msk [vmem:[%s220_s3] sm:$0xff] %vm19_vm0, %v129_v20  ;;  %v130_v24 = vadd.f32 %v146_v16, %v119_v23 }
  0xe8   :  { %136 = vst.msk [vmem:[%s220_s3 + $0x18] sm:$0xff] %vm19_vm0, %v132_v22 }
  0xe9   :  { %134 = vst.msk [vmem:[%s220_s3 + $0x8] sm:$0xff] %vm19_vm0, %v130_v24 }

// kernel: pangu_forward.31
= control target key start
LH: loop header
LB: loop body
LE: loop exit
PB: predicated region body
PF: predicated region fallthrough
CT: control target
= control target key end

     0   :  { %vm42_vm0 = vcmask 261120   ;;  %vm25_vm1 = vcmask 785408   ;;  %v388_v58 = vmov 0.0   ;;  %s566_s0 = inlined_call_operand.vmem [shape: f32[64,32], index: 0, kind: input, shape index: {}]   ;;  %s567_s1 = inlined_call_operand.vmem [shape: bf16[32,96], index: 1, kind: input, shape index: {}]   ;;  %s568_s3 = inlined_call_operand.vmem [shape: f32[1,32], index: 3, kind: input, shape index: {}]   ;;  %s569_s4 = inlined_call_operand.vmem [shape: f32[1,32], index: 4, kind: input, shape index: {}]   ;;  %s570_s2 = inlined_call_operand.vmem [shape: f32[1,96], index: 2, kind: input, shape index: {}]   ;;  %s571_s5 = inlined_call_operand.vmem [shape: f32[64,96], index: 5, kind: output, shape index: {}]  }
   0x1   :  { %v34_v0 = vld [vmem:[%s566_s0] sm:$0xff]  ;;  %v35_v2 = vld [vmem:[%s566_s0 + $0x8] sm:$0xff]  ;;  %v36_v8 = vld [vmem:[%s566_s0 + $0x10] sm:$0xff]  ;;  %28 = vst.msk [vmem:[#allocation2 + $0x10] sm:$0xff] %vm25_vm1, %v388_v58 }
   0x2   :  { %v38_v1 = vld [vmem:[%s566_s0 + $0x20] sm:$0xff]  ;;  %v43_v3 = vsel %vm42_vm0, %v34_v0, 0.0  ;;  %v39_v5 = vld [vmem:[%s566_s0 + $0x28] sm:$0xff]  ;;  %v46_v6 = vsel %vm42_vm0, %v35_v2, 0.0  ;;  %v37_v9 = vld [vmem:[%s566_s0 + $0x18] sm:$0xff]  ;;  %v49_v10 = vsel %vm42_vm0, %v36_v8, 0.0 }
   0x3   :  { %v55_v4 = vsel %vm42_vm0, %v38_v1, 0.0  ;;  %44 = vadd.xlane.f32.xlu0 %v43_v3  ;;  %v58_v7 = vsel %vm42_vm0, %v39_v5, 0.0  ;;  %v52_v11 = vsel %vm42_vm0, %v37_v9, 0.0  ;;  %v40_v12 = vld [vmem:[%s566_s0 + $0x30] sm:$0xff]  ;;  %v41_v13 = vld [vmem:[%s566_s0 + $0x38] sm:$0xff]  ;;  %v370_v56 = vld [vmem:[%s567_s1] sm:$0xff]  }
   0x4   :  { %56 = vadd.xlane.f32.xlu1 %v55_v4  ;;  %v61_v14 = vsel %vm42_vm0, %v40_v12, 0.0  ;;  %v64_v15 = vsel %vm42_vm0, %v41_v13, 0.0  ;;  %353 = vmatprep.subr.bf16.mxu0 %v370_v56  ;;  %v371_v57 = vld [vmem:[%s567_s1 + $0x8] sm:$0xff]   ;;  %26 = vst.msk [vmem:[#allocation2] sm:$0xff] %vm25_vm1, %v388_v58  ;;  %27 = vst.msk [vmem:[#allocation2 + $0x8] sm:$0xff] %vm25_vm1, %v388_v58 }
   0x5   :  { %365 = vmatprep.subr.bf16.mxu1 %v370_v56  ;;  %354 = vmatpush3.bf16.msra.mxu0 %v370_v56  ;;  %29 = vst.msk [vmem:[#allocation2 + $0x18] sm:$0xff] %vm25_vm1, %v388_v58  ;;  %30 = vst.msk [vmem:[#allocation2 + $0x20] sm:$0xff] %vm25_vm1, %v388_v58 }
   0x6   :  { %367 = vmatpush3.bf16.msra.mxu1 %v370_v56  ;;  %355 = vmatprep.subr.bf16.mxu0 %v371_v57  ;;  %31 = vst.msk [vmem:[#allocation2 + $0x28] sm:$0xff] %vm25_vm1, %v388_v58  ;;  %32 = vst.msk [vmem:[#allocation2 + $0x30] sm:$0xff] %vm25_vm1, %v388_v58 }
   0x7   :  { %47 = vadd.xlane.f32.xlu0 %v46_v6  ;;  %366 = vmatprep.subr.bf16.mxu1 %v371_v57  ;;  %33 = vst.msk [vmem:[#allocation2 + $0x38] sm:$0xff] %vm25_vm1, %v388_v58 }
   0x8   :  { %59 = vadd.xlane.f32.xlu1 %v58_v7 }
   0x9   :  { %356 = vmatpush3.bf16.msra.mxu0 %v371_v57 }
   0xa   :  { %368 = vmatpush3.bf16.msra.mxu1 %v371_v57 }
   0xb   :  { %50 = vadd.xlane.f32.xlu0 %v49_v10 }
   0xc   :  { %53 = vadd.xlane.f32.xlu1 %v52_v11 }
   0xf   :  { %62 = vadd.xlane.f32.xlu0 %v61_v14 }
  0x10   :  { %65 = vadd.xlane.f32.xlu1 %v64_v15 }
  0x90   :  { %v45_v16 = vpop.xlane.xlu0 %44 }
  0x91   :  { %v57_v17 = vpop.xlane.xlu1 %56  ;;  %v68_v18 = vmul.f32 0.03125, %v45_v16 }
  0x92   :  { %v72_v19 = vmul.f32 0.03125, %v57_v17 }
  0x93   :  { %v451_v20 = vsub.f32 %v34_v0, %v68_v18 }
  0x94   :  { %v453_v21 = vsub.f32 %v38_v1, %v72_v19  ;;  %v48_v22 = vpop.xlane.xlu0 %47 }
  0x95   :  { %v60_v23 = vpop.xlane.xlu1 %59  ;;  %v69_v24 = vmul.f32 0.03125, %v48_v22  ;;  %v84_v26 = vmul.f32 %v451_v20, %v451_v20  ;;  %v338_v22 = vld [vmem:[%s568_s3] ss:$0 sm:$0xff] }
  0x96   :  { %v73_v25 = vmul.f32 0.03125, %v60_v23  ;;  %v88_v27 = vmul.f32 %v453_v21, %v453_v21 }
  0x97   :  { %v459_v28 = vsub.f32 %v35_v2, %v69_v24  ;;  %v92_v30 = vsel %vm42_vm0, %v84_v26, 0.0 }
  0x98   :  { %v461_v29 = vsub.f32 %v39_v5, %v73_v25  ;;  %93 = vadd.xlane.f32.xlu0 %v92_v30  ;;  %v51_v31 = vpop.xlane.xlu0 %50  ;;  %v104_v33 = vsel %vm42_vm0, %v88_v27, 0.0  ;;  %v339_v30 = vld [vmem:[%s569_s4] ss:$0 sm:$0xff] }
  0x99   :  { %v54_v32 = vpop.xlane.xlu1 %53  ;;  %v70_v34 = vmul.f32 0.03125, %v51_v31  ;;  %v85_v36 = vmul.f32 %v459_v28, %v459_v28 }
  0x9a   :  { %v71_v35 = vmul.f32 0.03125, %v54_v32  ;;  %v89_v37 = vmul.f32 %v461_v29, %v461_v29 }
  0x9b   :  { %v469_v38 = vsub.f32 %v36_v8, %v70_v34  ;;  %v95_v40 = vsel %vm42_vm0, %v85_v36, 0.0 }
  0x9c   :  { %v471_v39 = vsub.f32 %v37_v9, %v71_v35  ;;  %105 = vadd.xlane.f32.xlu0 %v104_v33  ;;  %96 = vadd.xlane.f32.xlu1 %v95_v40  ;;  %v63_v41 = vpop.xlane.xlu0 %62  ;;  %v107_v43 = vsel %vm42_vm0, %v89_v37, 0.0 }
  0x9d   :  { %v66_v42 = vpop.xlane.xlu1 %65  ;;  %v74_v44 = vmul.f32 0.03125, %v63_v41  ;;  %v86_v46 = vmul.f32 %v469_v38, %v469_v38 }
  0x9e   :  { %v75_v45 = vmul.f32 0.03125, %v66_v42  ;;  %v87_v47 = vmul.f32 %v471_v39, %v471_v39 }
  0x9f   :  { %v479_v48 = vsub.f32 %v40_v12, %v74_v44  ;;  %v98_v50 = vsel %vm42_vm0, %v86_v46, 0.0 }
  0xa0   :  { %v481_v49 = vsub.f32 %v41_v13, %v75_v45  ;;  %108 = vadd.xlane.f32.xlu1 %v107_v43  ;;  %99 = vadd.xlane.f32.xlu0 %v98_v50  ;;  %v101_v51 = vsel %vm42_vm0, %v87_v47, 0.0 }
  0xa1   :  { %v90_v52 = vmul.f32 %v479_v48, %v479_v48 }
  0xa2   :  { %v91_v53 = vmul.f32 %v481_v49, %v481_v49 }
  0xa3   :  { %v110_v54 = vsel %vm42_vm0, %v90_v52, 0.0 }
  0xa4   :  { %102 = vadd.xlane.f32.xlu1 %v101_v51  ;;  %111 = vadd.xlane.f32.xlu0 %v110_v54  ;;  %v113_v55 = vsel %vm42_vm0, %v91_v53, 0.0 }
  0xa8   :  { %114 = vadd.xlane.f32.xlu1 %v113_v55 }
 0x125   :  { %v94_v59 = vpop.xlane.xlu0 %93 }
 0x126   :  { %v116_v60 = vmul.f32 0.03125, %v94_v59  ;;  %v182_v59 = vld [vmem:[#allocation2] sm:$0xff] }
 0x128   :  { %v124_v61 = vadd.f32 1e-05, %v116_v60 }
 0x129   :  { %v97_v62 = vpop.xlane.xlu1 %96  ;;  %v106_v63 = vpop.xlane.xlu0 %105 }
 0x12a   :  { %372 = vrsqrt.f32 %v124_v61  ;;  %v117_v0 = vmul.f32 0.03125, %v97_v62  ;;  %v120_v1 = vmul.f32 0.03125, %v106_v63  ;;  %v185_v61 = vld [vmem:[#allocation2 + $0x18] sm:$0xff]  ;;  %v183_v63 = vld [vmem:[#allocation2 + $0x8] sm:$0xff] }
 0x12c   :  { %v125_v2 = vadd.f32 1e-05, %v117_v0  ;;  %v128_v3 = vadd.f32 1e-05, %v120_v1 }
 0x12d   :  { %v109_v4 = vpop.xlane.xlu1 %108  ;;  %v100_v5 = vpop.xlane.xlu0 %99 }
 0x12e   :  { %374 = vrsqrt.f32 %v125_v2  ;;  %v121_v6 = vmul.f32 0.03125, %v109_v4  ;;  %v118_v7 = vmul.f32 0.03125, %v100_v5  ;;  %v188_v2 = vld [vmem:[#allocation2 + $0x30] sm:$0xff]  ;;  %v186_v5 = vld [vmem:[#allocation2 + $0x20] sm:$0xff] }
 0x12f   :  { %376 = vrsqrt.f32 %v128_v3 }
 0x130   :  { %v129_v8 = vadd.f32 1e-05, %v121_v6  ;;  %v126_v9 = vadd.f32 1e-05, %v118_v7 }
 0x131   :  { %v103_v10 = vpop.xlane.xlu1 %102  ;;  %v112_v11 = vpop.xlane.xlu0 %111 }
 0x132   :  { %378 = vrsqrt.f32 %v129_v8  ;;  %v119_v12 = vmul.f32 0.03125, %v103_v10  ;;  %v122_v13 = vmul.f32 0.03125, %v112_v11  ;;  %v189_v8 = vld [vmem:[#allocation2 + $0x38] sm:$0xff]  ;;  %v187_v11 = vld [vmem:[#allocation2 + $0x28] sm:$0xff] }
 0x133   :  { %380 = vrsqrt.f32 %v126_v9 }
 0x134   :  { %v373_v14 = vpop.eup %372  ;;  %v127_v15 = vadd.f32 1e-05, %v119_v12  ;;  %v130_v16 = vadd.f32 1e-05, %v122_v13 }
 0x135   :  { %v115_v17 = vpop.xlane.xlu1 %114  ;;  %v140_v18 = vmul.f32 %v373_v14, %v451_v20 }
 0x136   :  { %382 = vrsqrt.f32 %v127_v15  ;;  %v123_v19 = vmul.f32 0.03125, %v115_v17 }
 0x137   :  { %384 = vrsqrt.f32 %v130_v16  ;;  %v155_v27 = vmul.f32 %v338_v22, %v140_v18  ;;  %v346_v16 = vld [vmem:[%s570_s2] ss:$0 sm:$0xff] }
 0x138   :  { %v375_v23 = vpop.eup %374  ;;  %v131_v24 = vadd.f32 1e-05, %v123_v19 }
 0x139   :  { %v377_v25 = vpop.eup %376  ;;  %v141_v26 = vmul.f32 %v375_v23, %v459_v28  ;;  %v170_v34 = vadd.f32 %v339_v30, %v155_v27 }
 0x13a   :  { %386 = vrsqrt.f32 %v131_v24  ;;  %v144_v20 = vmul.f32 %v377_v25, %v453_v21 }
 0x13b   :  { %v156_v31 = vmul.f32 %v338_v22, %v141_v26 }
 0x13c   :  { %v379_v32 = vpop.eup %378  ;;  %v159_v37 = vmul.f32 %v338_v22, %v144_v20 }
 0x13d   :  { %v381_v33 = vpop.eup %380  ;;  %v171_v35 = vadd.f32 %v339_v30, %v156_v31  ;;  %v145_v36 = vmul.f32 %v379_v32, %v461_v29 }
 0x13e   :  { %v142_v40 = vmul.f32 %v381_v33, %v469_v38  ;;  %v174_v45 = vadd.f32 %v339_v30, %v159_v37 }
 0x13f   :  { %v178_v41 = vpack.c.bf16 %v171_v35, %v170_v34  ;;  %v160_v28 = vmul.f32 %v338_v22, %v145_v36 }
 0x140   :  { %v383_v42 = vpop.eup %382  ;;  %v157_v46 = vmul.f32 %v338_v22, %v142_v40 }
 0x141   :  { %v385_v43 = vpop.eup %384  ;;  %v143_v44 = vmul.f32 %v383_v42, %v471_v39  ;;  %357 = vmatprep.mubr.msk.bf16.mxu0 %vm42_vm0, %v178_v41  ;;  %v175_v21 = vadd.f32 %v339_v30, %v160_v28 }
 0x142   :  { %v146_v47 = vmul.f32 %v385_v43, %v479_v48  ;;  %v172_v38 = vadd.f32 %v339_v30, %v157_v46  ;;  %v184_v48 = vld [vmem:[#allocation2 + $0x10] sm:$0xff] }
 0x143   :  { %v180_v50 = vpack.c.bf16 %v175_v21, %v174_v45  ;;  %v158_v51 = vmul.f32 %v338_v22, %v143_v44 }
 0x144   :  { %v387_v52 = vpop.eup %386  ;;  %v161_v54 = vmul.f32 %v338_v22, %v146_v47 }
 0x145   :  { %v147_v29 = vmul.f32 %v387_v52, %v481_v49  ;;  %361 = vmatprep.mubr.msk.bf16.mxu1 %vm42_vm0, %v180_v50  ;;  %v173_v53 = vadd.f32 %v339_v30, %v158_v51 }
 0x146   :  { %v176_v39 = vadd.f32 %v339_v30, %v161_v54 }
 0x147   :  { %v179_v55 = vpack.c.bf16 %v173_v53, %v172_v38  ;;  %v162_v56 = vmul.f32 %v338_v22, %v147_v29 }
 0x149   :  { %358 = vmatmul.mubr.msk.bf16.vlgmr.msra.gmra.mrb[0].mxu0 %vm42_vm0, %v179_v55  ;;  %v177_v57 = vadd.f32 %v339_v30, %v162_v56 }
 0x14b   :  { %v181_v58 = vpack.c.bf16 %v177_v57, %v176_v39 }
 0x14d   :  { %362 = vmatmul.mubr.msk.bf16.vlgmr.msra.gmra.mrb[0].mxu1 %vm42_vm0, %v181_v58 }
 0x21c   :  { %v359_v60 = vpop.f32.mrb[0].mxu0 }
 0x21d   :  { %v285_v62 = vadd.f32 %v359_v60, %v184_v48  ;;  %v252_v49 = vpop.f32.mrb[1].mxu0 }
 0x21e   :  { %v283_v0 = vadd.f32 %v252_v49, %v182_v59  ;;  %v360_v1 = vpop.f32.mrb[2].mxu0 }
 0x21f   :  { %294 = vst.msk [vmem:[#allocation2 + $0x10] sm:$0xff] %vm25_vm1, %v285_v62  ;;  %v286_v3 = vadd.f32 %v360_v1, %v185_v61  ;;  %v255_v4 = vpop.f32.mrb[3].mxu0 }
 0x220   :  { %292 = vst.msk [vmem:[#allocation2] sm:$0xff] %vm25_vm1, %v283_v0  ;;  %v284_v6 = vadd.f32 %v255_v4, %v183_v63  ;;  %v363_v7 = vpop.f32.mrb[0].mxu1 }
 0x221   :  { %295 = vst.msk [vmem:[#allocation2 + $0x18] sm:$0xff] %vm25_vm1, %v286_v3  ;;  %v289_v9 = vadd.f32 %v363_v7, %v188_v2  ;;  %v268_v10 = vpop.f32.mrb[1].mxu1 }
 0x222   :  { %293 = vst.msk [vmem:[#allocation2 + $0x8] sm:$0xff] %vm25_vm1, %v284_v6  ;;  %v287_v12 = vadd.f32 %v268_v10, %v186_v5  ;;  %v364_v13 = vpop.f32.mrb[2].mxu1 }
 0x223   :  { %298 = vst.msk [vmem:[#allocation2 + $0x30] sm:$0xff] %vm25_vm1, %v289_v9  ;;  %v290_v14 = vadd.f32 %v364_v13, %v189_v8  ;;  %v271_v15 = vpop.f32.mrb[3].mxu1 }
 0x224   :  { %296 = vst.msk [vmem:[#allocation2 + $0x20] sm:$0xff] %vm25_vm1, %v287_v12  ;;  %v288_v17 = vadd.f32 %v271_v15, %v187_v11 }
 0x225   :  { %299 = vst.msk [vmem:[#allocation2 + $0x38] sm:$0xff] %vm25_vm1, %v290_v14 }
 0x226   :  { %v305_v18 = vld [vmem:[#allocation2 + $0x10] sm:$0xff]  ;;  %297 = vst.msk [vmem:[#allocation2 + $0x28] sm:$0xff] %vm25_vm1, %v288_v17 }
 0x227   :  { %v320_v19 = vadd.f32 %v346_v16, %v305_v18  ;;  %v303_v22 = vld [vmem:[#allocation2] sm:$0xff] }
 0x228   :  { %v318_v23 = vadd.f32 %v346_v16, %v303_v22  ;;  %v306_v24 = vld [vmem:[#allocation2 + $0x18] sm:$0xff] }
 0x229   :  { %328 = vst.msk [vmem:[%s571_s5 + $0x10] sm:$0xff] %vm25_vm1, %v320_v19  ;;  %v321_v25 = vadd.f32 %v346_v16, %v306_v24  ;;  %v304_v26 = vld [vmem:[#allocation2 + $0x8] sm:$0xff] }
 0x22a   :  { %326 = vst.msk [vmem:[%s571_s5] sm:$0xff] %vm25_vm1, %v318_v23  ;;  %v319_v27 = vadd.f32 %v346_v16, %v304_v26  ;;  %v309_v30 = vld [vmem:[#allocation2 + $0x30] sm:$0xff] }
 0x22b   :  { %329 = vst.msk [vmem:[%s571_s5 + $0x18] sm:$0xff] %vm25_vm1, %v321_v25  ;;  %v324_v20 = vadd.f32 %v346_v16, %v309_v30  ;;  %v307_v31 = vld [vmem:[#allocation2 + $0x20] sm:$0xff] }
 0x22c   :  { %327 = vst.msk [vmem:[%s571_s5 + $0x8] sm:$0xff] %vm25_vm1, %v319_v27  ;;  %v322_v32 = vadd.f32 %v346_v16, %v307_v31  ;;  %v310_v33 = vld [vmem:[#allocation2 + $0x38] sm:$0xff] }
 0x22d   :  { %332 = vst.msk [vmem:[%s571_s5 + $0x30] sm:$0xff] %vm25_vm1, %v324_v20  ;;  %v325_v34 = vadd.f32 %v346_v16, %v310_v33  ;;  %v308_v35 = vld [vmem:[#allocation2 + $0x28] sm:$0xff] }
 0x22e   :  { %330 = vst.msk [vmem:[%s571_s5 + $0x20] sm:$0xff] %vm25_vm1, %v322_v32  ;;  %v323_v36 = vadd.f32 %v346_v16, %v308_v35 }
 0x22f   :  { %333 = vst.msk [vmem:[%s571_s5 + $0x38] sm:$0xff] %vm25_vm1, %v325_v34 }
 0x230   :  { %331 = vst.msk [vmem:[%s571_s5 + $0x28] sm:$0xff] %vm25_vm1, %v323_v36 }

// kernel: pangu_forward.32
= control target key start
LH: loop header
LB: loop body
LE: loop exit
PB: predicated region body
PF: predicated region fallthrough
CT: control target
= control target key end

     0   :  { %s901_s12 = smov 0   ;;  %s903_s13 = smov 0   ;;  %s1023_s0 = inlined_call_operand.vmem [shape: f32[4,32,16], index: 0, kind: input, shape index: {}]   ;;  %s1024_s1 = inlined_call_operand.vmem [shape: f32[4,32,16], index: 1, kind: input, shape index: {}]   ;;  %s1025_s2 = inlined_call_operand.vmem [shape: f32[4,32,16], index: 2, kind: input, shape index: {}]   ;;  %s1026_s3 = inlined_call_operand.vmem [shape: f32[4,32,16], index: 3, kind: output, shape index: {}]  }
   0x1   :  { %s905_s14 = smov 0  }
   0x2 LB: > { %s32_s15 = sadd.s32 1, %s872_s13  ;;  %p756_p0 = scmp.ge.s32.totalorder %s876_s14, 1  ;;  %s876_s14 = sphi %s905_s14, %s13_s14   ;;  %s872_s13 = sphi %s903_s13, %s1028_s13   ;;  %s868_s12 = sphi %s901_s12, %s1027_s12  }
   0x3   : > { %p34_p1 = scmp.ge.s32.totalorder %s32_s15, 4  ;;  %p199_p2 = scmp.lt.s32.totalorder %s876_s14, 5 }
   0x5   : > { %s1030_s15 = smov (%p34_p1, %s32_s15), 0  ;;  %p200_p3 = pnand %p756_p0, %p199_p2 }
   0x6   : > { %p250_p4 = scmp.lt.s32.totalorder (!%p200_p3), %s868_s12, 3  ;;  %vm303_vm0 = vcmask (!%p200_p3), 130048   ;;  %vm294_vm1 = vcmask (!%p200_p3), 7168   ;;  %v878_v14 = vmov (!%p200_p3), -inf   ;;  %vm390_vm2 = vcmask (!%p200_p3), 261120  }
   0x7   : > { %203 = sbr.rel (%p200_p3) target bundleno = 843 (0x34b), region = 32  ;;  %297 = vst.msk [vmem:[#allocation2 + $0x10] sm:$0xff] (!%p200_p3), %vm294_vm1, %v878_v14  ;;  %295 = vst.msk [vmem:[#allocation2] sm:$0xff] (!%p200_p3), %vm294_vm1, %v878_v14  ;;  %v879_v27 = vmov (!%p200_p3), 0   ;;  %v880_v28 = vmov (!%p200_p3), 0.0  }
   0x8   : > { %296 = vst.msk [vmem:[#allocation2 + $0x8] sm:$0xff] (!%p200_p3), %vm294_vm1, %v878_v14  ;;  %298 = vst.msk [vmem:[#allocation2 + $0x18] sm:$0xff] (!%p200_p3), %vm294_vm1, %v878_v14  ;;  %829 = vset.pattern.permute.xlu1 (!%p200_p3), %v879_v27  ;;  %828 = vset.pattern.permute.xlu0 (!%p200_p3), %v879_v27 }
   0x9   : > { %299 = vst.msk [vmem:[#allocation3] sm:$0xff] (!%p200_p3), %vm294_vm1, %v880_v28  ;;  %300 = vst.msk [vmem:[#allocation3 + $0x8] sm:$0xff] (!%p200_p3), %vm294_vm1, %v880_v28 }
   0xa   : > { %301 = vst.msk [vmem:[#allocation3 + $0x10] sm:$0xff] (!%p200_p3), %vm294_vm1, %v880_v28  ;;  %302 = vst.msk [vmem:[#allocation3 + $0x18] sm:$0xff] (!%p200_p3), %vm294_vm1, %v880_v28 }
   0xb   : > { %304 = vst.msk [vmem:[#allocation4] sm:$0xff] (!%p200_p3), %vm303_vm0, %v880_v28  ;;  %305 = vst.msk [vmem:[#allocation4 + $0x8] sm:$0xff] (!%p200_p3), %vm303_vm0, %v880_v28 }
   0xc   : > { %306 = vst.msk [vmem:[#allocation4 + $0x10] sm:$0xff] (!%p200_p3), %vm303_vm0, %v880_v28  ;;  %307 = vst.msk [vmem:[#allocation4 + $0x18] sm:$0xff] (!%p200_p3), %vm303_vm0, %v880_v28 }
   0xe   : > { %s1032_s12 = smov (!%p250_p4, %s868_s12), 3  ;;  %v963_v29 = vld [vmem:[#allocation2 + $0x10] sm:$0xff]  ;;  %v965_v30 = vld [vmem:[#allocation2] sm:$0xff] }
   0xf   : > { %s919_s16 = sshll.u32 %s1032_s12, 5  ;;  %v971_v35 = vld [vmem:[#allocation2 + $0x18] sm:$0xff]  ;;  %v387_v37 = vld [vmem:[#allocation2 + $0x8] sm:$0xff] }
  0x10   : > { %s267_s19 = scalar_lea.vmem %s1024_s1, %s919_s16  ;;  %s257_s22 = scalar_lea.vmem %s1023_s0, %s919_s16 }
  0x11   : > { %v314_v0 = vld [vmem:[%s267_s19] sm:$0xff]  ;;  %v315_v1 = vld [vmem:[%s267_s19 + $0x8] sm:$0xff]  ;;  %v316_v2 = vld [vmem:[%s267_s19 + $0x10] sm:$0xff]  ;;  %s277_s25 = scalar_lea.vmem %s1025_s2, %s919_s16  ;;  %s287_s28 = scalar_lea.vmem %s1026_s3, %s919_s16 }
  0x12   : > { %v318_v3 = vpack.c.bf16 %v315_v1, %v314_v0  ;;  %v317_v4 = vld [vmem:[%s267_s19 + $0x18] sm:$0xff]  ;;  %v308_v5 = vld [vmem:[%s257_s22] sm:$0xff]  ;;  %v309_v6 = vld [vmem:[%s257_s22 + $0x8] sm:$0xff] }
  0x13   : > { %v319_v7 = vpack.c.bf16 %v317_v4, %v316_v2  ;;  %v312_v8 = vpack.c.bf16 %v309_v6, %v308_v5  ;;  %v310_v11 = vld [vmem:[%s257_s22 + $0x10] sm:$0xff]  ;;  %v311_v12 = vld [vmem:[%s257_s22 + $0x18] sm:$0xff]  ;;  %v510_v45 = vld [vmem:[%s277_s25] sm:$0xff] }
  0x14   : > { %799 = vmatprep.subr.msk.bf16.mxu0 %vm303_vm0, %v318_v3  ;;  %v328_v9 = vsel %vm303_vm0, %v318_v3, 0  ;;  %v313_v13 = vpack.c.bf16 %v311_v12, %v310_v11  ;;  %v511_v46 = vld [vmem:[%s277_s25 + $0x8] sm:$0xff]  ;;  %v512_v48 = vld [vmem:[%s277_s25 + $0x10] sm:$0xff]  ;;  %v513_v49 = vld [vmem:[%s277_s25 + $0x18] sm:$0xff] }
  0x15   : > { %784 = vmatpush3.bf16.xpose.msra.mxu0 %v328_v9  ;;  %787 = vmatprep.mubr.msk.bf16.mxu0 %vm303_vm0, %v312_v8  ;;  %v331_v10 = vsel %vm303_vm0, %v319_v7, 0  ;;  %v514_v47 = vpack.c.bf16 %v511_v46, %v510_v45  ;;  %v515_v50 = vpack.c.bf16 %v513_v49, %v512_v48  ;;  %v454_v27 = vld [vmem:[#allocation3 + $0x18] sm:$0xff] }
  0x16   : > { %800 = vmatprep.subr.msk.bf16.mxu0 %vm303_vm0, %v319_v7  ;;  %v483_v45 = vld [vmem:[#allocation4 + $0x18] sm:$0xff] }
  0x17   : > { %791 = vmatprep.subr.bf16.mxu1 %v514_v47 }
  0x18   : > { %792 = vmatpush3.bf16.msra.mxu1 %v514_v47  ;;  %v481_v47 = vld [vmem:[#allocation4 + $0x8] sm:$0xff] }
  0x19   : > { %793 = vmatprep.subr.bf16.mxu1 %v515_v50 }
  0x1c   : > { %794 = vmatpush3.bf16.msra.mxu1 %v515_v50 }
  0x1d   : > { %786 = vmatpush3.bf16.xpose.msra.mxu0 %v331_v10 }
  0x24   : > { %788 = vmatmul.mubr.msk.bf16.vlgmr.msra.gmra.mrb[0].mxu0 %vm303_vm0, %v313_v13 }
  0xf7   : > { %v789_v15 = vpop.f32.mrb[0].mxu0 }
  0xf8   : > { %v939_v16 = vmul.f32 0.25, %v789_v15  ;;  %v367_v17 = vpop.f32.mrb[1].mxu0 }
  0xf9   : > { %v941_v18 = vmul.f32 0.25, %v367_v17  ;;  %v790_v19 = vpop.f32.mrb[2].mxu0  ;;  %v451_v17 = vld [vmem:[#allocation3] sm:$0xff] }
  0xfa   : > { %v943_v20 = vmul.f32 0.25, %v790_v19  ;;  %v370_v21 = vpop.f32.mrb[3].mxu0  ;;  %v397_v22 = vsel %vm390_vm2, %v939_v16, -inf }
  0xfb   : > { %v947_v23 = vmul.f32 0.25, %v370_v21  ;;  %398 = vmax.xlane.f32.xlu1 %v397_v22  ;;  %v391_v24 = vsel %vm390_vm2, %v941_v18, -inf  ;;  %v452_v21 = vld [vmem:[#allocation3 + $0x8] sm:$0xff] }
  0xfc   : > { %392 = vmax.xlane.f32.xlu0 %v391_v24  ;;  %v400_v25 = vsel %vm390_vm2, %v943_v20, -inf }
  0xfd   : > { %v394_v26 = vsel %vm390_vm2, %v947_v23, -inf }
  0xff   : > { %401 = vmax.xlane.f32.xlu1 %v400_v25 }
 0x100   : > { %395 = vmax.xlane.f32.xlu0 %v394_v26 }
 0x188   : > { %v399_v31 = vpop.xlane.xlu1 %398 }
 0x189   : > { %v968_v32 = vmax.f32 %v963_v29, %v399_v31  ;;  %v393_v33 = vpop.xlane.xlu0 %392 }
 0x18a   : > { %v403_v34 = vmax.f32 %v965_v30, %v393_v33 }
 0x18b   : > { %v409_v36 = vsub.f32 %v963_v29, %v968_v32  ;;  %581 = vst.msk [vmem:[#allocation2 + $0x10] sm:$0xff] %vm294_vm1, %v968_v32  ;;  %431 = vperm.xlu1 %829, %v968_v32  }
 0x18c   : > { %v407_v38 = vsub.f32 %v965_v30, %v403_v34  ;;  %579 = vst.msk [vmem:[#allocation2] sm:$0xff] %vm294_vm1, %v403_v34  ;;  %v402_v39 = vpop.xlane.xlu1 %401  ;;  %421 = vperm.xlu0 %828, %v403_v34  }
 0x18d   : > { %v406_v40 = vmax.f32 %v971_v35, %v402_v39  ;;  %v396_v41 = vpop.xlane.xlu0 %395  ;;  %v415_v11 = vmul.f32 1.442695, %v409_v36 }
 0x18e   : > { %v404_v42 = vmax.f32 %v387_v37, %v396_v41  ;;  %v411_v9 = vmul.f32 1.442695, %v407_v38 }
 0x18f   : > { %v410_v43 = vsub.f32 %v971_v35, %v406_v40  ;;  %582 = vst.msk [vmem:[#allocation2 + $0x18] sm:$0xff] %vm294_vm1, %v406_v40 }
 0x190   : > { %v408_v44 = vsub.f32 %v387_v37, %v404_v42  ;;  %580 = vst.msk [vmem:[#allocation2 + $0x8] sm:$0xff] %vm294_vm1, %v404_v42  ;;  %426 = vperm.xlu1 %829, %v404_v42  }
 0x191   : > { %v417_v12 = vmul.f32 1.442695, %v410_v43  ;;  %v482_v43 = vld [vmem:[#allocation4 + $0x10] sm:$0xff] }
 0x192   : > { %v413_v10 = vmul.f32 1.442695, %v408_v44  ;;  %v480_v44 = vld [vmem:[#allocation4] sm:$0xff] }
 0x194   : > { %436 = vperm.xlu1 %829, %v406_v40  }
 0x20a   : > { %v432_v51 = vpop.permute.xlu1 %431 }
 0x20b   : > { %v441_v52 = vsub.f32 %v939_v16, %v432_v51  ;;  %v422_v53 = vpop.permute.xlu0 %421 }
 0x20c   : > { %v439_v54 = vsub.f32 %v941_v18, %v422_v53 }
 0x20d   : > { %v447_v55 = vmul.f32 1.442695, %v441_v52 }
 0x20e   : > { %v443_v56 = vmul.f32 1.442695, %v439_v54 }
 0x20f   : > { %v427_v57 = vpop.permute.xlu1 %426 }
 0x210   : > { %830 = vpow2.f32 %v443_v56  ;;  %v440_v58 = vsub.f32 %v947_v23, %v427_v57 }
 0x211   : > { %832 = vpow2.f32 %v447_v55 }
 0x212   : > { %v445_v59 = vmul.f32 1.442695, %v440_v58 }
 0x213   : > { %v437_v60 = vpop.permute.xlu1 %436 }
 0x214   : > { %834 = vpow2.f32 %v445_v59  ;;  %v442_v61 = vsub.f32 %v943_v20, %v437_v60  ;;  %v453_v20 = vld [vmem:[#allocation3 + $0x10] sm:$0xff] }
 0x216   : > { %v449_v62 = vmul.f32 1.442695, %v442_v61 }
 0x218   : > { %836 = vpow2.f32 %v449_v62 }
 0x219   : > { %838 = vpow2.f32 %v411_v9 }
 0x21a   : > { %v831_v63 = vpop.eup %830  ;;  %840 = vpow2.f32 %v413_v10 }
 0x21b   : > { %v459_v0 = vsel %vm390_vm2, %v831_v63, 0.0  ;;  %v833_v1 = vpop.eup %832  ;;  %842 = vpow2.f32 %v415_v11 }
 0x21c   : > { %460 = vadd.xlane.f32.xlu1 %v459_v0  ;;  %v465_v4 = vsel %vm390_vm2, %v833_v1, 0.0  ;;  %844 = vpow2.f32 %v417_v12 }
 0x21e   : > { %v835_v2 = vpop.eup %834 }
 0x21f   : > { %v462_v3 = vsel %vm390_vm2, %v835_v2, 0.0  ;;  %v508_v5 = vpack.c.bf16 %v835_v2, %v831_v63 }
 0x220   : > { %463 = vadd.xlane.f32.xlu0 %v462_v3  ;;  %466 = vadd.xlane.f32.xlu1 %v465_v4 }
 0x221   : > { %795 = vmatprep.mubr.msk.bf16.mxu1 %vm390_vm2, %v508_v5 }
 0x222   : > { %v837_v6 = vpop.eup %836 }
 0x223   : > { %v468_v7 = vsel %vm390_vm2, %v837_v6, 0.0  ;;  %v509_v8 = vpack.c.bf16 %v837_v6, %v833_v1  ;;  %v839_v13 = vpop.eup %838 }
 0x224   : > { %469 = vadd.xlane.f32.xlu1 %v468_v7  ;;  %v841_v14 = vpop.eup %840  ;;  %v455_v18 = vmul.f32 %v839_v13, %v451_v17 }
 0x225   : > { %796 = vmatmul.mubr.msk.bf16.vlgmr.msra.gmra.mrb[0].mxu1 %vm390_vm2, %v509_v8  ;;  %v843_v15 = vpop.eup %842  ;;  %v456_v24 = vmul.f32 %v841_v14, %v452_v21 }
 0x226   : > { %v845_v16 = vpop.eup %844  ;;  %v457_v23 = vmul.f32 %v843_v15, %v453_v20 }
 0x227   : > { %v458_v30 = vmul.f32 %v845_v16, %v454_v27 }
 0x235   : > { %486 = vperm.xlu1 %829, %v839_v13  }
 0x236   : > { %491 = vperm.xlu0 %828, %v841_v14  }
 0x239   : > { %496 = vperm.xlu1 %829, %v843_v15  }
 0x23d   : > { %501 = vperm.xlu1 %829, %v845_v16  }
 0x2a9   : > { %v461_v19 = vpop.xlane.xlu1 %460 }
 0x2aa   : > { %v471_v22 = vadd.f32 %v461_v19, %v455_v18 }
 0x2ac   : > { %476 = vst.msk [vmem:[#allocation3] sm:$0xff] %vm294_vm1, %v471_v22 }
 0x2ad   : > { %v467_v25 = vpop.xlane.xlu1 %466  ;;  %v464_v26 = vpop.xlane.xlu0 %463 }
 0x2ae   : > { %v473_v28 = vadd.f32 %v467_v25, %v457_v23  ;;  %v472_v29 = vadd.f32 %v464_v26, %v456_v24 }
 0x2b0   : > { %478 = vst.msk [vmem:[#allocation3 + $0x10] sm:$0xff] %vm294_vm1, %v473_v28  ;;  %477 = vst.msk [vmem:[#allocation3 + $0x8] sm:$0xff] %vm294_vm1, %v472_v29 }
 0x2b1   : > { %v470_v31 = vpop.xlane.xlu1 %469 }
 0x2b2   : > { %v474_v32 = vadd.f32 %v470_v31, %v458_v30 }
 0x2b3   : > { %v586_v33 = vld [vmem:[#allocation3] sm:$0xff] }
 0x2b4   : > { %479 = vst.msk [vmem:[#allocation3 + $0x18] sm:$0xff] %vm294_vm1, %v474_v32  ;;  %846 = vrcp.f32 %v586_v33 }
 0x2b5   : > { %v487_v41 = vpop.permute.xlu1 %486  ;;  %v492_v48 = vpop.permute.xlu0 %491 }
 0x2b6   : > { %v504_v50 = vmul.f32 %v487_v41, %v480_v44  ;;  %v505_v55 = vmul.f32 %v492_v48, %v481_v47 }
 0x2b7   : > { %v588_v34 = vld [vmem:[#allocation3 + $0x10] sm:$0xff]  ;;  %v587_v35 = vld [vmem:[#allocation3 + $0x8] sm:$0xff] }
 0x2b8   : > { %848 = vrcp.f32 %v588_v34 }
 0x2b9   : > { %850 = vrcp.f32 %v587_v35  ;;  %v497_v42 = vpop.permute.xlu1 %496 }
 0x2ba   : > { %v506_v49 = vmul.f32 %v497_v42, %v482_v43 }
 0x2bb   : > { %v589_v36 = vld [vmem:[#allocation3 + $0x18] sm:$0xff] }
 0x2bc   : > { %852 = vrcp.f32 %v589_v36 }
 0x2bd   : > { %v502_v46 = vpop.permute.xlu1 %501 }
 0x2be   : > { %v847_v37 = vpop.eup %846  ;;  %v507_v52 = vmul.f32 %v502_v46, %v483_v45 }
 0x2bf   : > { %600 = vperm.xlu1 %829, %v847_v37  }
 0x2c2   : > { %v849_v38 = vpop.eup %848 }
 0x2c3   : > { %v851_v39 = vpop.eup %850  ;;  %610 = vperm.xlu1 %829, %v849_v38  }
 0x2c4   : > { %605 = vperm.xlu0 %828, %v851_v39  }
 0x2c6   : > { %v853_v40 = vpop.eup %852 }
 0x2c8   : > { %615 = vperm.xlu0 %828, %v853_v40  }
 0x2f8   : > { %v797_v51 = vpop.f32.mrb[0].mxu1 }
 0x2f9   : > { %v573_v53 = vadd.f32 %v797_v51, %v506_v49  ;;  %v556_v54 = vpop.f32.mrb[1].mxu1 }
 0x2fa   : > { %v571_v56 = vadd.f32 %v556_v54, %v504_v50  ;;  %v798_v57 = vpop.f32.mrb[2].mxu1 }
 0x2fb   : > { %577 = vst.msk [vmem:[#allocation4 + $0x10] sm:$0xff] %vm303_vm0, %v573_v53  ;;  %v574_v58 = vadd.f32 %v798_v57, %v507_v52  ;;  %v559_v59 = vpop.f32.mrb[3].mxu1 }
 0x2fc   : > { %575 = vst.msk [vmem:[#allocation4] sm:$0xff] %vm303_vm0, %v571_v56  ;;  %v572_v60 = vadd.f32 %v559_v59, %v505_v55 }
 0x2fd   : > { %578 = vst.msk [vmem:[#allocation4 + $0x18] sm:$0xff] %vm303_vm0, %v574_v58 }
 0x2fe   : > { %576 = vst.msk [vmem:[#allocation4 + $0x8] sm:$0xff] %vm303_vm0, %v572_v60 }
 0x302   : > { %v596_v0 = vld [vmem:[#allocation4 + $0x10] sm:$0xff] }
 0x303   : > { %v594_v61 = vld [vmem:[#allocation4] sm:$0xff] }
 0x304   : > { %v597_v6 = vld [vmem:[#allocation4 + $0x18] sm:$0xff] }
 0x305   : > { %v595_v3 = vld [vmem:[#allocation4 + $0x8] sm:$0xff] }
 0x33e   : > { %v601_v62 = vpop.permute.xlu1 %600 }
 0x33f   : > { %v618_v63 = vmul.f32 %v601_v62, %v594_v61 }
 0x341   : > { %622 = vst.msk [vmem:[%s287_s28] sm:$0xff] %vm303_vm0, %v618_v63 }
 0x342   : > { %v611_v1 = vpop.permute.xlu1 %610 }
 0x343   : > { %v620_v2 = vmul.f32 %v611_v1, %v596_v0  ;;  %v606_v4 = vpop.permute.xlu0 %605 }
 0x344   : > { %v619_v5 = vmul.f32 %v606_v4, %v595_v3 }
 0x345   : > { %624 = vst.msk [vmem:[%s287_s28 + $0x10] sm:$0xff] %vm303_vm0, %v620_v2 }
 0x346   : > { %623 = vst.msk [vmem:[%s287_s28 + $0x8] sm:$0xff] %vm303_vm0, %v619_v5 }
 0x347   : > { %v616_v7 = vpop.permute.xlu0 %615 }
 0x348   : > { %v621_v8 = vmul.f32 %v616_v7, %v597_v6 }
 0x34a   : > { %625 = vst.msk [vmem:[%s287_s28 + $0x18] sm:$0xff] %vm303_vm0, %v621_v8 }
 0x34b PF: > { %s13_s14 = sadd.s32 1, %s876_s14   ;;  %s1027_s12 = smov %s872_s13 }
 0x34c   : > { %p10_p5 = scmp.ge.s32.totalorder %s13_s14, 6   ;;  %s1028_s13 = smov %s1030_s15 }
 0x34e   :  { %12 = sbr.rel (!%p10_p5) target bundleno = 2 (0x2), region = 76 }

// kernel: pangu_forward.33
= control target key start
LH: loop header
LB: loop body
LE: loop exit
PB: predicated region body
PF: predicated region fallthrough
CT: control target
= control target key end

     0   :  { %vm22_vm0 = vcmask 261120   ;;  %v271_v1 = vmov 0.0   ;;  %s394_s1 = inlined_call_operand.vmem [shape: bf16[32,32], index: 1, kind: input, shape index: {}]   ;;  %s395_s0 = inlined_call_operand.vmem [shape: bf16[64,32], index: 0, kind: input, shape index: {}]   ;;  %s396_s2 = inlined_call_operand.vmem [shape: f32[1,32], index: 2, kind: input, shape index: {}]   ;;  %s397_s3 = inlined_call_operand.vmem [shape: f32[64,32], index: 3, kind: input, shape index: {}]   ;;  %s398_s4 = inlined_call_operand.vmem [shape: f32[64,32], index: 4, kind: output, shape index: {}]  }
   0x1   :  { %v265_v0 = vld [vmem:[%s394_s1] sm:$0xff]   ;;  %25 = vst.msk [vmem:[#allocation2 + $0x10] sm:$0xff] %vm22_vm0, %v271_v1  ;;  %23 = vst.msk [vmem:[#allocation2] sm:$0xff] %vm22_vm0, %v271_v1  ;;  %v266_v2 = vld [vmem:[%s394_s1 + $0x8] sm:$0xff]  }
   0x2   :  { %24 = vst.msk [vmem:[#allocation2 + $0x8] sm:$0xff] %vm22_vm0, %v271_v1  ;;  %26 = vst.msk [vmem:[#allocation2 + $0x18] sm:$0xff] %vm22_vm0, %v271_v1  ;;  %248 = vmatprep.subr.bf16.mxu0 %v265_v0  ;;  %260 = vmatprep.subr.bf16.mxu1 %v265_v0  ;;  %v267_v3 = vld [vmem:[%s395_s0] sm:$0xff]   ;;  %v268_v4 = vld [vmem:[%s395_s0 + $0x10] sm:$0xff]  }
   0x3   :  { %27 = vst.msk [vmem:[#allocation2 + $0x20] sm:$0xff] %vm22_vm0, %v271_v1  ;;  %28 = vst.msk [vmem:[#allocation2 + $0x28] sm:$0xff] %vm22_vm0, %v271_v1  ;;  %249 = vmatpush3.bf16.msra.mxu0 %v265_v0  ;;  %262 = vmatpush3.bf16.msra.mxu1 %v265_v0  ;;  %v269_v5 = vld [vmem:[%s395_s0 + $0x8] sm:$0xff]   ;;  %v270_v6 = vld [vmem:[%s395_s0 + $0x18] sm:$0xff]  }
   0x4   :  { %29 = vst.msk [vmem:[#allocation2 + $0x30] sm:$0xff] %vm22_vm0, %v271_v1  ;;  %30 = vst.msk [vmem:[#allocation2 + $0x38] sm:$0xff] %vm22_vm0, %v271_v1  ;;  %250 = vmatprep.subr.bf16.mxu0 %v266_v2  ;;  %261 = vmatprep.subr.bf16.mxu1 %v266_v2  ;;  %v241_v31 = vld [vmem:[%s396_s2] ss:$0 sm:$0xff]  ;;  %v205_v32 = vld [vmem:[%s397_s3 + $0x10] sm:$0xff] }
   0x5   :  { %252 = vmatprep.mubr.msk.bf16.mxu0 %vm22_vm0, %v267_v3  ;;  %256 = vmatprep.mubr.msk.bf16.mxu1 %vm22_vm0, %v268_v4  ;;  %v209_v33 = vld [vmem:[%s397_s3 + $0x30] sm:$0xff]  ;;  %v203_v34 = vld [vmem:[%s397_s3] sm:$0xff]  ;;  %v206_v38 = vld [vmem:[%s397_s3 + $0x18] sm:$0xff] }
   0x6   :  { %v207_v35 = vld [vmem:[%s397_s3 + $0x20] sm:$0xff]  ;;  %v210_v43 = vld [vmem:[%s397_s3 + $0x38] sm:$0xff]  ;;  %v204_v48 = vld [vmem:[%s397_s3 + $0x8] sm:$0xff] }
   0x7   :  { %251 = vmatpush3.bf16.msra.mxu0 %v266_v2  ;;  %263 = vmatpush3.bf16.msra.mxu1 %v266_v2  ;;  %v208_v55 = vld [vmem:[%s397_s3 + $0x28] sm:$0xff] }
   0x8   :  { %v41_v7 = vld [vmem:[#allocation2 + $0x10] sm:$0xff]  ;;  %v39_v9 = vld [vmem:[#allocation2] sm:$0xff] }
   0x9   :  { %v42_v13 = vld [vmem:[#allocation2 + $0x18] sm:$0xff]  ;;  %v40_v19 = vld [vmem:[#allocation2 + $0x8] sm:$0xff] }
   0xa   :  { %253 = vmatmul.mubr.msk.bf16.vlgmr.msra.gmra.mrb[0].mxu0 %vm22_vm0, %v269_v5  ;;  %257 = vmatmul.mubr.msk.bf16.vlgmr.msra.gmra.mrb[0].mxu1 %vm22_vm0, %v270_v6  ;;  %v43_v10 = vld [vmem:[#allocation2 + $0x20] sm:$0xff]  ;;  %v44_v20 = vld [vmem:[#allocation2 + $0x28] sm:$0xff] }
   0xb   :  { %v45_v8 = vld [vmem:[#allocation2 + $0x30] sm:$0xff]  ;;  %v46_v14 = vld [vmem:[#allocation2 + $0x38] sm:$0xff] }
  0xdd   :  { %v254_v11 = vpop.f32.mrb[0].mxu0  ;;  %v258_v12 = vpop.f32.mrb[0].mxu1 }
  0xde   :  { %v163_v15 = vadd.f32 %v254_v11, %v41_v7  ;;  %v167_v16 = vadd.f32 %v258_v12, %v45_v8  ;;  %v130_v17 = vpop.f32.mrb[1].mxu0  ;;  %v146_v18 = vpop.f32.mrb[1].mxu1 }
  0xdf   :  { %v161_v21 = vadd.f32 %v130_v17, %v39_v9  ;;  %v165_v22 = vadd.f32 %v146_v18, %v43_v10  ;;  %v255_v23 = vpop.f32.mrb[2].mxu0  ;;  %v259_v24 = vpop.f32.mrb[2].mxu1 }
  0xe0   :  { %171 = vst.msk [vmem:[#allocation2 + $0x10] sm:$0xff] %vm22_vm0, %v163_v15  ;;  %175 = vst.msk [vmem:[#allocation2 + $0x30] sm:$0xff] %vm22_vm0, %v167_v16  ;;  %v164_v25 = vadd.f32 %v255_v23, %v42_v13  ;;  %v168_v26 = vadd.f32 %v259_v24, %v46_v14  ;;  %v133_v27 = vpop.f32.mrb[3].mxu0  ;;  %v149_v28 = vpop.f32.mrb[3].mxu1 }
  0xe1   :  { %169 = vst.msk [vmem:[#allocation2] sm:$0xff] %vm22_vm0, %v161_v21  ;;  %173 = vst.msk [vmem:[#allocation2 + $0x20] sm:$0xff] %vm22_vm0, %v165_v22  ;;  %v162_v29 = vadd.f32 %v133_v27, %v40_v19  ;;  %v166_v30 = vadd.f32 %v149_v28, %v44_v20 }
  0xe2   :  { %172 = vst.msk [vmem:[#allocation2 + $0x18] sm:$0xff] %vm22_vm0, %v164_v25  ;;  %176 = vst.msk [vmem:[#allocation2 + $0x38] sm:$0xff] %vm22_vm0, %v168_v26 }
  0xe3   :  { %170 = vst.msk [vmem:[#allocation2 + $0x8] sm:$0xff] %vm22_vm0, %v162_v29  ;;  %174 = vst.msk [vmem:[#allocation2 + $0x28] sm:$0xff] %vm22_vm0, %v166_v30 }
  0xe7   :  { %v182_v36 = vld [vmem:[#allocation2 + $0x10] sm:$0xff] }
  0xe8   :  { %v186_v37 = vld [vmem:[#allocation2 + $0x30] sm:$0xff]  ;;  %v197_v39 = vadd.f32 %v241_v31, %v182_v36  ;;  %v180_v41 = vld [vmem:[#allocation2] sm:$0xff] }
  0xe9   :  { %v201_v40 = vadd.f32 %v241_v31, %v186_v37  ;;  %v184_v42 = vld [vmem:[#allocation2 + $0x20] sm:$0xff]  ;;  %v195_v44 = vadd.f32 %v241_v31, %v180_v41  ;;  %v183_v46 = vld [vmem:[#allocation2 + $0x18] sm:$0xff] }
  0xea   :  { %v199_v45 = vadd.f32 %v241_v31, %v184_v42  ;;  %v187_v47 = vld [vmem:[#allocation2 + $0x38] sm:$0xff]  ;;  %v213_v49 = vadd.f32 %v205_v32, %v197_v39  ;;  %v198_v51 = vadd.f32 %v241_v31, %v183_v46  ;;  %v181_v53 = vld [vmem:[#allocation2 + $0x8] sm:$0xff] }
  0xeb   :  { %v217_v50 = vadd.f32 %v209_v33, %v201_v40  ;;  %v202_v52 = vadd.f32 %v241_v31, %v187_v47  ;;  %v185_v54 = vld [vmem:[#allocation2 + $0x28] sm:$0xff]  ;;  %v211_v56 = vadd.f32 %v203_v34, %v195_v44  ;;  %v196_v58 = vadd.f32 %v241_v31, %v181_v53 }
  0xec   :  { %v215_v57 = vadd.f32 %v207_v35, %v199_v45  ;;  %v200_v59 = vadd.f32 %v241_v31, %v185_v54  ;;  %221 = vst.msk [vmem:[%s398_s4 + $0x10] sm:$0xff] %vm22_vm0, %v213_v49  ;;  %v214_v60 = vadd.f32 %v206_v38, %v198_v51 }
  0xed   :  { %225 = vst.msk [vmem:[%s398_s4 + $0x30] sm:$0xff] %vm22_vm0, %v217_v50  ;;  %v218_v61 = vadd.f32 %v210_v43, %v202_v52  ;;  %219 = vst.msk [vmem:[%s398_s4] sm:$0xff] %vm22_vm0, %v211_v56  ;;  %v212_v62 = vadd.f32 %v204_v48, %v196_v58 }
  0xee   :  { %223 = vst.msk [vmem:[%s398_s4 + $0x20] sm:$0xff] %vm22_vm0, %v215_v57  ;;  %v216_v63 = vadd.f32 %v208_v55, %v200_v59  ;;  %222 = vst.msk [vmem:[%s398_s4 + $0x18] sm:$0xff] %vm22_vm0, %v214_v60 }
  0xef   :  { %226 = vst.msk [vmem:[%s398_s4 + $0x38] sm:$0xff] %vm22_vm0, %v218_v61  ;;  %220 = vst.msk [vmem:[%s398_s4 + $0x8] sm:$0xff] %vm22_vm0, %v212_v62 }
  0xf0   :  { %224 = vst.msk [vmem:[%s398_s4 + $0x28] sm:$0xff] %vm22_vm0, %v216_v63 }

// kernel: pangu_forward.34
= control target key start
LH: loop header
LB: loop body
LE: loop exit
PB: predicated region body
PF: predicated region fallthrough
CT: control target
= control target key end

     0   :  { %vm41_vm0 = vcmask 261120   ;;  %s682_s0 = inlined_call_operand.vmem [shape: f32[64,32], index: 0, kind: input, shape index: {}]   ;;  %s683_s1 = inlined_call_operand.vmem [shape: bf16[32,128], index: 1, kind: input, shape index: {}]   ;;  %s684_s3 = inlined_call_operand.vmem [shape: f32[1,32], index: 3, kind: input, shape index: {}]   ;;  %s685_s4 = inlined_call_operand.vmem [shape: f32[1,32], index: 4, kind: input, shape index: {}]   ;;  %s686_s2 = inlined_call_operand.vmem [shape: f32[1,128], index: 2, kind: input, shape index: {}]   ;;  %s687_s5 = inlined_call_operand.vmem [shape: f32[64,128], index: 5, kind: output, shape index: {}]  }
   0x1   :  { %v33_v0 = vld [vmem:[%s682_s0] sm:$0xff]  ;;  %v34_v2 = vld [vmem:[%s682_s0 + $0x8] sm:$0xff]  ;;  %v35_v8 = vld [vmem:[%s682_s0 + $0x10] sm:$0xff] }
   0x2   :  { %v37_v1 = vld [vmem:[%s682_s0 + $0x20] sm:$0xff]  ;;  %v42_v3 = vsel %vm41_vm0, %v33_v0, 0.0  ;;  %v38_v5 = vld [vmem:[%s682_s0 + $0x28] sm:$0xff]  ;;  %v45_v6 = vsel %vm41_vm0, %v34_v2, 0.0  ;;  %v36_v9 = vld [vmem:[%s682_s0 + $0x18] sm:$0xff]  ;;  %v48_v10 = vsel %vm41_vm0, %v35_v8, 0.0 }
   0x3   :  { %v54_v4 = vsel %vm41_vm0, %v37_v1, 0.0  ;;  %43 = vadd.xlane.f32.xlu0 %v42_v3  ;;  %v57_v7 = vsel %vm41_vm0, %v38_v5, 0.0  ;;  %v51_v11 = vsel %vm41_vm0, %v36_v9, 0.0  ;;  %v39_v12 = vld [vmem:[%s682_s0 + $0x30] sm:$0xff]  ;;  %v40_v13 = vld [vmem:[%s682_s0 + $0x38] sm:$0xff]  ;;  %v439_v56 = vld [vmem:[%s683_s1] sm:$0xff]  }
   0x4   :  { %55 = vadd.xlane.f32.xlu1 %v54_v4  ;;  %v60_v14 = vsel %vm41_vm0, %v39_v12, 0.0  ;;  %v63_v15 = vsel %vm41_vm0, %v40_v13, 0.0  ;;  %423 = vmatprep.subr.bf16.mxu0 %v439_v56  ;;  %v440_v57 = vld [vmem:[%s683_s1 + $0x8] sm:$0xff]  }
   0x5   :  { %435 = vmatprep.subr.bf16.mxu1 %v439_v56  ;;  %424 = vmatpush3.bf16.msra.mxu0 %v439_v56 }
   0x6   :  { %437 = vmatpush3.bf16.msra.mxu1 %v439_v56  ;;  %425 = vmatprep.subr.bf16.mxu0 %v440_v57 }
   0x7   :  { %46 = vadd.xlane.f32.xlu0 %v45_v6  ;;  %436 = vmatprep.subr.bf16.mxu1 %v440_v57 }
   0x8   :  { %58 = vadd.xlane.f32.xlu1 %v57_v7 }
   0x9   :  { %426 = vmatpush3.bf16.msra.mxu0 %v440_v57 }
   0xa   :  { %438 = vmatpush3.bf16.msra.mxu1 %v440_v57 }
   0xb   :  { %49 = vadd.xlane.f32.xlu0 %v48_v10 }
   0xc   :  { %52 = vadd.xlane.f32.xlu1 %v51_v11 }
   0xf   :  { %61 = vadd.xlane.f32.xlu0 %v60_v14 }
  0x10   :  { %64 = vadd.xlane.f32.xlu1 %v63_v15 }
  0x90   :  { %v44_v16 = vpop.xlane.xlu0 %43 }
  0x91   :  { %v56_v17 = vpop.xlane.xlu1 %55  ;;  %v67_v18 = vmul.f32 0.03125, %v44_v16 }
  0x92   :  { %v71_v19 = vmul.f32 0.03125, %v56_v17 }
  0x93   :  { %v535_v20 = vsub.f32 %v33_v0, %v67_v18 }
  0x94   :  { %v537_v21 = vsub.f32 %v37_v1, %v71_v19  ;;  %v47_v22 = vpop.xlane.xlu0 %46  ;;  %v408_v19 = vld [vmem:[%s684_s3] ss:$0 sm:$0xff] }
  0x95   :  { %v59_v23 = vpop.xlane.xlu1 %58  ;;  %v68_v24 = vmul.f32 0.03125, %v47_v22  ;;  %v83_v26 = vmul.f32 %v535_v20, %v535_v20 }
  0x96   :  { %v72_v25 = vmul.f32 0.03125, %v59_v23  ;;  %v87_v27 = vmul.f32 %v537_v21, %v537_v21 }
  0x97   :  { %v543_v28 = vsub.f32 %v34_v2, %v68_v24  ;;  %v91_v30 = vsel %vm41_vm0, %v83_v26, 0.0 }
  0x98   :  { %v545_v29 = vsub.f32 %v38_v5, %v72_v25  ;;  %92 = vadd.xlane.f32.xlu0 %v91_v30  ;;  %v50_v31 = vpop.xlane.xlu0 %49  ;;  %v103_v33 = vsel %vm41_vm0, %v87_v27, 0.0  ;;  %v409_v27 = vld [vmem:[%s685_s4] ss:$0 sm:$0xff] }
  0x99   :  { %v53_v32 = vpop.xlane.xlu1 %52  ;;  %v69_v34 = vmul.f32 0.03125, %v50_v31  ;;  %v84_v36 = vmul.f32 %v543_v28, %v543_v28 }
  0x9a   :  { %v70_v35 = vmul.f32 0.03125, %v53_v32  ;;  %v88_v37 = vmul.f32 %v545_v29, %v545_v29 }
  0x9b   :  { %v553_v38 = vsub.f32 %v35_v8, %v69_v34  ;;  %v94_v40 = vsel %vm41_vm0, %v84_v36, 0.0 }
  0x9c   :  { %v555_v39 = vsub.f32 %v36_v9, %v70_v35  ;;  %104 = vadd.xlane.f32.xlu0 %v103_v33  ;;  %95 = vadd.xlane.f32.xlu1 %v94_v40  ;;  %v62_v41 = vpop.xlane.xlu0 %61  ;;  %v106_v43 = vsel %vm41_vm0, %v88_v37, 0.0 }
  0x9d   :  { %v65_v42 = vpop.xlane.xlu1 %64  ;;  %v73_v44 = vmul.f32 0.03125, %v62_v41  ;;  %v85_v46 = vmul.f32 %v553_v38, %v553_v38 }
  0x9e   :  { %v74_v45 = vmul.f32 0.03125, %v65_v42  ;;  %v86_v47 = vmul.f32 %v555_v39, %v555_v39 }
  0x9f   :  { %v563_v48 = vsub.f32 %v39_v12, %v73_v44  ;;  %v97_v50 = vsel %vm41_vm0, %v85_v46, 0.0 }
  0xa0   :  { %v565_v49 = vsub.f32 %v40_v13, %v74_v45  ;;  %107 = vadd.xlane.f32.xlu1 %v106_v43  ;;  %98 = vadd.xlane.f32.xlu0 %v97_v50  ;;  %v100_v51 = vsel %vm41_vm0, %v86_v47, 0.0 }
  0xa1   :  { %v89_v52 = vmul.f32 %v563_v48, %v563_v48 }
  0xa2   :  { %v90_v53 = vmul.f32 %v565_v49, %v565_v49 }
  0xa3   :  { %v109_v54 = vsel %vm41_vm0, %v89_v52, 0.0 }
  0xa4   :  { %101 = vadd.xlane.f32.xlu1 %v100_v51  ;;  %110 = vadd.xlane.f32.xlu0 %v109_v54  ;;  %v112_v55 = vsel %vm41_vm0, %v90_v53, 0.0 }
  0xa8   :  { %113 = vadd.xlane.f32.xlu1 %v112_v55 }
 0x125   :  { %v93_v58 = vpop.xlane.xlu0 %92 }
 0x126   :  { %v115_v59 = vmul.f32 0.03125, %v93_v58 }
 0x128   :  { %v123_v60 = vadd.f32 1e-05, %v115_v59 }
 0x129   :  { %v96_v61 = vpop.xlane.xlu1 %95  ;;  %v105_v62 = vpop.xlane.xlu0 %104 }
 0x12a   :  { %441 = vrsqrt.f32 %v123_v60  ;;  %v116_v63 = vmul.f32 0.03125, %v96_v61  ;;  %v119_v0 = vmul.f32 0.03125, %v105_v62 }
 0x12c   :  { %v124_v1 = vadd.f32 1e-05, %v116_v63  ;;  %v127_v2 = vadd.f32 1e-05, %v119_v0 }
 0x12d   :  { %v108_v3 = vpop.xlane.xlu1 %107  ;;  %v99_v4 = vpop.xlane.xlu0 %98 }
 0x12e   :  { %443 = vrsqrt.f32 %v124_v1  ;;  %v120_v5 = vmul.f32 0.03125, %v108_v3  ;;  %v117_v6 = vmul.f32 0.03125, %v99_v4 }
 0x12f   :  { %445 = vrsqrt.f32 %v127_v2 }
 0x130   :  { %v128_v7 = vadd.f32 1e-05, %v120_v5  ;;  %v125_v8 = vadd.f32 1e-05, %v117_v6 }
 0x131   :  { %v102_v9 = vpop.xlane.xlu1 %101  ;;  %v111_v10 = vpop.xlane.xlu0 %110 }
 0x132   :  { %447 = vrsqrt.f32 %v128_v7  ;;  %v118_v11 = vmul.f32 0.03125, %v102_v9  ;;  %v121_v12 = vmul.f32 0.03125, %v111_v10 }
 0x133   :  { %449 = vrsqrt.f32 %v125_v8 }
 0x134   :  { %v442_v13 = vpop.eup %441  ;;  %v126_v14 = vadd.f32 1e-05, %v118_v11  ;;  %v129_v15 = vadd.f32 1e-05, %v121_v12 }
 0x135   :  { %v114_v16 = vpop.xlane.xlu1 %113  ;;  %v139_v17 = vmul.f32 %v442_v13, %v535_v20 }
 0x136   :  { %451 = vrsqrt.f32 %v126_v14  ;;  %v122_v18 = vmul.f32 0.03125, %v114_v16 }
 0x137   :  { %453 = vrsqrt.f32 %v129_v15  ;;  %v154_v26 = vmul.f32 %v408_v19, %v139_v17 }
 0x138   :  { %v444_v22 = vpop.eup %443  ;;  %v130_v23 = vadd.f32 1e-05, %v122_v18 }
 0x139   :  { %v446_v24 = vpop.eup %445  ;;  %v140_v25 = vmul.f32 %v444_v22, %v543_v28  ;;  %v169_v33 = vadd.f32 %v409_v27, %v154_v26 }
 0x13a   :  { %455 = vrsqrt.f32 %v130_v23  ;;  %v143_v20 = vmul.f32 %v446_v24, %v537_v21 }
 0x13b   :  { %v155_v30 = vmul.f32 %v408_v19, %v140_v25 }
 0x13c   :  { %v448_v31 = vpop.eup %447  ;;  %v158_v36 = vmul.f32 %v408_v19, %v143_v20 }
 0x13d   :  { %v450_v32 = vpop.eup %449  ;;  %v170_v34 = vadd.f32 %v409_v27, %v155_v30  ;;  %v144_v35 = vmul.f32 %v448_v31, %v545_v29 }
 0x13e   :  { %v141_v37 = vmul.f32 %v450_v32, %v553_v38  ;;  %v173_v44 = vadd.f32 %v409_v27, %v158_v36 }
 0x13f   :  { %v177_v40 = vpack.c.bf16 %v170_v34, %v169_v33  ;;  %v159_v28 = vmul.f32 %v408_v19, %v144_v35 }
 0x140   :  { %v452_v41 = vpop.eup %451  ;;  %v156_v45 = vmul.f32 %v408_v19, %v141_v37 }
 0x141   :  { %v454_v42 = vpop.eup %453  ;;  %v142_v43 = vmul.f32 %v452_v41, %v555_v39  ;;  %427 = vmatprep.mubr.msk.bf16.mxu0 %vm41_vm0, %v177_v40  ;;  %v174_v21 = vadd.f32 %v409_v27, %v159_v28 }
 0x142   :  { %v145_v46 = vmul.f32 %v454_v42, %v563_v48  ;;  %v171_v38 = vadd.f32 %v409_v27, %v156_v45  ;;  %v416_v48 = vld [vmem:[%s686_s2] ss:$0 sm:$0xff] }
 0x143   :  { %v179_v47 = vpack.c.bf16 %v174_v21, %v173_v44  ;;  %v157_v50 = vmul.f32 %v408_v19, %v142_v43 }
 0x144   :  { %v456_v51 = vpop.eup %455  ;;  %v160_v53 = vmul.f32 %v408_v19, %v145_v46 }
 0x145   :  { %v146_v29 = vmul.f32 %v456_v51, %v565_v49  ;;  %431 = vmatprep.mubr.msk.bf16.mxu1 %vm41_vm0, %v179_v47  ;;  %v172_v52 = vadd.f32 %v409_v27, %v157_v50 }
 0x146   :  { %v175_v39 = vadd.f32 %v409_v27, %v160_v53 }
 0x147   :  { %v178_v54 = vpack.c.bf16 %v172_v52, %v171_v38  ;;  %v161_v55 = vmul.f32 %v408_v19, %v146_v29 }
 0x149   :  { %428 = vmatmul.mubr.msk.bf16.vlgmr.msra.gmra.mrb[0].mxu0 %vm41_vm0, %v178_v54  ;;  %v176_v56 = vadd.f32 %v409_v27, %v161_v55 }
 0x14b   :  { %v180_v57 = vpack.c.bf16 %v176_v56, %v175_v39 }
 0x14d   :  { %432 = vmatmul.mubr.msk.bf16.vlgmr.msra.gmra.mrb[0].mxu1 %vm41_vm0, %v180_v57 }
 0x21c   :  { %v429_v58 = vpop.f32.mrb[0].mxu0 }
 0x21d   :  { %v602_v49 = vadd.f32 %v429_v58, %v416_v48  ;;  %v251_v59 = vpop.f32.mrb[1].mxu0 }
 0x21e   :  { %v604_v60 = vadd.f32 %v416_v48, %v251_v59  ;;  %v430_v61 = vpop.f32.mrb[2].mxu0 }
 0x21f   :  { %v326_v62 = vmul.f32 %v602_v49, %v602_v49  ;;  %v608_v63 = vadd.f32 %v430_v61, %v416_v48  ;;  %v254_v0 = vpop.f32.mrb[3].mxu0 }
 0x220   :  { %v324_v1 = vmul.f32 %v604_v60, %v604_v60  ;;  %v612_v2 = vadd.f32 %v416_v48, %v254_v0  ;;  %v433_v3 = vpop.f32.mrb[0].mxu1 }
 0x221   :  { %v334_v4 = vmul.f32 %v326_v62, %v602_v49  ;;  %v327_v5 = vmul.f32 %v608_v63, %v608_v63  ;;  %v617_v6 = vadd.f32 %v433_v3, %v416_v48  ;;  %v267_v7 = vpop.f32.mrb[1].mxu1 }
 0x222   :  { %v332_v8 = vmul.f32 %v324_v1, %v604_v60  ;;  %v325_v9 = vmul.f32 %v612_v2, %v612_v2  ;;  %v622_v10 = vadd.f32 %v416_v48, %v267_v7  ;;  %v434_v11 = vpop.f32.mrb[2].mxu1 }
 0x223   :  { %v342_v12 = vmul.f32 0.044715, %v334_v4  ;;  %v335_v13 = vmul.f32 %v327_v5, %v608_v63  ;;  %v330_v14 = vmul.f32 %v617_v6, %v617_v6  ;;  %v627_v15 = vadd.f32 %v434_v11, %v416_v48  ;;  %v270_v16 = vpop.f32.mrb[3].mxu1 }
 0x224   :  { %v340_v17 = vmul.f32 0.044715, %v332_v8  ;;  %v333_v18 = vmul.f32 %v325_v9, %v612_v2  ;;  %v328_v19 = vmul.f32 %v622_v10, %v622_v10  ;;  %v632_v22 = vadd.f32 %v416_v48, %v270_v16 }
 0x225   :  { %v350_v23 = vadd.f32 %v342_v12, %v602_v49  ;;  %v343_v24 = vmul.f32 0.044715, %v335_v13  ;;  %v338_v25 = vmul.f32 %v330_v14, %v617_v6  ;;  %v331_v26 = vmul.f32 %v627_v15, %v627_v15 }
 0x226   :  { %v348_v27 = vadd.f32 %v340_v17, %v604_v60  ;;  %v341_v20 = vmul.f32 0.044715, %v333_v18  ;;  %v336_v30 = vmul.f32 %v328_v19, %v622_v10  ;;  %v329_v31 = vmul.f32 %v632_v22, %v632_v22 }
 0x227   :  { %v358_v32 = vmul.f32 0.7978846, %v350_v23  ;;  %v351_v33 = vadd.f32 %v343_v24, %v608_v63  ;;  %v346_v34 = vmul.f32 0.044715, %v338_v25  ;;  %v339_v35 = vmul.f32 %v331_v26, %v627_v15 }
 0x228   :  { %v356_v36 = vmul.f32 0.7978846, %v348_v27  ;;  %v349_v37 = vadd.f32 %v341_v20, %v612_v2  ;;  %v344_v40 = vmul.f32 0.044715, %v336_v30  ;;  %v337_v28 = vmul.f32 %v329_v31, %v632_v22 }
 0x229   :  { %457 = vtanh.f32 %v358_v32  ;;  %v359_v41 = vmul.f32 0.7978846, %v351_v33  ;;  %v354_v42 = vadd.f32 %v346_v34, %v617_v6  ;;  %v347_v43 = vmul.f32 0.044715, %v339_v35 }
 0x22a   :  { %459 = vtanh.f32 %v356_v36  ;;  %v357_v44 = vmul.f32 0.7978846, %v349_v37  ;;  %v352_v21 = vadd.f32 %v344_v40, %v622_v10  ;;  %v345_v45 = vmul.f32 0.044715, %v337_v28 }
 0x22b   :  { %461 = vtanh.f32 %v359_v41  ;;  %v362_v46 = vmul.f32 0.7978846, %v354_v42  ;;  %v355_v47 = vadd.f32 %v347_v43, %v627_v15 }
 0x22c   :  { %463 = vtanh.f32 %v357_v44  ;;  %v360_v50 = vmul.f32 0.7978846, %v352_v21  ;;  %v353_v51 = vadd.f32 %v345_v45, %v632_v22 }
 0x22d   :  { %465 = vtanh.f32 %v362_v46  ;;  %v363_v29 = vmul.f32 0.7978846, %v355_v47 }
 0x22e   :  { %467 = vtanh.f32 %v360_v50  ;;  %v361_v38 = vmul.f32 0.7978846, %v353_v51 }
 0x22f   :  { %469 = vtanh.f32 %v363_v29 }
 0x230   :  { %471 = vtanh.f32 %v361_v38 }
 0x233   :  { %v458_v52 = vpop.eup %457 }
 0x234   :  { %v460_v53 = vpop.eup %459  ;;  %v374_v54 = vadd.f32 1.0, %v458_v52 }
 0x235   :  { %v462_v55 = vpop.eup %461  ;;  %v372_v39 = vadd.f32 1.0, %v460_v53 }
 0x236   :  { %v464_v56 = vpop.eup %463  ;;  %v382_v57 = vmul.f32 0.5, %v374_v54  ;;  %v375_v48 = vadd.f32 1.0, %v462_v55 }
 0x237   :  { %v466_v58 = vpop.eup %465  ;;  %v380_v59 = vmul.f32 0.5, %v372_v39  ;;  %v373_v61 = vadd.f32 1.0, %v464_v56 }
 0x238   :  { %v468_v62 = vpop.eup %467  ;;  %v390_v0 = vmul.f32 %v382_v57, %v602_v49  ;;  %v383_v1 = vmul.f32 0.5, %v375_v48  ;;  %v378_v3 = vadd.f32 1.0, %v466_v58 }
 0x239   :  { %v470_v4 = vpop.eup %469  ;;  %v388_v5 = vmul.f32 %v380_v59, %v604_v60  ;;  %v381_v7 = vmul.f32 0.5, %v373_v61  ;;  %v376_v8 = vadd.f32 1.0, %v468_v62 }
 0x23a   :  { %v472_v9 = vpop.eup %471  ;;  %398 = vst [vmem:[%s687_s5 + $0x10] sm:$0xff] %v390_v0  ;;  %v391_v11 = vmul.f32 %v383_v1, %v608_v63  ;;  %v386_v12 = vmul.f32 0.5, %v378_v3  ;;  %v379_v13 = vadd.f32 1.0, %v470_v4 }
 0x23b   :  { %396 = vst [vmem:[%s687_s5] sm:$0xff] %v388_v5  ;;  %v389_v49 = vmul.f32 %v381_v7, %v612_v2  ;;  %v384_v14 = vmul.f32 0.5, %v376_v8  ;;  %v377_v16 = vadd.f32 1.0, %v472_v9 }
 0x23c   :  { %399 = vst [vmem:[%s687_s5 + $0x18] sm:$0xff] %v391_v11  ;;  %v394_v60 = vmul.f32 %v386_v12, %v617_v6  ;;  %v387_v17 = vmul.f32 0.5, %v379_v13 }
 0x23d   :  { %397 = vst [vmem:[%s687_s5 + $0x8] sm:$0xff] %v389_v49  ;;  %v392_v63 = vmul.f32 %v384_v14, %v622_v10  ;;  %v385_v18 = vmul.f32 0.5, %v377_v16 }
 0x23e   :  { %402 = vst [vmem:[%s687_s5 + $0x30] sm:$0xff] %v394_v60  ;;  %v395_v2 = vmul.f32 %v387_v17, %v627_v15 }
 0x23f   :  { %400 = vst [vmem:[%s687_s5 + $0x20] sm:$0xff] %v392_v63  ;;  %v393_v6 = vmul.f32 %v385_v18, %v632_v22 }
 0x240   :  { %403 = vst [vmem:[%s687_s5 + $0x38] sm:$0xff] %v395_v2 }
 0x241   :  { %401 = vst [vmem:[%s687_s5 + $0x28] sm:$0xff] %v393_v6 }

// kernel: pangu_forward.36
= control target key start
LH: loop header
LB: loop body
LE: loop exit
PB: predicated region body
PF: predicated region fallthrough
CT: control target
= control target key end

     0   :  { %v258_v2 = vmov 0.0   ;;  %vm259_vm0 = vmmov 0   ;;  %vm25_vm1 = vcmask 523264   ;;  %s341_s0 = inlined_call_operand.vmem [shape: f32[16,128], index: 0, kind: input, shape index: {}]   ;;  %s342_s1 = inlined_call_operand.vmem [shape: bf16[128,64], index: 1, kind: input, shape index: {}]   ;;  %s343_s3 = inlined_call_operand.vmem [shape: f32[1,128], index: 3, kind: input, shape index: {}]   ;;  %s344_s4 = inlined_call_operand.vmem [shape: f32[1,128], index: 4, kind: input, shape index: {}]   ;;  %s345_s2 = inlined_call_operand.vmem [shape: f32[1,64], index: 2, kind: input, shape index: {}]   ;;  %s346_s5 = inlined_call_operand.vmem [shape: f32[16,64], index: 5, kind: output, shape index: {}]  }
   0x1   :  { %v28_v0 = vld [vmem:[%s341_s0] sm:$0xff]  ;;  %v29_v1 = vld [vmem:[%s341_s0 + $0x8] sm:$0xff]  ;;  %224 = vmatprep.subr.bf16.mxu0 %v258_v2  ;;  %v248_v13 = vld [vmem:[%s342_s1 + $0x10] sm:$0xff]   ;;  %240 = vmatprep.mubr.msk.bf16.mxu0 %vm259_vm0, %v258_v2  ;;  %26 = vst.msk [vmem:[#allocation2] sm:$0xff] %vm25_vm1, %v258_v2 }
   0x2   :  { %30 = vadd.xlane.f32.xlu0 %v28_v0  ;;  %v246_v3 = vld [vmem:[%s342_s1] sm:$0xff]   ;;  %v247_v12 = vld [vmem:[%s342_s1 + $0x8] sm:$0xff]   ;;  %v249_v14 = vld [vmem:[%s342_s1 + $0x18] sm:$0xff]   ;;  %27 = vst.msk [vmem:[#allocation2 + $0x8] sm:$0xff] %vm25_vm1, %v258_v2 }
   0x3   :  { %225 = vmatpush3.bf16.msra.mxu0 %v246_v3  ;;  %v250_v15 = vld [vmem:[%s342_s1 + $0x20] sm:$0xff]   ;;  %v251_v16 = vld [vmem:[%s342_s1 + $0x28] sm:$0xff]   ;;  %v252_v17 = vld [vmem:[%s342_s1 + $0x30] sm:$0xff]  }
   0x4   :  { %226 = vmatprep.subr.bf16.mxu0 %v258_v2  ;;  %v253_v18 = vld [vmem:[%s342_s1 + $0x38] sm:$0xff]   ;;  %v204_v27 = vld [vmem:[%s343_s3] ss:$0 sm:$0xff] }
   0x5   :  { %v205_v31 = vld [vmem:[%s344_s4] ss:$0 sm:$0xff] }
   0x6   :  { %32 = vadd.xlane.f32.xlu0 %v29_v1  ;;  %v214_v44 = vld [vmem:[%s345_s2] ss:$0 sm:$0xff] }
   0x7   :  { %227 = vmatpush3.bf16.msra.mxu0 %v247_v12 }
   0x8   :  { %228 = vmatprep.subr.bf16.mxu0 %v258_v2  ;;  %v72_v36 = vld [vmem:[#allocation2] sm:$0xff] }
   0x9   :  { %v73_v38 = vld [vmem:[#allocation2 + $0x8] sm:$0xff] }
   0xb   :  { %229 = vmatpush3.bf16.msra.mxu0 %v248_v13 }
   0xc   :  { %230 = vmatprep.subr.bf16.mxu0 %v258_v2 }
   0xf   :  { %231 = vmatpush3.bf16.msra.mxu0 %v249_v14 }
  0x10   :  { %232 = vmatprep.subr.bf16.mxu0 %v258_v2 }
  0x13   :  { %233 = vmatpush3.bf16.msra.mxu0 %v250_v15 }
  0x14   :  { %234 = vmatprep.subr.bf16.mxu0 %v258_v2 }
  0x17   :  { %235 = vmatpush3.bf16.msra.mxu0 %v251_v16 }
  0x18   :  { %236 = vmatprep.subr.bf16.mxu0 %v258_v2 }
  0x1b   :  { %237 = vmatpush3.bf16.msra.mxu0 %v252_v17 }
  0x1c   :  { %238 = vmatprep.subr.bf16.mxu0 %v258_v2 }
  0x1f   :  { %239 = vmatpush3.bf16.msra.mxu0 %v253_v18 }
  0x8f   :  { %v31_v4 = vpop.xlane.xlu0 %30 }
  0x90   :  { %v35_v5 = vmul.f32 0.0078125, %v31_v4 }
  0x92   :  { %v37_v6 = vsub.f32 %v28_v0, %v35_v5 }
  0x93   :  { %v33_v7 = vpop.xlane.xlu0 %32 }
  0x94   :  { %v36_v8 = vmul.f32 0.0078125, %v33_v7  ;;  %v39_v9 = vmul.f32 %v37_v6, %v37_v6 }
  0x96   :  { %v38_v10 = vsub.f32 %v29_v1, %v36_v8  ;;  %41 = vadd.xlane.f32.xlu1 %v39_v9 }
  0x98   :  { %v40_v11 = vmul.f32 %v38_v10, %v38_v10 }
  0x9a   :  { %43 = vadd.xlane.f32.xlu1 %v40_v11 }
 0x123   :  { %v42_v19 = vpop.xlane.xlu1 %41 }
 0x124   :  { %v45_v20 = vmul.f32 0.0078125, %v42_v19 }
 0x126   :  { %v47_v21 = vadd.f32 1e-05, %v45_v20 }
 0x127   :  { %v44_v22 = vpop.xlane.xlu1 %43 }
 0x128   :  { %254 = vrsqrt.f32 %v47_v21  ;;  %v46_v23 = vmul.f32 0.0078125, %v44_v22 }
 0x12a   :  { %v48_v24 = vadd.f32 1e-05, %v46_v23 }
 0x12c   :  { %256 = vrsqrt.f32 %v48_v24 }
 0x132   :  { %v255_v25 = vpop.eup %254 }
 0x133   :  { %v51_v26 = vmul.f32 %v255_v25, %v37_v6 }
 0x135   :  { %v60_v30 = vmul.f32 %v204_v27, %v51_v26 }
 0x136   :  { %v257_v28 = vpop.eup %256 }
 0x137   :  { %v52_v29 = vmul.f32 %v257_v28, %v38_v10  ;;  %v69_v33 = vadd.f32 %v205_v31, %v60_v30 }
 0x139   :  { %v61_v32 = vmul.f32 %v204_v27, %v52_v29 }
 0x13b   :  { %v70_v34 = vadd.f32 %v205_v31, %v61_v32 }
 0x13d   :  { %v71_v35 = vpack.c.bf16 %v70_v34, %v69_v33 }
 0x13f   :  { %241 = vmatmul.mubr.bf16.vlgmr.msra.gmra.mrb[0].mxu0 %v71_v35 }
 0x212   :  { %v172_v37 = vpop.f32.mrb[0].mxu0 }
 0x213   :  { %v179_v39 = vadd.f32 %v172_v37, %v72_v36  ;;  %v242_v40 = vpop.f32.mrb[1].mxu0 }
 0x214   :  { %v175_v41 = vpop.f32.mrb[2].mxu0 }
 0x215   :  { %182 = vst.msk [vmem:[#allocation2] sm:$0xff] %vm25_vm1, %v179_v39  ;;  %v180_v42 = vadd.f32 %v175_v41, %v73_v38  ;;  %v243_v43 = vpop.f32.mrb[3].mxu0 }
 0x217   :  { %183 = vst.msk [vmem:[#allocation2 + $0x8] sm:$0xff] %vm25_vm1, %v180_v42 }
 0x21c   :  { %v187_v45 = vld [vmem:[#allocation2] sm:$0xff] }
 0x21d   :  { %v196_v46 = vadd.f32 %v214_v44, %v187_v45 }
 0x21e   :  { %v188_v47 = vld [vmem:[#allocation2 + $0x8] sm:$0xff] }
 0x21f   :  { %198 = vst.msk [vmem:[%s346_s5] sm:$0xff] %vm25_vm1, %v196_v46  ;;  %v197_v48 = vadd.f32 %v214_v44, %v188_v47 }
 0x221   :  { %199 = vst.msk [vmem:[%s346_s5 + $0x8] sm:$0xff] %vm25_vm1, %v197_v48 }

// kernel: pangu_forward.35
= control target key start
LH: loop header
LB: loop body
LE: loop exit
PB: predicated region body
PF: predicated region fallthrough
CT: control target
= control target key end

     0   :  { %vm22_vm0 = vcmask 261120   ;;  %v349_v1 = vmov 0.0   ;;  %s486_s1 = inlined_call_operand.vmem [shape: bf16[128,32], index: 1, kind: input, shape index: {}]   ;;  %s487_s0 = inlined_call_operand.vmem [shape: bf16[64,128], index: 0, kind: input, shape index: {}]   ;;  %s488_s2 = inlined_call_operand.vmem [shape: f32[1,32], index: 2, kind: input, shape index: {}]   ;;  %s489_s3 = inlined_call_operand.vmem [shape: f32[64,32], index: 3, kind: input, shape index: {}]   ;;  %s490_s4 = inlined_call_operand.vmem [shape: f32[64,32], index: 4, kind: output, shape index: {}]  }
   0x1   :  { %v337_v0 = vld [vmem:[%s486_s1] sm:$0xff]   ;;  %25 = vst.msk [vmem:[#allocation2 + $0x10] sm:$0xff] %vm22_vm0, %v349_v1  ;;  %23 = vst.msk [vmem:[#allocation2] sm:$0xff] %vm22_vm0, %v349_v1  ;;  %v338_v2 = vld [vmem:[%s486_s1 + $0x8] sm:$0xff]  }
   0x2   :  { %24 = vst.msk [vmem:[#allocation2 + $0x8] sm:$0xff] %vm22_vm0, %v349_v1  ;;  %26 = vst.msk [vmem:[#allocation2 + $0x18] sm:$0xff] %vm22_vm0, %v349_v1  ;;  %296 = vmatprep.subr.bf16.mxu0 %v337_v0  ;;  %320 = vmatprep.subr.bf16.mxu1 %v337_v0  ;;  %v339_v3 = vld [vmem:[%s486_s1 + $0x10] sm:$0xff]   ;;  %v340_v4 = vld [vmem:[%s486_s1 + $0x18] sm:$0xff]  }
   0x3   :  { %27 = vst.msk [vmem:[#allocation2 + $0x20] sm:$0xff] %vm22_vm0, %v349_v1  ;;  %28 = vst.msk [vmem:[#allocation2 + $0x28] sm:$0xff] %vm22_vm0, %v349_v1  ;;  %297 = vmatpush3.bf16.msra.mxu0 %v337_v0  ;;  %328 = vmatpush3.bf16.msra.mxu1 %v337_v0  ;;  %v345_v5 = vld [vmem:[%s487_s0] sm:$0xff]   ;;  %v346_v6 = vld [vmem:[%s487_s0 + $0x10] sm:$0xff]  }
   0x4   :  { %29 = vst.msk [vmem:[#allocation2 + $0x30] sm:$0xff] %vm22_vm0, %v349_v1  ;;  %30 = vst.msk [vmem:[#allocation2 + $0x38] sm:$0xff] %vm22_vm0, %v349_v1  ;;  %298 = vmatprep.subr.bf16.mxu0 %v338_v2  ;;  %321 = vmatprep.subr.bf16.mxu1 %v338_v2  ;;  %v341_v7 = vld [vmem:[%s486_s1 + $0x20] sm:$0xff]   ;;  %v342_v8 = vld [vmem:[%s486_s1 + $0x28] sm:$0xff]  }
   0x5   :  { %312 = vmatprep.mubr.bf16.mxu0 %v345_v5  ;;  %316 = vmatprep.mubr.bf16.mxu1 %v346_v6  ;;  %v343_v9 = vld [vmem:[%s486_s1 + $0x30] sm:$0xff]   ;;  %v344_v10 = vld [vmem:[%s486_s1 + $0x38] sm:$0xff]   ;;  %v347_v11 = vld [vmem:[%s487_s0 + $0x8] sm:$0xff]  }
   0x6   :  { %v348_v12 = vld [vmem:[%s487_s0 + $0x18] sm:$0xff]   ;;  %v283_v37 = vld [vmem:[%s488_s2] ss:$0 sm:$0xff]  ;;  %v245_v38 = vld [vmem:[%s489_s3 + $0x10] sm:$0xff] }
   0x7   :  { %299 = vmatpush3.bf16.msra.mxu0 %v338_v2  ;;  %329 = vmatpush3.bf16.msra.mxu1 %v338_v2  ;;  %v249_v39 = vld [vmem:[%s489_s3 + $0x30] sm:$0xff]  ;;  %v243_v40 = vld [vmem:[%s489_s3] sm:$0xff]  ;;  %v246_v44 = vld [vmem:[%s489_s3 + $0x18] sm:$0xff] }
   0x8   :  { %300 = vmatprep.subr.bf16.mxu0 %v339_v3  ;;  %322 = vmatprep.subr.bf16.mxu1 %v339_v3  ;;  %v41_v13 = vld [vmem:[#allocation2 + $0x10] sm:$0xff]  ;;  %v39_v15 = vld [vmem:[#allocation2] sm:$0xff]  ;;  %v250_v49 = vld [vmem:[%s489_s3 + $0x38] sm:$0xff] }
   0x9   :  { %v42_v19 = vld [vmem:[#allocation2 + $0x18] sm:$0xff]  ;;  %v40_v25 = vld [vmem:[#allocation2 + $0x8] sm:$0xff]  ;;  %v247_v41 = vld [vmem:[%s489_s3 + $0x20] sm:$0xff] }
   0xa   :  { %v43_v16 = vld [vmem:[#allocation2 + $0x20] sm:$0xff]  ;;  %v44_v26 = vld [vmem:[#allocation2 + $0x28] sm:$0xff] }
   0xb   :  { %301 = vmatpush3.bf16.msra.mxu0 %v339_v3  ;;  %330 = vmatpush3.bf16.msra.mxu1 %v339_v3  ;;  %v45_v14 = vld [vmem:[#allocation2 + $0x30] sm:$0xff]  ;;  %v46_v20 = vld [vmem:[#allocation2 + $0x38] sm:$0xff]  ;;  %v244_v54 = vld [vmem:[%s489_s3 + $0x8] sm:$0xff] }
   0xc   :  { %302 = vmatprep.subr.bf16.mxu0 %v340_v4  ;;  %323 = vmatprep.subr.bf16.mxu1 %v340_v4  ;;  %v248_v61 = vld [vmem:[%s489_s3 + $0x28] sm:$0xff] }
   0xf   :  { %303 = vmatpush3.bf16.msra.mxu0 %v340_v4  ;;  %331 = vmatpush3.bf16.msra.mxu1 %v340_v4 }
  0x10   :  { %304 = vmatprep.subr.bf16.mxu0 %v341_v7  ;;  %324 = vmatprep.subr.bf16.mxu1 %v341_v7 }
  0x13   :  { %305 = vmatpush3.bf16.msra.mxu0 %v341_v7  ;;  %332 = vmatpush3.bf16.msra.mxu1 %v341_v7 }
  0x14   :  { %306 = vmatprep.subr.bf16.mxu0 %v342_v8  ;;  %325 = vmatprep.subr.bf16.mxu1 %v342_v8 }
  0x17   :  { %307 = vmatpush3.bf16.msra.mxu0 %v342_v8  ;;  %333 = vmatpush3.bf16.msra.mxu1 %v342_v8 }
  0x18   :  { %308 = vmatprep.subr.bf16.mxu0 %v343_v9  ;;  %326 = vmatprep.subr.bf16.mxu1 %v343_v9 }
  0x1b   :  { %309 = vmatpush3.bf16.msra.mxu0 %v343_v9  ;;  %334 = vmatpush3.bf16.msra.mxu1 %v343_v9 }
  0x1c   :  { %310 = vmatprep.subr.bf16.mxu0 %v344_v10  ;;  %327 = vmatprep.subr.bf16.mxu1 %v344_v10 }
  0x1f   :  { %311 = vmatpush3.bf16.msra.mxu0 %v344_v10  ;;  %335 = vmatpush3.bf16.msra.mxu1 %v344_v10 }
  0x22   :  { %313 = vmatmul.mubr.bf16.vlgmr.msra.gmra.mrb[0].mxu0 %v347_v11  ;;  %317 = vmatmul.mubr.bf16.vlgmr.msra.gmra.mrb[0].mxu1 %v348_v12 }
  0xf5   :  { %v314_v17 = vpop.f32.mrb[0].mxu0  ;;  %v318_v18 = vpop.f32.mrb[0].mxu1 }
  0xf6   :  { %v202_v21 = vadd.f32 %v314_v17, %v41_v13  ;;  %v206_v22 = vadd.f32 %v318_v18, %v45_v14  ;;  %v169_v23 = vpop.f32.mrb[1].mxu0  ;;  %v185_v24 = vpop.f32.mrb[1].mxu1 }
  0xf7   :  { %v200_v27 = vadd.f32 %v169_v23, %v39_v15  ;;  %v204_v28 = vadd.f32 %v185_v24, %v43_v16  ;;  %v315_v29 = vpop.f32.mrb[2].mxu0  ;;  %v319_v30 = vpop.f32.mrb[2].mxu1 }
  0xf8   :  { %211 = vst.msk [vmem:[#allocation2 + $0x10] sm:$0xff] %vm22_vm0, %v202_v21  ;;  %215 = vst.msk [vmem:[#allocation2 + $0x30] sm:$0xff] %vm22_vm0, %v206_v22  ;;  %v203_v31 = vadd.f32 %v315_v29, %v42_v19  ;;  %v207_v32 = vadd.f32 %v319_v30, %v46_v20  ;;  %v172_v33 = vpop.f32.mrb[3].mxu0  ;;  %v188_v34 = vpop.f32.mrb[3].mxu1 }
  0xf9   :  { %209 = vst.msk [vmem:[#allocation2] sm:$0xff] %vm22_vm0, %v200_v27  ;;  %213 = vst.msk [vmem:[#allocation2 + $0x20] sm:$0xff] %vm22_vm0, %v204_v28  ;;  %v201_v35 = vadd.f32 %v172_v33, %v40_v25  ;;  %v205_v36 = vadd.f32 %v188_v34, %v44_v26 }
  0xfa   :  { %212 = vst.msk [vmem:[#allocation2 + $0x18] sm:$0xff] %vm22_vm0, %v203_v31  ;;  %216 = vst.msk [vmem:[#allocation2 + $0x38] sm:$0xff] %vm22_vm0, %v207_v32 }
  0xfb   :  { %210 = vst.msk [vmem:[#allocation2 + $0x8] sm:$0xff] %vm22_vm0, %v201_v35  ;;  %214 = vst.msk [vmem:[#allocation2 + $0x28] sm:$0xff] %vm22_vm0, %v205_v36 }
  0xff   :  { %v222_v42 = vld [vmem:[#allocation2 + $0x10] sm:$0xff] }
 0x100   :  { %v226_v43 = vld [vmem:[#allocation2 + $0x30] sm:$0xff]  ;;  %v237_v45 = vadd.f32 %v283_v37, %v222_v42  ;;  %v220_v47 = vld [vmem:[#allocation2] sm:$0xff] }
 0x101   :  { %v241_v46 = vadd.f32 %v283_v37, %v226_v43  ;;  %v224_v48 = vld [vmem:[#allocation2 + $0x20] sm:$0xff]  ;;  %v235_v50 = vadd.f32 %v283_v37, %v220_v47  ;;  %v223_v52 = vld [vmem:[#allocation2 + $0x18] sm:$0xff] }
 0x102   :  { %v239_v51 = vadd.f32 %v283_v37, %v224_v48  ;;  %v227_v53 = vld [vmem:[#allocation2 + $0x38] sm:$0xff]  ;;  %v253_v55 = vadd.f32 %v245_v38, %v237_v45  ;;  %v238_v57 = vadd.f32 %v283_v37, %v223_v52  ;;  %v221_v59 = vld [vmem:[#allocation2 + $0x8] sm:$0xff] }
 0x103   :  { %v257_v56 = vadd.f32 %v249_v39, %v241_v46  ;;  %v242_v58 = vadd.f32 %v283_v37, %v227_v53  ;;  %v225_v60 = vld [vmem:[#allocation2 + $0x28] sm:$0xff]  ;;  %v251_v62 = vadd.f32 %v243_v40, %v235_v50  ;;  %v236_v0 = vadd.f32 %v283_v37, %v221_v59 }
 0x104   :  { %v255_v63 = vadd.f32 %v247_v41, %v239_v51  ;;  %v240_v1 = vadd.f32 %v283_v37, %v225_v60  ;;  %261 = vst.msk [vmem:[%s490_s4 + $0x10] sm:$0xff] %vm22_vm0, %v253_v55  ;;  %v254_v2 = vadd.f32 %v246_v44, %v238_v57 }
 0x105   :  { %265 = vst.msk [vmem:[%s490_s4 + $0x30] sm:$0xff] %vm22_vm0, %v257_v56  ;;  %v258_v3 = vadd.f32 %v250_v49, %v242_v58  ;;  %259 = vst.msk [vmem:[%s490_s4] sm:$0xff] %vm22_vm0, %v251_v62  ;;  %v252_v4 = vadd.f32 %v244_v54, %v236_v0 }
 0x106   :  { %263 = vst.msk [vmem:[%s490_s4 + $0x20] sm:$0xff] %vm22_vm0, %v255_v63  ;;  %v256_v5 = vadd.f32 %v248_v61, %v240_v1  ;;  %262 = vst.msk [vmem:[%s490_s4 + $0x18] sm:$0xff] %vm22_vm0, %v254_v2 }
 0x107   :  { %266 = vst.msk [vmem:[%s490_s4 + $0x38] sm:$0xff] %vm22_vm0, %v258_v3  ;;  %260 = vst.msk [vmem:[%s490_s4 + $0x8] sm:$0xff] %vm22_vm0, %v252_v4 }
 0x108   :  { %264 = vst.msk [vmem:[%s490_s4 + $0x28] sm:$0xff] %vm22_vm0, %v256_v5 }

// kernel: pangu_forward.37
= control target key start
LH: loop header
LB: loop body
LE: loop exit
PB: predicated region body
PF: predicated region fallthrough
CT: control target
= control target key end

     0   :  { %vm26_vm0 = vcmask 523264   ;;  %v245_v22 = vmov 0   ;;  %v246_v23 = vmov 0.0   ;;  %v194_v41 = vlaneseq  ;;  %s339_s0 = inlined_call_operand.vmem [shape: f32[16,64], index: 0, kind: input, shape index: {}]   ;;  %s340_s1 = inlined_call_operand.vmem [shape: bf16[64,192], index: 1, kind: input, shape index: {}]   ;;  %s341_s3 = inlined_call_operand.vmem [shape: f32[1,64], index: 3, kind: input, shape index: {}]   ;;  %s342_s4 = inlined_call_operand.vmem [shape: f32[1,64], index: 4, kind: input, shape index: {}]   ;;  %s343_s2 = inlined_call_operand.vmem [shape: f32[1,192], index: 2, kind: input, shape index: {}]   ;;  %s344_s5 = inlined_call_operand.vmem [shape: f32[16,192], index: 5, kind: output, shape index: {}]  }
   0x1   :  { %v30_v0 = vld [vmem:[%s339_s0] sm:$0xff]  ;;  %v31_v1 = vld [vmem:[%s339_s0 + $0x8] sm:$0xff]  ;;  %v232_v16 = vld [vmem:[%s340_s1 + $0x14] ss:$8 sps:$4 sm:$0xff]   ;;  %166 = vmatprep.mubr.bf16.mxu0 %v245_v22  ;;  %27 = vst.msk [vmem:[#allocation2 + $0x8] sm:$0xff] %vm26_vm0, %v246_v23 }
   0x2   :  { %v33_v2 = vsel %vm26_vm0, %v30_v0, 0.0  ;;  %v36_v3 = vsel %vm26_vm0, %v31_v1, 0.0  ;;  %v229_v14 = vld [vmem:[%s340_s1 + $0x4] ss:$8 sps:$4 sm:$0xff]   ;;  %v231_v15 = vld [vmem:[%s340_s1] ss:$8 sps:$4 sm:$0xff]  }
   0x3   :  { %34 = vadd.xlane.f32.xlu0 %v33_v2  ;;  %134 = vmatprep.subr.bf16.mxu0 %v229_v14  ;;  %v234_v17 = vld [vmem:[%s340_s1 + $0x10] ss:$8 sps:$4 sm:$0xff]   ;;  %v235_v18 = vld [vmem:[%s340_s1 + $0x24] ss:$8 sps:$4 sm:$0xff]   ;;  %v237_v19 = vld [vmem:[%s340_s1 + $0x20] ss:$8 sps:$4 sm:$0xff]  }
   0x4   :  { %135 = vmatpush1.bf16.msra.mxu0 %v231_v15  ;;  %v238_v20 = vld [vmem:[%s340_s1 + $0x34] ss:$8 sps:$4 sm:$0xff]   ;;  %v240_v21 = vld [vmem:[%s340_s1 + $0x30] ss:$8 sps:$4 sm:$0xff]   ;;  %29 = vst.msk [vmem:[#allocation2 + $0x18] sm:$0xff] %vm26_vm0, %v246_v23  ;;  %v195_v42 = vshrl.u32 %v194_v41, 7 }
   0x5   :  { %136 = vmatprep.subr.bf16.mxu0 %v232_v16  ;;  %v216_v32 = vld [vmem:[%s341_s3] ss:$0 sm:$0xff] }
   0x6   :  { %v217_v36 = vld [vmem:[%s342_s4] ss:$0 sm:$0xff]  ;;  %v196_v43 = vsub.s32 0, %v195_v42  ;;  %v200_v54 = vsub.s32 1, %v195_v42 }
   0x7   :  { %37 = vadd.xlane.f32.xlu0 %v36_v3  ;;  %v192_v44 = vld [vmem:[%s343_s2] sm:$0x3] }
   0x8   :  { %137 = vmatpush1.bf16.msra.mxu0 %v234_v17  ;;  %v197_v45 = vrot.slane %v192_v44, %v196_v43  ;;  %v80_v46 = vld [vmem:[#allocation2 + $0x8] sm:$0xff]  ;;  %v201_v57 = vrot.slane %v192_v44, %v200_v54 }
   0x9   :  { %138 = vmatprep.subr.bf16.mxu0 %v235_v18 }
   0xb   :  { %v82_v49 = vld [vmem:[#allocation2 + $0x18] sm:$0xff] }
   0xc   :  { %139 = vmatpush1.bf16.msra.mxu0 %v237_v19 }
   0xd   :  { %140 = vmatprep.subr.bf16.mxu0 %v238_v20 }
  0x10   :  { %141 = vmatpush1.bf16.msra.mxu0 %v240_v21 }
  0x90   :  { %v35_v4 = vpop.xlane.xlu0 %34 }
  0x91   :  { %v40_v5 = vmul.f32 0.015625, %v35_v4 }
  0x93   :  { %v42_v6 = vsub.f32 %v30_v0, %v40_v5 }
  0x94   :  { %v38_v7 = vpop.xlane.xlu0 %37 }
  0x95   :  { %v41_v8 = vmul.f32 0.015625, %v38_v7  ;;  %v44_v9 = vmul.f32 %v42_v6, %v42_v6 }
  0x97   :  { %v43_v10 = vsub.f32 %v31_v1, %v41_v8  ;;  %v46_v11 = vsel %vm26_vm0, %v44_v9, 0.0 }
  0x98   :  { %47 = vadd.xlane.f32.xlu1 %v46_v11 }
  0x99   :  { %v45_v12 = vmul.f32 %v43_v10, %v43_v10 }
  0x9b   :  { %v49_v13 = vsel %vm26_vm0, %v45_v12, 0.0 }
  0x9c   :  { %50 = vadd.xlane.f32.xlu1 %v49_v13 }
 0x125   :  { %v48_v24 = vpop.xlane.xlu1 %47 }
 0x126   :  { %v52_v25 = vmul.f32 0.015625, %v48_v24 }
 0x128   :  { %v54_v26 = vadd.f32 1e-05, %v52_v25 }
 0x129   :  { %v51_v27 = vpop.xlane.xlu1 %50 }
 0x12a   :  { %241 = vrsqrt.f32 %v54_v26  ;;  %v53_v28 = vmul.f32 0.015625, %v51_v27 }
 0x12c   :  { %v55_v29 = vadd.f32 1e-05, %v53_v28 }
 0x12e   :  { %243 = vrsqrt.f32 %v55_v29 }
 0x134   :  { %v242_v30 = vpop.eup %241 }
 0x135   :  { %v58_v31 = vmul.f32 %v242_v30, %v42_v6 }
 0x137   :  { %v67_v35 = vmul.f32 %v216_v32, %v58_v31 }
 0x138   :  { %v244_v33 = vpop.eup %243 }
 0x139   :  { %v59_v34 = vmul.f32 %v244_v33, %v43_v10  ;;  %v76_v38 = vadd.f32 %v217_v36, %v67_v35 }
 0x13b   :  { %v68_v37 = vmul.f32 %v216_v32, %v59_v34 }
 0x13d   :  { %v77_v39 = vadd.f32 %v217_v36, %v68_v37 }
 0x13f   :  { %v78_v40 = vpack.c.bf16 %v77_v39, %v76_v38 }
 0x141   :  { %226 = vmatmul.mubr.msk.bf16.vlgmr.msra.gmra.mrb[0].mxu0 %vm26_vm0, %v78_v40 }
 0x214   :  { %v168_v47 = vpop.f32.mrb[0].mxu0 }
 0x215   :  { %v170_v48 = vpop.f32.mrb[1].mxu0  ;;  %v204_v52 = vadd.f32 %v197_v45, %v168_v47 }
 0x216   :  { %v178_v50 = vadd.f32 %v170_v48, %v80_v46  ;;  %v172_v51 = vpop.f32.mrb[2].mxu0 }
 0x217   :  { %v174_v53 = vpop.f32.mrb[3].mxu0  ;;  %208 = vst [vmem:[%s344_s5] sm:$0xff] %v204_v52  ;;  %v206_v56 = vadd.f32 %v197_v45, %v172_v51 }
 0x218   :  { %182 = vst.msk [vmem:[#allocation2 + $0x8] sm:$0xff] %vm26_vm0, %v178_v50  ;;  %v180_v55 = vadd.f32 %v174_v53, %v82_v49 }
 0x219   :  { %210 = vst [vmem:[%s344_s5 + $0x10] sm:$0xff] %v206_v56 }
 0x21a   :  { %184 = vst.msk [vmem:[#allocation2 + $0x18] sm:$0xff] %vm26_vm0, %v180_v55 }
 0x21f   :  { %v189_v58 = vld [vmem:[#allocation2 + $0x8] sm:$0xff] }
 0x220   :  { %v205_v59 = vadd.f32 %v201_v57, %v189_v58 }
 0x221   :  { %v191_v60 = vld [vmem:[#allocation2 + $0x18] sm:$0xff] }
 0x222   :  { %209 = vst.msk [vmem:[%s344_s5 + $0x8] sm:$0xff] %vm26_vm0, %v205_v59  ;;  %v207_v61 = vadd.f32 %v201_v57, %v191_v60 }
 0x224   :  { %211 = vst.msk [vmem:[%s344_s5 + $0x18] sm:$0xff] %vm26_vm0, %v207_v61 }

// kernel: pangu_forward.39
= control target key start
LH: loop header
LB: loop body
LE: loop exit
PB: predicated region body
PF: predicated region fallthrough
CT: control target
= control target key end

     0   :  { %vm22_vm0 = vcmask 523264   ;;  %v170_v0 = vmov 0.0   ;;  %vm171_vm1 = vmmov 0   ;;  %s234_s1 = inlined_call_operand.vmem [shape: bf16[64,64], index: 1, kind: input, shape index: {}]   ;;  %s235_s0 = inlined_call_operand.vmem [shape: bf16[16,64], index: 0, kind: input, shape index: {}]   ;;  %s236_s2 = inlined_call_operand.vmem [shape: f32[1,64], index: 2, kind: input, shape index: {}]   ;;  %s237_s3 = inlined_call_operand.vmem [shape: f32[16,64], index: 3, kind: input, shape index: {}]   ;;  %s238_s4 = inlined_call_operand.vmem [shape: f32[16,64], index: 4, kind: output, shape index: {}]  }
   0x1   :  { %151 = vmatprep.subr.bf16.mxu0 %v170_v0  ;;  %v165_v1 = vld [vmem:[%s234_s1] sm:$0xff]   ;;  %159 = vmatprep.mubr.msk.bf16.mxu0 %vm171_vm1, %v170_v0  ;;  %23 = vst.msk [vmem:[#allocation2] sm:$0xff] %vm22_vm0, %v170_v0  ;;  %24 = vst.msk [vmem:[#allocation2 + $0x8] sm:$0xff] %vm22_vm0, %v170_v0  ;;  %v166_v2 = vld [vmem:[%s234_s1 + $0x8] sm:$0xff]  }
   0x2   :  { %152 = vmatpush3.bf16.msra.mxu0 %v165_v1  ;;  %v167_v3 = vld [vmem:[%s234_s1 + $0x10] sm:$0xff]   ;;  %v168_v4 = vld [vmem:[%s234_s1 + $0x18] sm:$0xff]   ;;  %v169_v5 = vld [vmem:[%s235_s0] sm:$0xff]  }
   0x3   :  { %153 = vmatprep.subr.bf16.mxu0 %v170_v0  ;;  %v145_v14 = vld [vmem:[%s236_s2] ss:$0 sm:$0xff]  ;;  %v130_v19 = vld [vmem:[%s237_s3 + $0x8] sm:$0xff] }
   0x4   :  { %v129_v16 = vld [vmem:[%s237_s3] sm:$0xff] }
   0x6   :  { %154 = vmatpush3.bf16.msra.mxu0 %v166_v2 }
   0x7   :  { %155 = vmatprep.subr.bf16.mxu0 %v170_v0 }
   0x8   :  { %v27_v6 = vld [vmem:[#allocation2] sm:$0xff]  ;;  %v28_v8 = vld [vmem:[#allocation2 + $0x8] sm:$0xff] }
   0xa   :  { %156 = vmatpush3.bf16.msra.mxu0 %v167_v3 }
   0xb   :  { %157 = vmatprep.subr.bf16.mxu0 %v170_v0 }
   0xe   :  { %158 = vmatpush3.bf16.msra.mxu0 %v168_v4 }
  0x11   :  { %160 = vmatmul.mubr.msk.bf16.vlgmr.msra.gmra.mrb[0].mxu0 %vm22_vm0, %v169_v5 }
  0xe4   :  { %v104_v7 = vpop.f32.mrb[0].mxu0 }
  0xe5   :  { %v111_v9 = vadd.f32 %v104_v7, %v27_v6  ;;  %v161_v10 = vpop.f32.mrb[1].mxu0 }
  0xe6   :  { %v107_v11 = vpop.f32.mrb[2].mxu0 }
  0xe7   :  { %113 = vst.msk [vmem:[#allocation2] sm:$0xff] %vm22_vm0, %v111_v9  ;;  %v112_v12 = vadd.f32 %v107_v11, %v28_v8  ;;  %v162_v13 = vpop.f32.mrb[3].mxu0 }
  0xe9   :  { %114 = vst.msk [vmem:[#allocation2 + $0x8] sm:$0xff] %vm22_vm0, %v112_v12 }
  0xee   :  { %v118_v15 = vld [vmem:[#allocation2] sm:$0xff] }
  0xef   :  { %v127_v17 = vadd.f32 %v145_v14, %v118_v15 }
  0xf0   :  { %v119_v18 = vld [vmem:[#allocation2 + $0x8] sm:$0xff] }
  0xf1   :  { %v131_v20 = vadd.f32 %v129_v16, %v127_v17  ;;  %v128_v21 = vadd.f32 %v145_v14, %v119_v18 }
  0xf3   :  { %133 = vst.msk [vmem:[%s238_s4] sm:$0xff] %vm22_vm0, %v131_v20  ;;  %v132_v22 = vadd.f32 %v130_v19, %v128_v21 }
  0xf5   :  { %134 = vst.msk [vmem:[%s238_s4 + $0x8] sm:$0xff] %vm22_vm0, %v132_v22 }

// kernel: pangu_forward.38
= control target key start
LH: loop header
LB: loop body
LE: loop exit
PB: predicated region body
PF: predicated region fallthrough
CT: control target
= control target key end

     0   :  { %s640_s12 = smov 0   ;;  %s642_s13 = smov 0   ;;  %s697_s0 = inlined_call_operand.vmem [shape: f32[8,8,16], index: 0, kind: input, shape index: {}]   ;;  %s698_s1 = inlined_call_operand.vmem [shape: f32[8,8,16], index: 1, kind: input, shape index: {}]   ;;  %s699_s2 = inlined_call_operand.vmem [shape: f32[8,8,16], index: 2, kind: input, shape index: {}]   ;;  %s700_s3 = inlined_call_operand.vmem [shape: f32[8,8,16], index: 3, kind: output, shape index: {}]  }
   0x1   :  { %s644_s14 = smov 0  }
   0x2 LB: > { %s32_s15 = sadd.s32 1, %s610_s13  ;;  %p531_p0 = scmp.ge.s32.totalorder %s614_s14, 1  ;;  %s614_s14 = sphi %s644_s14, %s13_s14   ;;  %s610_s13 = sphi %s642_s13, %s702_s13   ;;  %s606_s12 = sphi %s640_s12, %s701_s12  }
   0x3   : > { %p34_p1 = scmp.ge.s32.totalorder %s32_s15, 8  ;;  %p190_p2 = scmp.lt.s32.totalorder %s614_s14, 9 }
   0x5   : > { %s704_s15 = smov (%p34_p1, %s32_s15), 0  ;;  %p191_p3 = pnand %p531_p0, %p190_p2 }
   0x6   : > { %p232_p4 = scmp.lt.s32.totalorder (!%p191_p3), %s606_s12, 7  ;;  %vm268_vm0 = vcmask (!%p191_p3), 130048   ;;  %v616_v0 = vmov (!%p191_p3), 0.0   ;;  %vm617_vm1 = vmmov (!%p191_p3), 0   ;;  %vm265_vm2 = vcmask (!%p191_p3), 7168  }
   0x7   : > { %194 = sbr.rel (%p191_p3) target bundleno = 825 (0x339), region = 32  ;;  %544 = vmatprep.subr.bf16.mxu0 (!%p191_p3), %v616_v0  ;;  %269 = vst.msk [vmem:[#allocation4] sm:$0xff] (!%p191_p3), %vm268_vm0, %v616_v0  ;;  %546 = vmatprep.mubr.msk.bf16.mxu0 (!%p191_p3), %vm617_vm1, %v616_v0  ;;  %v618_v6 = vmov (!%p191_p3), -inf   ;;  %vm323_vm3 = vcmask (!%p191_p3), 64512   ;;  %v619_v13 = vmov (!%p191_p3), 0   ;;  %vm360_vm4 = vcmask (!%p191_p3), 1043456  }
   0x8   : > { %550 = vmatprep.subr.bf16.mxu1 (!%p191_p3), %v616_v0  ;;  %552 = vmatprep.mubr.msk.bf16.mxu1 (!%p191_p3), %vm617_vm1, %v616_v0  ;;  %266 = vst.msk [vmem:[#allocation2] sm:$0xff] (!%p191_p3), %vm265_vm2, %v618_v6  ;;  %267 = vst.msk [vmem:[#allocation3] sm:$0xff] (!%p191_p3), %vm265_vm2, %v616_v0 }
   0x9   : > { %584 = vset.pattern.permute.xlu0 (!%p191_p3), %v619_v13  ;;  %585 = vset.pattern.permute.xlu1 (!%p191_p3), %v619_v13 }
   0xe   : > { %s706_s12 = smov (!%p232_p4, %s606_s12), 7  ;;  %v347_v35 = vld [vmem:[#allocation4] sm:$0xff] }
   0xf   : > { %s659_s16 = sshll.u32 %s706_s12, 3  ;;  %v322_v14 = vld [vmem:[#allocation2] sm:$0xff]  ;;  %v339_v29 = vld [vmem:[#allocation3] sm:$0xff] }
  0x10   : > { %s245_s19 = scalar_lea.vmem %s698_s1, %s659_s16  ;;  %s238_s22 = scalar_lea.vmem %s697_s0, %s659_s16 }
  0x11   : > { %v272_v1 = vld [vmem:[%s245_s19] sm:$0xff]  ;;  %s252_s25 = scalar_lea.vmem %s699_s2, %s659_s16  ;;  %s259_s28 = scalar_lea.vmem %s700_s3, %s659_s16 }
  0x12   : > { %v273_v2 = vpack.c.bf16 %v272_v1, %v272_v1  ;;  %v270_v4 = vld [vmem:[%s238_s22] sm:$0xff] }
  0x13   : > { %v271_v5 = vpack.c.bf16 %v270_v4, %v270_v4  ;;  %v355_v18 = vld [vmem:[%s252_s25] sm:$0xff] }
  0x14   : > { %v279_v3 = vsel %vm268_vm0, %v273_v2, 0  ;;  %v356_v19 = vpack.c.bf16 %v355_v18, %v355_v18 }
  0x15   : > { %545 = vmatpush3.bf16.xpose.msra.mxu0 %v279_v3 }
  0x16   : > { %v362_v20 = vsel %vm360_vm4, %v356_v19, 0 }
  0x17   : > { %551 = vmatpush3.bf16.msra.mxu1 %v362_v20 }
  0x1c   : > { %547 = vmatmul.mubr.msk.bf16.vlgmr.msra.gmra.mrb[0].mxu0 %vm268_vm0, %v271_v5 }
  0xef   : > { %v315_v7 = vpop.f32.mrb[0].mxu0 }
  0xf0   : > { %v321_v8 = vmul.f32 0.25, %v315_v7  ;;  %v548_v9 = vpop.f32.mrb[1].mxu0 }
  0xf1   : > { %v318_v10 = vpop.f32.mrb[2].mxu0 }
  0xf2   : > { %v549_v11 = vpop.f32.mrb[3].mxu0  ;;  %v324_v12 = vsel %vm323_vm3, %v321_v8, -inf }
  0xf3   : > { %325 = vmax.xlane.f32.xlu0 %v324_v12 }
 0x180   : > { %v326_v15 = vpop.xlane.xlu0 %325 }
 0x181   : > { %v327_v16 = vmax.f32 %v322_v14, %v326_v15 }
 0x183   : > { %v328_v17 = vsub.f32 %v322_v14, %v327_v16  ;;  %406 = vst.msk [vmem:[#allocation2] sm:$0xff] %vm265_vm2, %v327_v16  ;;  %333 = vperm.xlu0 %584, %v327_v16  }
 0x185   : > { %v329_v27 = vmul.f32 1.442695, %v328_v17 }
 0x202   : > { %v334_v21 = vpop.permute.xlu0 %333 }
 0x203   : > { %v336_v22 = vsub.f32 %v321_v8, %v334_v21 }
 0x205   : > { %v337_v23 = vmul.f32 1.442695, %v336_v22 }
 0x207   : > { %586 = vpow2.f32 %v337_v23 }
 0x208   : > { %588 = vpow2.f32 %v329_v27 }
 0x211   : > { %v587_v24 = vpop.eup %586 }
 0x212   : > { %v341_v25 = vsel %vm323_vm3, %v587_v24, 0.0  ;;  %v354_v26 = vpack.c.bf16 %v587_v24, %v587_v24  ;;  %v589_v28 = vpop.eup %588 }
 0x213   : > { %342 = vadd.xlane.f32.xlu1 %v341_v25  ;;  %v340_v30 = vmul.f32 %v589_v28, %v339_v29 }
 0x214   : > { %553 = vmatmul.mubr.msk.bf16.vlgmr.msra.gmra.mrb[0].mxu1 %vm323_vm3, %v354_v26 }
 0x224   : > { %350 = vperm.xlu1 %585, %v589_v28  }
 0x2a0   : > { %v343_v31 = vpop.xlane.xlu1 %342 }
 0x2a1   : > { %v344_v32 = vadd.f32 %v343_v31, %v340_v30 }
 0x2a3   : > { %346 = vst.msk [vmem:[#allocation3] sm:$0xff] %vm265_vm2, %v344_v32 }
 0x2a4   : > { %v351_v36 = vpop.permute.xlu1 %350 }
 0x2a5   : > { %v353_v37 = vmul.f32 %v351_v36, %v347_v35 }
 0x2aa   : > { %v410_v33 = vld [vmem:[#allocation3] sm:$0xff] }
 0x2ab   : > { %590 = vrcp.f32 %v410_v33 }
 0x2b5   : > { %v591_v34 = vpop.eup %590 }
 0x2b6   : > { %415 = vperm.xlu1 %585, %v591_v34  }
 0x2e7   : > { %v398_v38 = vpop.f32.mrb[0].mxu1 }
 0x2e8   : > { %v404_v39 = vadd.f32 %v398_v38, %v353_v37  ;;  %v554_v40 = vpop.f32.mrb[1].mxu1 }
 0x2e9   : > { %v401_v41 = vpop.f32.mrb[2].mxu1 }
 0x2ea   : > { %405 = vst.msk [vmem:[#allocation4] sm:$0xff] %vm268_vm0, %v404_v39  ;;  %v555_v42 = vpop.f32.mrb[3].mxu1 }
 0x2f1   : > { %v412_v43 = vld [vmem:[#allocation4] sm:$0xff] }
 0x335   : > { %v416_v44 = vpop.permute.xlu1 %415 }
 0x336   : > { %v418_v45 = vmul.f32 %v416_v44, %v412_v43 }
 0x338   : > { %419 = vst.msk [vmem:[%s259_s28] sm:$0xff] %vm268_vm0, %v418_v45 }
 0x339 PF: > { %s13_s14 = sadd.s32 1, %s614_s14   ;;  %s701_s12 = smov %s610_s13 }
 0x33a   : > { %p10_p5 = scmp.ge.s32.totalorder %s13_s14, 10   ;;  %s702_s13 = smov %s704_s15 }
 0x33c   :  { %12 = sbr.rel (!%p10_p5) target bundleno = 2 (0x2), region = 76 }

// kernel: pangu_forward.40
= control target key start
LH: loop header
LB: loop body
LE: loop exit
PB: predicated region body
PF: predicated region fallthrough
CT: control target
= control target key end

     0   :  { %vm31_vm0 = vcmask 523264   ;;  %v287_v22 = vmov 0   ;;  %v193_v40 = vlaneseq  ;;  %s374_s0 = inlined_call_operand.vmem [shape: f32[16,64], index: 0, kind: input, shape index: {}]   ;;  %s375_s1 = inlined_call_operand.vmem [shape: bf16[64,256], index: 1, kind: input, shape index: {}]   ;;  %s376_s3 = inlined_call_operand.vmem [shape: f32[1,64], index: 3, kind: input, shape index: {}]   ;;  %s377_s4 = inlined_call_operand.vmem [shape: f32[1,64], index: 4, kind: input, shape index: {}]   ;;  %s378_s2 = inlined_call_operand.vmem [shape: f32[1,256], index: 2, kind: input, shape index: {}]   ;;  %s379_s5 = inlined_call_operand.vmem [shape: f32[16,256], index: 5, kind: output, shape index: {}]  }
   0x1   :  { %v29_v0 = vld [vmem:[%s374_s0] sm:$0xff]  ;;  %v30_v1 = vld [vmem:[%s374_s0 + $0x8] sm:$0xff]  ;;  %v266_v16 = vld [vmem:[%s375_s1 + $0x14] ss:$8 sps:$4 sm:$0xff]   ;;  %165 = vmatprep.mubr.bf16.mxu0 %v287_v22 }
   0x2   :  { %v32_v2 = vsel %vm31_vm0, %v29_v0, 0.0  ;;  %v35_v3 = vsel %vm31_vm0, %v30_v1, 0.0  ;;  %v263_v14 = vld [vmem:[%s375_s1 + $0x4] ss:$8 sps:$4 sm:$0xff]   ;;  %v265_v15 = vld [vmem:[%s375_s1] ss:$8 sps:$4 sm:$0xff]  }
   0x3   :  { %33 = vadd.xlane.f32.xlu0 %v32_v2  ;;  %133 = vmatprep.subr.bf16.mxu0 %v263_v14  ;;  %v268_v17 = vld [vmem:[%s375_s1 + $0x10] ss:$8 sps:$4 sm:$0xff]   ;;  %v269_v18 = vld [vmem:[%s375_s1 + $0x24] ss:$8 sps:$4 sm:$0xff]   ;;  %v271_v19 = vld [vmem:[%s375_s1 + $0x20] ss:$8 sps:$4 sm:$0xff]  }
   0x4   :  { %134 = vmatpush1.bf16.msra.mxu0 %v265_v15  ;;  %v272_v20 = vld [vmem:[%s375_s1 + $0x34] ss:$8 sps:$4 sm:$0xff]   ;;  %v274_v21 = vld [vmem:[%s375_s1 + $0x30] ss:$8 sps:$4 sm:$0xff]   ;;  %v251_v31 = vld [vmem:[%s376_s3] ss:$0 sm:$0xff] }
   0x5   :  { %135 = vmatprep.subr.bf16.mxu0 %v266_v16  ;;  %v252_v35 = vld [vmem:[%s377_s4] ss:$0 sm:$0xff]  ;;  %v194_v41 = vshrl.u32 %v193_v40, 7 }
   0x6   :  { %v191_v43 = vld [vmem:[%s378_s2] sm:$0x3] }
   0x7   :  { %36 = vadd.xlane.f32.xlu0 %v35_v3  ;;  %v195_v42 = vsub.s32 0, %v194_v41  ;;  %v199_v44 = vsub.s32 1, %v194_v41 }
   0x8   :  { %136 = vmatpush1.bf16.msra.mxu0 %v268_v17 }
   0x9   :  { %137 = vmatprep.subr.bf16.mxu0 %v269_v18  ;;  %v196_v45 = vrot.slane %v191_v43, %v195_v42  ;;  %v200_v46 = vrot.slane %v191_v43, %v199_v44 }
   0xc   :  { %138 = vmatpush1.bf16.msra.mxu0 %v271_v19 }
   0xd   :  { %139 = vmatprep.subr.bf16.mxu0 %v272_v20 }
  0x10   :  { %140 = vmatpush1.bf16.msra.mxu0 %v274_v21 }
  0x90   :  { %v34_v4 = vpop.xlane.xlu0 %33 }
  0x91   :  { %v39_v5 = vmul.f32 0.015625, %v34_v4 }
  0x93   :  { %v41_v6 = vsub.f32 %v29_v0, %v39_v5 }
  0x94   :  { %v37_v7 = vpop.xlane.xlu0 %36 }
  0x95   :  { %v40_v8 = vmul.f32 0.015625, %v37_v7  ;;  %v43_v9 = vmul.f32 %v41_v6, %v41_v6 }
  0x97   :  { %v42_v10 = vsub.f32 %v30_v1, %v40_v8  ;;  %v45_v11 = vsel %vm31_vm0, %v43_v9, 0.0 }
  0x98   :  { %46 = vadd.xlane.f32.xlu1 %v45_v11 }
  0x99   :  { %v44_v12 = vmul.f32 %v42_v10, %v42_v10 }
  0x9b   :  { %v48_v13 = vsel %vm31_vm0, %v44_v12, 0.0 }
  0x9c   :  { %49 = vadd.xlane.f32.xlu1 %v48_v13 }
 0x125   :  { %v47_v23 = vpop.xlane.xlu1 %46 }
 0x126   :  { %v51_v24 = vmul.f32 0.015625, %v47_v23 }
 0x128   :  { %v53_v25 = vadd.f32 1e-05, %v51_v24 }
 0x129   :  { %v50_v26 = vpop.xlane.xlu1 %49 }
 0x12a   :  { %275 = vrsqrt.f32 %v53_v25  ;;  %v52_v27 = vmul.f32 0.015625, %v50_v26 }
 0x12c   :  { %v54_v28 = vadd.f32 1e-05, %v52_v27 }
 0x12e   :  { %277 = vrsqrt.f32 %v54_v28 }
 0x134   :  { %v276_v29 = vpop.eup %275 }
 0x135   :  { %v57_v30 = vmul.f32 %v276_v29, %v41_v6 }
 0x137   :  { %v66_v34 = vmul.f32 %v251_v31, %v57_v30 }
 0x138   :  { %v278_v32 = vpop.eup %277 }
 0x139   :  { %v58_v33 = vmul.f32 %v278_v32, %v42_v10  ;;  %v75_v37 = vadd.f32 %v252_v35, %v66_v34 }
 0x13b   :  { %v67_v36 = vmul.f32 %v251_v31, %v58_v33 }
 0x13d   :  { %v76_v38 = vadd.f32 %v252_v35, %v67_v36 }
 0x13f   :  { %v77_v39 = vpack.c.bf16 %v76_v38, %v75_v37 }
 0x141   :  { %261 = vmatmul.mubr.msk.bf16.vlgmr.msra.gmra.mrb[0].mxu0 %vm31_vm0, %v77_v39 }
 0x214   :  { %v167_v47 = vpop.f32.mrb[0].mxu0 }
 0x215   :  { %v203_v48 = vadd.f32 %v196_v45, %v167_v47  ;;  %v169_v49 = vpop.f32.mrb[1].mxu0 }
 0x216   :  { %v204_v50 = vadd.f32 %v200_v46, %v169_v49  ;;  %v171_v51 = vpop.f32.mrb[2].mxu0 }
 0x217   :  { %v207_v52 = vmul.f32 %v203_v48, %v203_v48  ;;  %v205_v53 = vadd.f32 %v196_v45, %v171_v51  ;;  %v173_v54 = vpop.f32.mrb[3].mxu0 }
 0x218   :  { %v208_v55 = vmul.f32 %v204_v50, %v204_v50  ;;  %v206_v56 = vadd.f32 %v200_v46, %v173_v54 }
 0x219   :  { %v211_v57 = vmul.f32 %v207_v52, %v203_v48  ;;  %v209_v58 = vmul.f32 %v205_v53, %v205_v53 }
 0x21a   :  { %v212_v59 = vmul.f32 %v208_v55, %v204_v50  ;;  %v210_v60 = vmul.f32 %v206_v56, %v206_v56 }
 0x21b   :  { %v215_v61 = vmul.f32 0.044715, %v211_v57  ;;  %v213_v62 = vmul.f32 %v209_v58, %v205_v53 }
 0x21c   :  { %v216_v63 = vmul.f32 0.044715, %v212_v59  ;;  %v214_v0 = vmul.f32 %v210_v60, %v206_v56 }
 0x21d   :  { %v219_v1 = vadd.f32 %v215_v61, %v203_v48  ;;  %v217_v2 = vmul.f32 0.044715, %v213_v62 }
 0x21e   :  { %v220_v3 = vadd.f32 %v216_v63, %v204_v50  ;;  %v218_v4 = vmul.f32 0.044715, %v214_v0 }
 0x21f   :  { %v223_v5 = vmul.f32 0.7978846, %v219_v1  ;;  %v221_v6 = vadd.f32 %v217_v2, %v205_v53 }
 0x220   :  { %v224_v7 = vmul.f32 0.7978846, %v220_v3  ;;  %v222_v8 = vadd.f32 %v218_v4, %v206_v56 }
 0x221   :  { %279 = vtanh.f32 %v223_v5  ;;  %v225_v9 = vmul.f32 0.7978846, %v221_v6 }
 0x222   :  { %281 = vtanh.f32 %v224_v7  ;;  %v226_v10 = vmul.f32 0.7978846, %v222_v8 }
 0x223   :  { %283 = vtanh.f32 %v225_v9 }
 0x224   :  { %285 = vtanh.f32 %v226_v10 }
 0x22b   :  { %v280_v11 = vpop.eup %279 }
 0x22c   :  { %v282_v12 = vpop.eup %281  ;;  %v231_v13 = vadd.f32 1.0, %v280_v11 }
 0x22d   :  { %v284_v14 = vpop.eup %283  ;;  %v232_v15 = vadd.f32 1.0, %v282_v12 }
 0x22e   :  { %v286_v16 = vpop.eup %285  ;;  %v235_v17 = vmul.f32 0.5, %v231_v13  ;;  %v233_v18 = vadd.f32 1.0, %v284_v14 }
 0x22f   :  { %v236_v19 = vmul.f32 0.5, %v232_v15  ;;  %v234_v20 = vadd.f32 1.0, %v286_v16 }
 0x230   :  { %v239_v21 = vmul.f32 %v235_v17, %v203_v48  ;;  %v237_v22 = vmul.f32 0.5, %v233_v18 }
 0x231   :  { %v240_v23 = vmul.f32 %v236_v19, %v204_v50  ;;  %v238_v24 = vmul.f32 0.5, %v234_v20 }
 0x232   :  { %243 = vst [vmem:[%s379_s5] sm:$0xff] %v239_v21  ;;  %v241_v25 = vmul.f32 %v237_v22, %v205_v53 }
 0x233   :  { %244 = vst [vmem:[%s379_s5 + $0x8] sm:$0xff] %v240_v23  ;;  %v242_v26 = vmul.f32 %v238_v24, %v206_v56 }
 0x234   :  { %245 = vst [vmem:[%s379_s5 + $0x10] sm:$0xff] %v241_v25 }
 0x235   :  { %246 = vst [vmem:[%s379_s5 + $0x18] sm:$0xff] %v242_v26 }

// kernel: pangu_forward.41
= control target key start
LH: loop header
LB: loop body
LE: loop exit
PB: predicated region body
PF: predicated region fallthrough
CT: control target
= control target key end

     0   :  { %vm22_vm0 = vcmask 523264   ;;  %v298_v18 = vmov 0.0   ;;  %s399_s1 = inlined_call_operand.vmem [shape: bf16[256,64], index: 1, kind: input, shape index: {}]   ;;  %s400_s0 = inlined_call_operand.vmem [shape: bf16[16,256], index: 0, kind: input, shape index: {}]   ;;  %s401_s2 = inlined_call_operand.vmem [shape: f32[1,64], index: 2, kind: input, shape index: {}]   ;;  %s402_s3 = inlined_call_operand.vmem [shape: f32[16,64], index: 3, kind: input, shape index: {}]   ;;  %s403_s4 = inlined_call_operand.vmem [shape: f32[16,64], index: 4, kind: output, shape index: {}]  }
   0x1   :  { %v279_v0 = vld [vmem:[%s399_s1 + $0x40] sm:$0xff]   ;;  %v281_v2 = vld [vmem:[%s399_s1 + $0x48] sm:$0xff]   ;;  %v283_v4 = vld [vmem:[%s399_s1 + $0x50] sm:$0xff]   ;;  %23 = vst.msk [vmem:[#allocation2] sm:$0xff] %vm22_vm0, %v298_v18 }
   0x2   :  { %v280_v1 = vld [vmem:[%s399_s1] sm:$0xff]   ;;  %256 = vmatprep.subr.bf16.mxu0 %v279_v0  ;;  %v282_v3 = vld [vmem:[%s399_s1 + $0x8] sm:$0xff]   ;;  %v284_v5 = vld [vmem:[%s399_s1 + $0x10] sm:$0xff]   ;;  %24 = vst.msk [vmem:[#allocation2 + $0x8] sm:$0xff] %vm22_vm0, %v298_v18 }
   0x3   :  { %257 = vmatpush3.bf16.msra.mxu0 %v280_v1  ;;  %v285_v6 = vld [vmem:[%s399_s1 + $0x58] sm:$0xff]   ;;  %v287_v8 = vld [vmem:[%s399_s1 + $0x60] sm:$0xff]   ;;  %v289_v10 = vld [vmem:[%s399_s1 + $0x68] sm:$0xff]  }
   0x4   :  { %258 = vmatprep.subr.bf16.mxu0 %v281_v2  ;;  %v286_v7 = vld [vmem:[%s399_s1 + $0x18] sm:$0xff]   ;;  %v288_v9 = vld [vmem:[%s399_s1 + $0x20] sm:$0xff]   ;;  %v290_v12 = vld [vmem:[%s399_s1 + $0x28] sm:$0xff]  }
   0x5   :  { %v297_v11 = vld [vmem:[%s400_s0 + $0x4] ss:$8 sps:$4 sm:$0xff]   ;;  %v291_v13 = vld [vmem:[%s399_s1 + $0x70] sm:$0xff]   ;;  %v293_v15 = vld [vmem:[%s399_s1 + $0x78] sm:$0xff]  }
   0x6   :  { %199 = vmatprep.mubr.bf16.mxu0 %v297_v11  ;;  %v292_v14 = vld [vmem:[%s399_s1 + $0x30] sm:$0xff]   ;;  %v294_v16 = vld [vmem:[%s399_s1 + $0x38] sm:$0xff]   ;;  %v295_v17 = vld [vmem:[%s400_s0] ss:$8 sps:$4 sm:$0xff]  }
   0x7   :  { %259 = vmatpush3.bf16.msra.mxu0 %v282_v3  ;;  %v255_v29 = vld [vmem:[%s401_s2] ss:$0 sm:$0xff]  ;;  %v228_v33 = vld [vmem:[%s402_s3 + $0x8] sm:$0xff] }
   0x8   :  { %260 = vmatprep.subr.bf16.mxu0 %v283_v4  ;;  %v27_v20 = vld [vmem:[#allocation2] sm:$0xff] }
   0x9   :  { %v28_v24 = vld [vmem:[#allocation2 + $0x8] sm:$0xff]  ;;  %v227_v31 = vld [vmem:[%s402_s3] sm:$0xff] }
   0xb   :  { %261 = vmatpush3.bf16.msra.mxu0 %v284_v5 }
   0xc   :  { %262 = vmatprep.subr.bf16.mxu0 %v285_v6 }
   0xf   :  { %263 = vmatpush3.bf16.msra.mxu0 %v286_v7 }
  0x10   :  { %264 = vmatprep.subr.bf16.mxu0 %v287_v8 }
  0x13   :  { %265 = vmatpush3.bf16.msra.mxu0 %v288_v9 }
  0x14   :  { %266 = vmatprep.subr.bf16.mxu0 %v289_v10 }
  0x17   :  { %267 = vmatpush3.bf16.msra.mxu0 %v290_v12 }
  0x18   :  { %268 = vmatprep.subr.bf16.mxu0 %v291_v13 }
  0x1b   :  { %269 = vmatpush3.bf16.msra.mxu0 %v292_v14 }
  0x1c   :  { %270 = vmatprep.subr.bf16.mxu0 %v293_v15 }
  0x1f   :  { %271 = vmatpush3.bf16.msra.mxu0 %v294_v16 }
  0x22   :  { %200 = vmatmul.mubr.bf16.vlgmr.msra.gmra.mrb[0].mxu0 %v295_v17 }
  0xf5   :  { %v272_v19 = vpop.f32.mrb[0].mxu0 }
  0xf6   :  { %v273_v21 = vpop.f32.mrb[1].mxu0 }
  0xf7   :  { %v274_v22 = vadd.f32 %v273_v21, %v272_v19  ;;  %v275_v23 = vpop.f32.mrb[2].mxu0 }
  0xf8   :  { %v276_v25 = vpop.f32.mrb[3].mxu0 }
  0xf9   :  { %v208_v26 = vadd.f32 %v274_v22, %v27_v20  ;;  %v277_v27 = vadd.f32 %v276_v25, %v275_v23 }
  0xfb   :  { %211 = vst.msk [vmem:[#allocation2] sm:$0xff] %vm22_vm0, %v208_v26  ;;  %v209_v28 = vadd.f32 %v277_v27, %v28_v24 }
  0xfd   :  { %212 = vst.msk [vmem:[#allocation2 + $0x8] sm:$0xff] %vm22_vm0, %v209_v28 }
 0x102   :  { %v216_v30 = vld [vmem:[#allocation2] sm:$0xff] }
 0x103   :  { %v225_v32 = vadd.f32 %v255_v29, %v216_v30 }
 0x104   :  { %v217_v34 = vld [vmem:[#allocation2 + $0x8] sm:$0xff] }
 0x105   :  { %v229_v35 = vadd.f32 %v227_v31, %v225_v32  ;;  %v226_v36 = vadd.f32 %v255_v29, %v217_v34 }
 0x107   :  { %231 = vst.msk [vmem:[%s403_s4] sm:$0xff] %vm22_vm0, %v229_v35  ;;  %v230_v37 = vadd.f32 %v228_v33, %v226_v36 }
 0x109   :  { %232 = vst.msk [vmem:[%s403_s4 + $0x8] sm:$0xff] %vm22_vm0, %v230_v37 }

// kernel: pangu_forward.47
= control target key start
LH: loop header
LB: loop body
LE: loop exit
PB: predicated region body
PF: predicated region fallthrough
CT: control target
= control target key end

     0   :  { %v162_v0 = vmov 0.0   ;;  %vm163_vm0 = vmmov 0   ;;  %vm62_vm1 = vcmask 523264   ;;  %s208_s1 = inlined_call_operand.vmem [shape: bf16[64,128], index: 1, kind: input, shape index: {}]   ;;  %s209_s0 = inlined_call_operand.vmem [shape: bf16[16,64], index: 0, kind: input, shape index: {}]   ;;  %s210_s2 = inlined_call_operand.vmem [shape: f32[1,128], index: 2, kind: input, shape index: {}]   ;;  %s211_s3 = inlined_call_operand.vmem [shape: f32[16,128], index: 3, kind: output, shape index: {}]  }
   0x1   :  { %143 = vmatprep.subr.bf16.mxu0 %v162_v0  ;;  %v157_v1 = vld [vmem:[%s208_s1] sm:$0xff]   ;;  %151 = vmatprep.mubr.msk.bf16.mxu0 %vm163_vm0, %v162_v0  ;;  %v158_v2 = vld [vmem:[%s208_s1 + $0x8] sm:$0xff]   ;;  %v159_v3 = vld [vmem:[%s208_s1 + $0x10] sm:$0xff]  }
   0x2   :  { %144 = vmatpush3.bf16.msra.mxu0 %v157_v1  ;;  %v160_v4 = vld [vmem:[%s208_s1 + $0x18] sm:$0xff]   ;;  %v161_v5 = vld [vmem:[%s209_s0] sm:$0xff]  }
   0x3   :  { %145 = vmatprep.subr.bf16.mxu0 %v162_v0  ;;  %v137_v6 = vld [vmem:[%s210_s2] ss:$0 sm:$0xff] }
   0x6   :  { %146 = vmatpush3.bf16.msra.mxu0 %v158_v2 }
   0x7   :  { %147 = vmatprep.subr.bf16.mxu0 %v162_v0 }
   0xa   :  { %148 = vmatpush3.bf16.msra.mxu0 %v159_v3 }
   0xb   :  { %149 = vmatprep.subr.bf16.mxu0 %v162_v0 }
   0xe   :  { %150 = vmatpush3.bf16.msra.mxu0 %v160_v4 }
  0x11   :  { %152 = vmatmul.mubr.msk.bf16.vlgmr.msra.gmra.mrb[0].mxu0 %vm62_vm1, %v161_v5 }
  0xe4   :  { %v100_v7 = vpop.f32.mrb[0].mxu0 }
  0xe5   :  { %v123_v8 = vadd.f32 %v137_v6, %v100_v7  ;;  %v153_v9 = vpop.f32.mrb[1].mxu0 }
  0xe6   :  { %v103_v10 = vpop.f32.mrb[2].mxu0 }
  0xe7   :  { %125 = vst [vmem:[%s211_s3] sm:$0xff] %v123_v8  ;;  %v124_v11 = vadd.f32 %v137_v6, %v103_v10  ;;  %v154_v12 = vpop.f32.mrb[3].mxu0 }
  0xe9   :  { %126 = vst [vmem:[%s211_s3 + $0x8] sm:$0xff] %v124_v11 }

// kernel: pangu_forward.48
= control target key start
LH: loop header
LB: loop body
LE: loop exit
PB: predicated region body
PF: predicated region fallthrough
CT: control target
= control target key end

     0   :  { %vm25_vm0 = vcmask 261120   ;;  %v387_v58 = vmov 0.0   ;;  %s565_s0 = inlined_call_operand.vmem [shape: f32[64,32], index: 0, kind: input, shape index: {}]   ;;  %s566_s1 = inlined_call_operand.vmem [shape: bf16[32,32], index: 1, kind: input, shape index: {}]   ;;  %s567_s3 = inlined_call_operand.vmem [shape: f32[1,32], index: 3, kind: input, shape index: {}]   ;;  %s568_s4 = inlined_call_operand.vmem [shape: f32[1,32], index: 4, kind: input, shape index: {}]   ;;  %s569_s2 = inlined_call_operand.vmem [shape: f32[1,32], index: 2, kind: input, shape index: {}]   ;;  %s570_s5 = inlined_call_operand.vmem [shape: f32[64,32], index: 5, kind: output, shape index: {}]  }
   0x1   :  { %v34_v0 = vld [vmem:[%s565_s0] sm:$0xff]  ;;  %v35_v2 = vld [vmem:[%s565_s0 + $0x8] sm:$0xff]  ;;  %v36_v8 = vld [vmem:[%s565_s0 + $0x10] sm:$0xff]  ;;  %28 = vst.msk [vmem:[#allocation2 + $0x10] sm:$0xff] %vm25_vm0, %v387_v58 }
   0x2   :  { %v38_v1 = vld [vmem:[%s565_s0 + $0x20] sm:$0xff]  ;;  %v43_v3 = vsel %vm25_vm0, %v34_v0, 0.0  ;;  %v39_v5 = vld [vmem:[%s565_s0 + $0x28] sm:$0xff]  ;;  %v46_v6 = vsel %vm25_vm0, %v35_v2, 0.0  ;;  %v37_v9 = vld [vmem:[%s565_s0 + $0x18] sm:$0xff]  ;;  %v49_v10 = vsel %vm25_vm0, %v36_v8, 0.0 }
   0x3   :  { %v55_v4 = vsel %vm25_vm0, %v38_v1, 0.0  ;;  %44 = vadd.xlane.f32.xlu0 %v43_v3  ;;  %v58_v7 = vsel %vm25_vm0, %v39_v5, 0.0  ;;  %v52_v11 = vsel %vm25_vm0, %v37_v9, 0.0  ;;  %v40_v12 = vld [vmem:[%s565_s0 + $0x30] sm:$0xff]  ;;  %v41_v13 = vld [vmem:[%s565_s0 + $0x38] sm:$0xff]  ;;  %v369_v56 = vld [vmem:[%s566_s1] sm:$0xff]  }
   0x4   :  { %56 = vadd.xlane.f32.xlu1 %v55_v4  ;;  %v61_v14 = vsel %vm25_vm0, %v40_v12, 0.0  ;;  %v64_v15 = vsel %vm25_vm0, %v41_v13, 0.0  ;;  %352 = vmatprep.subr.bf16.mxu0 %v369_v56  ;;  %v370_v57 = vld [vmem:[%s566_s1 + $0x8] sm:$0xff]   ;;  %26 = vst.msk [vmem:[#allocation2] sm:$0xff] %vm25_vm0, %v387_v58  ;;  %27 = vst.msk [vmem:[#allocation2 + $0x8] sm:$0xff] %vm25_vm0, %v387_v58 }
   0x5   :  { %364 = vmatprep.subr.bf16.mxu1 %v369_v56  ;;  %353 = vmatpush3.bf16.msra.mxu0 %v369_v56  ;;  %29 = vst.msk [vmem:[#allocation2 + $0x18] sm:$0xff] %vm25_vm0, %v387_v58  ;;  %30 = vst.msk [vmem:[#allocation2 + $0x20] sm:$0xff] %vm25_vm0, %v387_v58 }
   0x6   :  { %366 = vmatpush3.bf16.msra.mxu1 %v369_v56  ;;  %354 = vmatprep.subr.bf16.mxu0 %v370_v57  ;;  %31 = vst.msk [vmem:[#allocation2 + $0x28] sm:$0xff] %vm25_vm0, %v387_v58  ;;  %32 = vst.msk [vmem:[#allocation2 + $0x30] sm:$0xff] %vm25_vm0, %v387_v58 }
   0x7   :  { %47 = vadd.xlane.f32.xlu0 %v46_v6  ;;  %365 = vmatprep.subr.bf16.mxu1 %v370_v57  ;;  %33 = vst.msk [vmem:[#allocation2 + $0x38] sm:$0xff] %vm25_vm0, %v387_v58 }
   0x8   :  { %59 = vadd.xlane.f32.xlu1 %v58_v7 }
   0x9   :  { %355 = vmatpush3.bf16.msra.mxu0 %v370_v57 }
   0xa   :  { %367 = vmatpush3.bf16.msra.mxu1 %v370_v57 }
   0xb   :  { %50 = vadd.xlane.f32.xlu0 %v49_v10 }
   0xc   :  { %53 = vadd.xlane.f32.xlu1 %v52_v11 }
   0xf   :  { %62 = vadd.xlane.f32.xlu0 %v61_v14 }
  0x10   :  { %65 = vadd.xlane.f32.xlu1 %v64_v15 }
  0x90   :  { %v45_v16 = vpop.xlane.xlu0 %44 }
  0x91   :  { %v57_v17 = vpop.xlane.xlu1 %56  ;;  %v68_v18 = vmul.f32 0.03125, %v45_v16 }
  0x92   :  { %v72_v19 = vmul.f32 0.03125, %v57_v17 }
  0x93   :  { %v450_v20 = vsub.f32 %v34_v0, %v68_v18 }
  0x94   :  { %v452_v21 = vsub.f32 %v38_v1, %v72_v19  ;;  %v48_v22 = vpop.xlane.xlu0 %47 }
  0x95   :  { %v60_v23 = vpop.xlane.xlu1 %59  ;;  %v69_v24 = vmul.f32 0.03125, %v48_v22  ;;  %v84_v26 = vmul.f32 %v450_v20, %v450_v20  ;;  %v337_v22 = vld [vmem:[%s567_s3] ss:$0 sm:$0xff] }
  0x96   :  { %v73_v25 = vmul.f32 0.03125, %v60_v23  ;;  %v88_v27 = vmul.f32 %v452_v21, %v452_v21 }
  0x97   :  { %v458_v28 = vsub.f32 %v35_v2, %v69_v24  ;;  %v92_v30 = vsel %vm25_vm0, %v84_v26, 0.0 }
  0x98   :  { %v460_v29 = vsub.f32 %v39_v5, %v73_v25  ;;  %93 = vadd.xlane.f32.xlu0 %v92_v30  ;;  %v51_v31 = vpop.xlane.xlu0 %50  ;;  %v104_v33 = vsel %vm25_vm0, %v88_v27, 0.0  ;;  %v338_v30 = vld [vmem:[%s568_s4] ss:$0 sm:$0xff] }
  0x99   :  { %v54_v32 = vpop.xlane.xlu1 %53  ;;  %v70_v34 = vmul.f32 0.03125, %v51_v31  ;;  %v85_v36 = vmul.f32 %v458_v28, %v458_v28 }
  0x9a   :  { %v71_v35 = vmul.f32 0.03125, %v54_v32  ;;  %v89_v37 = vmul.f32 %v460_v29, %v460_v29 }
  0x9b   :  { %v468_v38 = vsub.f32 %v36_v8, %v70_v34  ;;  %v95_v40 = vsel %vm25_vm0, %v85_v36, 0.0 }
  0x9c   :  { %v470_v39 = vsub.f32 %v37_v9, %v71_v35  ;;  %105 = vadd.xlane.f32.xlu0 %v104_v33  ;;  %96 = vadd.xlane.f32.xlu1 %v95_v40  ;;  %v63_v41 = vpop.xlane.xlu0 %62  ;;  %v107_v43 = vsel %vm25_vm0, %v89_v37, 0.0 }
  0x9d   :  { %v66_v42 = vpop.xlane.xlu1 %65  ;;  %v74_v44 = vmul.f32 0.03125, %v63_v41  ;;  %v86_v46 = vmul.f32 %v468_v38, %v468_v38 }
  0x9e   :  { %v75_v45 = vmul.f32 0.03125, %v66_v42  ;;  %v87_v47 = vmul.f32 %v470_v39, %v470_v39 }
  0x9f   :  { %v478_v48 = vsub.f32 %v40_v12, %v74_v44  ;;  %v98_v50 = vsel %vm25_vm0, %v86_v46, 0.0 }
  0xa0   :  { %v480_v49 = vsub.f32 %v41_v13, %v75_v45  ;;  %108 = vadd.xlane.f32.xlu1 %v107_v43  ;;  %99 = vadd.xlane.f32.xlu0 %v98_v50  ;;  %v101_v51 = vsel %vm25_vm0, %v87_v47, 0.0 }
  0xa1   :  { %v90_v52 = vmul.f32 %v478_v48, %v478_v48 }
  0xa2   :  { %v91_v53 = vmul.f32 %v480_v49, %v480_v49 }
  0xa3   :  { %v110_v54 = vsel %vm25_vm0, %v90_v52, 0.0 }
  0xa4   :  { %102 = vadd.xlane.f32.xlu1 %v101_v51  ;;  %111 = vadd.xlane.f32.xlu0 %v110_v54  ;;  %v113_v55 = vsel %vm25_vm0, %v91_v53, 0.0 }
  0xa8   :  { %114 = vadd.xlane.f32.xlu1 %v113_v55 }
 0x125   :  { %v94_v59 = vpop.xlane.xlu0 %93 }
 0x126   :  { %v116_v60 = vmul.f32 0.03125, %v94_v59  ;;  %v182_v59 = vld [vmem:[#allocation2] sm:$0xff] }
 0x128   :  { %v124_v61 = vadd.f32 1e-05, %v116_v60 }
 0x129   :  { %v97_v62 = vpop.xlane.xlu1 %96  ;;  %v106_v63 = vpop.xlane.xlu0 %105 }
 0x12a   :  { %371 = vrsqrt.f32 %v124_v61  ;;  %v117_v0 = vmul.f32 0.03125, %v97_v62  ;;  %v120_v1 = vmul.f32 0.03125, %v106_v63  ;;  %v185_v61 = vld [vmem:[#allocation2 + $0x18] sm:$0xff]  ;;  %v183_v63 = vld [vmem:[#allocation2 + $0x8] sm:$0xff] }
 0x12c   :  { %v125_v2 = vadd.f32 1e-05, %v117_v0  ;;  %v128_v3 = vadd.f32 1e-05, %v120_v1 }
 0x12d   :  { %v109_v4 = vpop.xlane.xlu1 %108  ;;  %v100_v5 = vpop.xlane.xlu0 %99 }
 0x12e   :  { %373 = vrsqrt.f32 %v125_v2  ;;  %v121_v6 = vmul.f32 0.03125, %v109_v4  ;;  %v118_v7 = vmul.f32 0.03125, %v100_v5  ;;  %v188_v2 = vld [vmem:[#allocation2 + $0x30] sm:$0xff]  ;;  %v186_v5 = vld [vmem:[#allocation2 + $0x20] sm:$0xff] }
 0x12f   :  { %375 = vrsqrt.f32 %v128_v3 }
 0x130   :  { %v129_v8 = vadd.f32 1e-05, %v121_v6  ;;  %v126_v9 = vadd.f32 1e-05, %v118_v7 }
 0x131   :  { %v103_v10 = vpop.xlane.xlu1 %102  ;;  %v112_v11 = vpop.xlane.xlu0 %111 }
 0x132   :  { %377 = vrsqrt.f32 %v129_v8  ;;  %v119_v12 = vmul.f32 0.03125, %v103_v10  ;;  %v122_v13 = vmul.f32 0.03125, %v112_v11  ;;  %v189_v8 = vld [vmem:[#allocation2 + $0x38] sm:$0xff]  ;;  %v187_v11 = vld [vmem:[#allocation2 + $0x28] sm:$0xff] }
 0x133   :  { %379 = vrsqrt.f32 %v126_v9 }
 0x134   :  { %v372_v14 = vpop.eup %371  ;;  %v127_v15 = vadd.f32 1e-05, %v119_v12  ;;  %v130_v16 = vadd.f32 1e-05, %v122_v13 }
 0x135   :  { %v115_v17 = vpop.xlane.xlu1 %114  ;;  %v140_v18 = vmul.f32 %v372_v14, %v450_v20 }
 0x136   :  { %381 = vrsqrt.f32 %v127_v15  ;;  %v123_v19 = vmul.f32 0.03125, %v115_v17 }
 0x137   :  { %383 = vrsqrt.f32 %v130_v16  ;;  %v155_v27 = vmul.f32 %v337_v22, %v140_v18  ;;  %v345_v16 = vld [vmem:[%s569_s2] ss:$0 sm:$0xff] }
 0x138   :  { %v374_v23 = vpop.eup %373  ;;  %v131_v24 = vadd.f32 1e-05, %v123_v19 }
 0x139   :  { %v376_v25 = vpop.eup %375  ;;  %v141_v26 = vmul.f32 %v374_v23, %v458_v28  ;;  %v170_v34 = vadd.f32 %v338_v30, %v155_v27 }
 0x13a   :  { %385 = vrsqrt.f32 %v131_v24  ;;  %v144_v20 = vmul.f32 %v376_v25, %v452_v21 }
 0x13b   :  { %v156_v31 = vmul.f32 %v337_v22, %v141_v26 }
 0x13c   :  { %v378_v32 = vpop.eup %377  ;;  %v159_v37 = vmul.f32 %v337_v22, %v144_v20 }
 0x13d   :  { %v380_v33 = vpop.eup %379  ;;  %v171_v35 = vadd.f32 %v338_v30, %v156_v31  ;;  %v145_v36 = vmul.f32 %v378_v32, %v460_v29 }
 0x13e   :  { %v142_v40 = vmul.f32 %v380_v33, %v468_v38  ;;  %v174_v45 = vadd.f32 %v338_v30, %v159_v37 }
 0x13f   :  { %v178_v41 = vpack.c.bf16 %v171_v35, %v170_v34  ;;  %v160_v28 = vmul.f32 %v337_v22, %v145_v36 }
 0x140   :  { %v382_v42 = vpop.eup %381  ;;  %v157_v46 = vmul.f32 %v337_v22, %v142_v40 }
 0x141   :  { %v384_v43 = vpop.eup %383  ;;  %v143_v44 = vmul.f32 %v382_v42, %v470_v39  ;;  %356 = vmatprep.mubr.msk.bf16.mxu0 %vm25_vm0, %v178_v41  ;;  %v175_v21 = vadd.f32 %v338_v30, %v160_v28 }
 0x142   :  { %v146_v47 = vmul.f32 %v384_v43, %v478_v48  ;;  %v172_v38 = vadd.f32 %v338_v30, %v157_v46  ;;  %v184_v48 = vld [vmem:[#allocation2 + $0x10] sm:$0xff] }
 0x143   :  { %v180_v50 = vpack.c.bf16 %v175_v21, %v174_v45  ;;  %v158_v51 = vmul.f32 %v337_v22, %v143_v44 }
 0x144   :  { %v386_v52 = vpop.eup %385  ;;  %v161_v54 = vmul.f32 %v337_v22, %v146_v47 }
 0x145   :  { %v147_v29 = vmul.f32 %v386_v52, %v480_v49  ;;  %360 = vmatprep.mubr.msk.bf16.mxu1 %vm25_vm0, %v180_v50  ;;  %v173_v53 = vadd.f32 %v338_v30, %v158_v51 }
 0x146   :  { %v176_v39 = vadd.f32 %v338_v30, %v161_v54 }
 0x147   :  { %v179_v55 = vpack.c.bf16 %v173_v53, %v172_v38  ;;  %v162_v56 = vmul.f32 %v337_v22, %v147_v29 }
 0x149   :  { %357 = vmatmul.mubr.msk.bf16.vlgmr.msra.gmra.mrb[0].mxu0 %vm25_vm0, %v179_v55  ;;  %v177_v57 = vadd.f32 %v338_v30, %v162_v56 }
 0x14b   :  { %v181_v58 = vpack.c.bf16 %v177_v57, %v176_v39 }
 0x14d   :  { %361 = vmatmul.mubr.msk.bf16.vlgmr.msra.gmra.mrb[0].mxu1 %vm25_vm0, %v181_v58 }
 0x21c   :  { %v358_v60 = vpop.f32.mrb[0].mxu0 }
 0x21d   :  { %v285_v62 = vadd.f32 %v358_v60, %v184_v48  ;;  %v252_v49 = vpop.f32.mrb[1].mxu0 }
 0x21e   :  { %v283_v0 = vadd.f32 %v252_v49, %v182_v59  ;;  %v359_v1 = vpop.f32.mrb[2].mxu0 }
 0x21f   :  { %293 = vst.msk [vmem:[#allocation2 + $0x10] sm:$0xff] %vm25_vm0, %v285_v62  ;;  %v286_v3 = vadd.f32 %v359_v1, %v185_v61  ;;  %v255_v4 = vpop.f32.mrb[3].mxu0 }
 0x220   :  { %291 = vst.msk [vmem:[#allocation2] sm:$0xff] %vm25_vm0, %v283_v0  ;;  %v284_v6 = vadd.f32 %v255_v4, %v183_v63  ;;  %v362_v7 = vpop.f32.mrb[0].mxu1 }
 0x221   :  { %294 = vst.msk [vmem:[#allocation2 + $0x18] sm:$0xff] %vm25_vm0, %v286_v3  ;;  %v289_v9 = vadd.f32 %v362_v7, %v188_v2  ;;  %v268_v10 = vpop.f32.mrb[1].mxu1 }
 0x222   :  { %292 = vst.msk [vmem:[#allocation2 + $0x8] sm:$0xff] %vm25_vm0, %v284_v6  ;;  %v287_v12 = vadd.f32 %v268_v10, %v186_v5  ;;  %v363_v13 = vpop.f32.mrb[2].mxu1 }
 0x223   :  { %297 = vst.msk [vmem:[#allocation2 + $0x30] sm:$0xff] %vm25_vm0, %v289_v9  ;;  %v290_v14 = vadd.f32 %v363_v13, %v189_v8  ;;  %v271_v15 = vpop.f32.mrb[3].mxu1 }
 0x224   :  { %295 = vst.msk [vmem:[#allocation2 + $0x20] sm:$0xff] %vm25_vm0, %v287_v12  ;;  %v288_v17 = vadd.f32 %v271_v15, %v187_v11 }
 0x225   :  { %298 = vst.msk [vmem:[#allocation2 + $0x38] sm:$0xff] %vm25_vm0, %v290_v14 }
 0x226   :  { %v304_v18 = vld [vmem:[#allocation2 + $0x10] sm:$0xff]  ;;  %296 = vst.msk [vmem:[#allocation2 + $0x28] sm:$0xff] %vm25_vm0, %v288_v17 }
 0x227   :  { %v319_v19 = vadd.f32 %v345_v16, %v304_v18  ;;  %v302_v22 = vld [vmem:[#allocation2] sm:$0xff] }
 0x228   :  { %v317_v23 = vadd.f32 %v345_v16, %v302_v22  ;;  %v305_v24 = vld [vmem:[#allocation2 + $0x18] sm:$0xff] }
 0x229   :  { %327 = vst.msk [vmem:[%s570_s5 + $0x10] sm:$0xff] %vm25_vm0, %v319_v19  ;;  %v320_v25 = vadd.f32 %v345_v16, %v305_v24  ;;  %v303_v26 = vld [vmem:[#allocation2 + $0x8] sm:$0xff] }
 0x22a   :  { %325 = vst.msk [vmem:[%s570_s5] sm:$0xff] %vm25_vm0, %v317_v23  ;;  %v318_v27 = vadd.f32 %v345_v16, %v303_v26  ;;  %v308_v30 = vld [vmem:[#allocation2 + $0x30] sm:$0xff] }
 0x22b   :  { %328 = vst.msk [vmem:[%s570_s5 + $0x18] sm:$0xff] %vm25_vm0, %v320_v25  ;;  %v323_v20 = vadd.f32 %v345_v16, %v308_v30  ;;  %v306_v31 = vld [vmem:[#allocation2 + $0x20] sm:$0xff] }
 0x22c   :  { %326 = vst.msk [vmem:[%s570_s5 + $0x8] sm:$0xff] %vm25_vm0, %v318_v27  ;;  %v321_v32 = vadd.f32 %v345_v16, %v306_v31  ;;  %v309_v33 = vld [vmem:[#allocation2 + $0x38] sm:$0xff] }
 0x22d   :  { %331 = vst.msk [vmem:[%s570_s5 + $0x30] sm:$0xff] %vm25_vm0, %v323_v20  ;;  %v324_v34 = vadd.f32 %v345_v16, %v309_v33  ;;  %v307_v35 = vld [vmem:[#allocation2 + $0x28] sm:$0xff] }
 0x22e   :  { %329 = vst.msk [vmem:[%s570_s5 + $0x20] sm:$0xff] %vm25_vm0, %v321_v32  ;;  %v322_v36 = vadd.f32 %v345_v16, %v307_v35 }
 0x22f   :  { %332 = vst.msk [vmem:[%s570_s5 + $0x38] sm:$0xff] %vm25_vm0, %v324_v34 }
 0x230   :  { %330 = vst.msk [vmem:[%s570_s5 + $0x28] sm:$0xff] %vm25_vm0, %v322_v36 }

// kernel: pangu_forward.55
= control target key start
LH: loop header
LB: loop body
LE: loop exit
PB: predicated region body
PF: predicated region fallthrough
CT: control target
= control target key end

     0   :  { %vm35_vm0 = vcmask 261120   ;;  %s143_s0 = inlined_call_operand.vmem [shape: f32[64,32], index: 0, kind: input, shape index: {}]   ;;  %s144_s1 = inlined_call_operand.vmem [shape: f32[64,32], index: 1, kind: input, shape index: {}]   ;;  %s145_s2 = inlined_call_operand.vmem [shape: f32[64,32], index: 2, kind: output, shape index: {}]  }
   0x1   :  { %v11_v0 = vld [vmem:[%s143_s0] sm:$0xff]  ;;  %v12_v2 = vld [vmem:[%s143_s0 + $0x8] sm:$0xff]  ;;  %v13_v5 = vld [vmem:[%s143_s0 + $0x10] sm:$0xff] }
   0x2   :  { %v19_v1 = vld [vmem:[%s144_s1] sm:$0xff]  ;;  %v20_v4 = vld [vmem:[%s144_s1 + $0x8] sm:$0xff]  ;;  %v21_v6 = vld [vmem:[%s144_s1 + $0x10] sm:$0xff] }
   0x3   :  { %v27_v3 = vadd.f32 %v19_v1, %v11_v0  ;;  %v28_v7 = vadd.f32 %v20_v4, %v12_v2  ;;  %v29_v8 = vadd.f32 %v21_v6, %v13_v5  ;;  %v14_v9 = vld [vmem:[%s143_s0 + $0x18] sm:$0xff]  ;;  %v15_v11 = vld [vmem:[%s143_s0 + $0x20] sm:$0xff]  ;;  %v16_v14 = vld [vmem:[%s143_s0 + $0x28] sm:$0xff] }
   0x4   :  { %v22_v10 = vld [vmem:[%s144_s1 + $0x18] sm:$0xff]  ;;  %v23_v13 = vld [vmem:[%s144_s1 + $0x20] sm:$0xff]  ;;  %v24_v15 = vld [vmem:[%s144_s1 + $0x28] sm:$0xff] }
   0x5   :  { %36 = vst.msk [vmem:[%s145_s2] sm:$0xff] %vm35_vm0, %v27_v3  ;;  %v30_v12 = vadd.f32 %v22_v10, %v14_v9  ;;  %37 = vst.msk [vmem:[%s145_s2 + $0x8] sm:$0xff] %vm35_vm0, %v28_v7  ;;  %v31_v16 = vadd.f32 %v23_v13, %v15_v11  ;;  %v32_v17 = vadd.f32 %v24_v15, %v16_v14  ;;  %v17_v18 = vld [vmem:[%s143_s0 + $0x30] sm:$0xff]  ;;  %v18_v20 = vld [vmem:[%s143_s0 + $0x38] sm:$0xff] }
   0x6   :  { %38 = vst.msk [vmem:[%s145_s2 + $0x10] sm:$0xff] %vm35_vm0, %v29_v8  ;;  %v25_v19 = vld [vmem:[%s144_s1 + $0x30] sm:$0xff]  ;;  %v26_v22 = vld [vmem:[%s144_s1 + $0x38] sm:$0xff] }
   0x7   :  { %39 = vst.msk [vmem:[%s145_s2 + $0x18] sm:$0xff] %vm35_vm0, %v30_v12  ;;  %v33_v21 = vadd.f32 %v25_v19, %v17_v18  ;;  %40 = vst.msk [vmem:[%s145_s2 + $0x20] sm:$0xff] %vm35_vm0, %v31_v16  ;;  %v34_v23 = vadd.f32 %v26_v22, %v18_v20 }
   0x8   :  { %41 = vst.msk [vmem:[%s145_s2 + $0x28] sm:$0xff] %vm35_vm0, %v32_v17 }
   0x9   :  { %42 = vst.msk [vmem:[%s145_s2 + $0x30] sm:$0xff] %vm35_vm0, %v33_v21  ;;  %43 = vst.msk [vmem:[%s145_s2 + $0x38] sm:$0xff] %vm35_vm0, %v34_v23 }

// kernel: pangu_forward.49
= control target key start
LH: loop header
LB: loop body
LE: loop exit
PB: predicated region body
PF: predicated region fallthrough
CT: control target
= control target key end

     0   :  { %vm19_vm0 = vcmask 261120   ;;  %v283_v1 = vmov 0.0   ;;  %vm96_vm1 = vcmask 523264   ;;  %s383_s1 = inlined_call_operand.vmem [shape: bf16[64,32], index: 1, kind: input, shape index: {}]   ;;  %s384_s0 = inlined_call_operand.vmem [shape: bf16[64,64], index: 0, kind: input, shape index: {}]   ;;  %s385_s2 = inlined_call_operand.vmem [shape: f32[1,32], index: 2, kind: input, shape index: {}]   ;;  %s386_s3 = inlined_call_operand.vmem [shape: f32[64,32], index: 3, kind: output, shape index: {}]  }
   0x1   :  { %v275_v0 = vld [vmem:[%s383_s1] sm:$0xff]   ;;  %22 = vst.msk [vmem:[#allocation2 + $0x10] sm:$0xff] %vm19_vm0, %v283_v1  ;;  %20 = vst.msk [vmem:[#allocation2] sm:$0xff] %vm19_vm0, %v283_v1  ;;  %v276_v2 = vld [vmem:[%s383_s1 + $0x8] sm:$0xff]  }
   0x2   :  { %21 = vst.msk [vmem:[#allocation2 + $0x8] sm:$0xff] %vm19_vm0, %v283_v1  ;;  %23 = vst.msk [vmem:[#allocation2 + $0x18] sm:$0xff] %vm19_vm0, %v283_v1  ;;  %250 = vmatprep.subr.bf16.mxu0 %v275_v0  ;;  %266 = vmatprep.subr.bf16.mxu1 %v275_v0  ;;  %v277_v3 = vld [vmem:[%s383_s1 + $0x10] sm:$0xff]   ;;  %v279_v4 = vld [vmem:[%s384_s0] sm:$0xff]  }
   0x3   :  { %24 = vst.msk [vmem:[#allocation2 + $0x20] sm:$0xff] %vm19_vm0, %v283_v1  ;;  %25 = vst.msk [vmem:[#allocation2 + $0x28] sm:$0xff] %vm19_vm0, %v283_v1  ;;  %251 = vmatpush3.bf16.msra.mxu0 %v275_v0  ;;  %270 = vmatpush3.bf16.msra.mxu1 %v275_v0  ;;  %v280_v5 = vld [vmem:[%s384_s0 + $0x10] sm:$0xff]   ;;  %v278_v6 = vld [vmem:[%s383_s1 + $0x18] sm:$0xff]  }
   0x4   :  { %26 = vst.msk [vmem:[#allocation2 + $0x30] sm:$0xff] %vm19_vm0, %v283_v1  ;;  %27 = vst.msk [vmem:[#allocation2 + $0x38] sm:$0xff] %vm19_vm0, %v283_v1  ;;  %252 = vmatprep.subr.bf16.mxu0 %v276_v2  ;;  %267 = vmatprep.subr.bf16.mxu1 %v276_v2  ;;  %v281_v7 = vld [vmem:[%s384_s0 + $0x8] sm:$0xff]   ;;  %v282_v8 = vld [vmem:[%s384_s0 + $0x18] sm:$0xff]  }
   0x5   :  { %258 = vmatprep.mubr.msk.bf16.mxu0 %vm96_vm1, %v279_v4  ;;  %262 = vmatprep.mubr.msk.bf16.mxu1 %vm96_vm1, %v280_v5  ;;  %v241_v33 = vld [vmem:[%s385_s2] ss:$0 sm:$0xff] }
   0x7   :  { %253 = vmatpush3.bf16.msra.mxu0 %v276_v2  ;;  %271 = vmatpush3.bf16.msra.mxu1 %v276_v2 }
   0x8   :  { %254 = vmatprep.subr.bf16.mxu0 %v277_v3  ;;  %268 = vmatprep.subr.bf16.mxu1 %v277_v3  ;;  %v38_v9 = vld [vmem:[#allocation2 + $0x10] sm:$0xff]  ;;  %v36_v11 = vld [vmem:[#allocation2] sm:$0xff] }
   0x9   :  { %v39_v15 = vld [vmem:[#allocation2 + $0x18] sm:$0xff]  ;;  %v37_v21 = vld [vmem:[#allocation2 + $0x8] sm:$0xff] }
   0xa   :  { %v40_v12 = vld [vmem:[#allocation2 + $0x20] sm:$0xff]  ;;  %v41_v22 = vld [vmem:[#allocation2 + $0x28] sm:$0xff] }
   0xb   :  { %255 = vmatpush3.bf16.msra.mxu0 %v277_v3  ;;  %272 = vmatpush3.bf16.msra.mxu1 %v277_v3  ;;  %v42_v10 = vld [vmem:[#allocation2 + $0x30] sm:$0xff]  ;;  %v43_v16 = vld [vmem:[#allocation2 + $0x38] sm:$0xff] }
   0xc   :  { %256 = vmatprep.subr.bf16.mxu0 %v278_v6  ;;  %269 = vmatprep.subr.bf16.mxu1 %v278_v6 }
   0xf   :  { %257 = vmatpush3.bf16.msra.mxu0 %v278_v6  ;;  %273 = vmatpush3.bf16.msra.mxu1 %v278_v6 }
  0x12   :  { %259 = vmatmul.mubr.msk.bf16.vlgmr.msra.gmra.mrb[0].mxu0 %vm96_vm1, %v281_v7  ;;  %263 = vmatmul.mubr.msk.bf16.vlgmr.msra.gmra.mrb[0].mxu1 %vm96_vm1, %v282_v8 }
  0xe5   :  { %v260_v13 = vpop.f32.mrb[0].mxu0  ;;  %v264_v14 = vpop.f32.mrb[0].mxu1 }
  0xe6   :  { %v176_v17 = vadd.f32 %v260_v13, %v38_v9  ;;  %v180_v18 = vadd.f32 %v264_v14, %v42_v10  ;;  %v143_v19 = vpop.f32.mrb[1].mxu0  ;;  %v159_v20 = vpop.f32.mrb[1].mxu1 }
  0xe7   :  { %v174_v23 = vadd.f32 %v143_v19, %v36_v11  ;;  %v178_v24 = vadd.f32 %v159_v20, %v40_v12  ;;  %v261_v25 = vpop.f32.mrb[2].mxu0  ;;  %v265_v26 = vpop.f32.mrb[2].mxu1 }
  0xe8   :  { %185 = vst.msk [vmem:[#allocation2 + $0x10] sm:$0xff] %vm19_vm0, %v176_v17  ;;  %189 = vst.msk [vmem:[#allocation2 + $0x30] sm:$0xff] %vm19_vm0, %v180_v18  ;;  %v177_v27 = vadd.f32 %v261_v25, %v39_v15  ;;  %v181_v28 = vadd.f32 %v265_v26, %v43_v16  ;;  %v146_v29 = vpop.f32.mrb[3].mxu0  ;;  %v162_v30 = vpop.f32.mrb[3].mxu1 }
  0xe9   :  { %183 = vst.msk [vmem:[#allocation2] sm:$0xff] %vm19_vm0, %v174_v23  ;;  %187 = vst.msk [vmem:[#allocation2 + $0x20] sm:$0xff] %vm19_vm0, %v178_v24  ;;  %v175_v31 = vadd.f32 %v146_v29, %v37_v21  ;;  %v179_v32 = vadd.f32 %v162_v30, %v41_v22 }
  0xea   :  { %186 = vst.msk [vmem:[#allocation2 + $0x18] sm:$0xff] %vm19_vm0, %v177_v27  ;;  %190 = vst.msk [vmem:[#allocation2 + $0x38] sm:$0xff] %vm19_vm0, %v181_v28 }
  0xeb   :  { %184 = vst.msk [vmem:[#allocation2 + $0x8] sm:$0xff] %vm19_vm0, %v175_v31  ;;  %188 = vst.msk [vmem:[#allocation2 + $0x28] sm:$0xff] %vm19_vm0, %v179_v32 }
  0xef   :  { %v196_v34 = vld [vmem:[#allocation2 + $0x10] sm:$0xff] }
  0xf0   :  { %v200_v35 = vld [vmem:[#allocation2 + $0x30] sm:$0xff]  ;;  %v211_v36 = vadd.f32 %v241_v33, %v196_v34  ;;  %v194_v38 = vld [vmem:[#allocation2] sm:$0xff] }
  0xf1   :  { %v215_v37 = vadd.f32 %v241_v33, %v200_v35  ;;  %v198_v39 = vld [vmem:[#allocation2 + $0x20] sm:$0xff]  ;;  %v209_v40 = vadd.f32 %v241_v33, %v194_v38  ;;  %v197_v42 = vld [vmem:[#allocation2 + $0x18] sm:$0xff] }
  0xf2   :  { %v213_v41 = vadd.f32 %v241_v33, %v198_v39  ;;  %v201_v43 = vld [vmem:[#allocation2 + $0x38] sm:$0xff]  ;;  %219 = vst.msk [vmem:[%s386_s3 + $0x10] sm:$0xff] %vm19_vm0, %v211_v36  ;;  %v212_v44 = vadd.f32 %v241_v33, %v197_v42  ;;  %v195_v46 = vld [vmem:[#allocation2 + $0x8] sm:$0xff] }
  0xf3   :  { %223 = vst.msk [vmem:[%s386_s3 + $0x30] sm:$0xff] %vm19_vm0, %v215_v37  ;;  %v216_v45 = vadd.f32 %v241_v33, %v201_v43  ;;  %v199_v47 = vld [vmem:[#allocation2 + $0x28] sm:$0xff]  ;;  %217 = vst.msk [vmem:[%s386_s3] sm:$0xff] %vm19_vm0, %v209_v40  ;;  %v210_v48 = vadd.f32 %v241_v33, %v195_v46 }
  0xf4   :  { %221 = vst.msk [vmem:[%s386_s3 + $0x20] sm:$0xff] %vm19_vm0, %v213_v41  ;;  %v214_v49 = vadd.f32 %v241_v33, %v199_v47  ;;  %220 = vst.msk [vmem:[%s386_s3 + $0x18] sm:$0xff] %vm19_vm0, %v212_v44 }
  0xf5   :  { %224 = vst.msk [vmem:[%s386_s3 + $0x38] sm:$0xff] %vm19_vm0, %v216_v45  ;;  %218 = vst.msk [vmem:[%s386_s3 + $0x8] sm:$0xff] %vm19_vm0, %v210_v48 }
  0xf6   :  { %222 = vst.msk [vmem:[%s386_s3 + $0x28] sm:$0xff] %vm19_vm0, %v214_v49 }

// kernel: pangu_forward.56
= control target key start
LH: loop header
LB: loop body
LE: loop exit
PB: predicated region body
PF: predicated region fallthrough
CT: control target
= control target key end

     0   :  { %vm19_vm0 = vcmask 195584   ;;  %v173_v1 = vmov 0.0   ;;  %vm58_vm1 = vcmask 261120   ;;  %s233_s1 = inlined_call_operand.vmem [shape: bf16[32,24], index: 1, kind: input, shape index: {}]   ;;  %s234_s0 = inlined_call_operand.vmem [shape: bf16[32,32], index: 0, kind: input, shape index: {}]   ;;  %s235_s2 = inlined_call_operand.vmem [shape: f32[1,24], index: 2, kind: input, shape index: {}]   ;;  %s236_s3 = inlined_call_operand.vmem [shape: f32[32,24], index: 3, kind: output, shape index: {}]  }
   0x1   :  { %v169_v0 = vld [vmem:[%s233_s1] sm:$0xff]   ;;  %22 = vst.msk [vmem:[#allocation2 + $0x10] sm:$0xff] %vm19_vm0, %v173_v1  ;;  %20 = vst.msk [vmem:[#allocation2] sm:$0xff] %vm19_vm0, %v173_v1  ;;  %v170_v2 = vld [vmem:[%s233_s1 + $0x8] sm:$0xff]  }
   0x2   :  { %21 = vst.msk [vmem:[#allocation2 + $0x8] sm:$0xff] %vm19_vm0, %v173_v1  ;;  %23 = vst.msk [vmem:[#allocation2 + $0x18] sm:$0xff] %vm19_vm0, %v173_v1  ;;  %160 = vmatprep.subr.bf16.mxu0 %v169_v0  ;;  %v171_v3 = vld [vmem:[%s234_s0] sm:$0xff]   ;;  %v172_v4 = vld [vmem:[%s234_s0 + $0x8] sm:$0xff]  }
   0x3   :  { %161 = vmatpush3.bf16.msra.mxu0 %v169_v0  ;;  %164 = vmatprep.mubr.msk.bf16.mxu0 %vm58_vm1, %v171_v3  ;;  %v155_v17 = vld [vmem:[%s235_s2] ss:$0 sm:$0xff] }
   0x4   :  { %162 = vmatprep.subr.bf16.mxu0 %v170_v2 }
   0x7   :  { %163 = vmatpush3.bf16.msra.mxu0 %v170_v2 }
   0x8   :  { %v30_v5 = vld [vmem:[#allocation2 + $0x10] sm:$0xff]  ;;  %v28_v6 = vld [vmem:[#allocation2] sm:$0xff] }
   0x9   :  { %v31_v8 = vld [vmem:[#allocation2 + $0x18] sm:$0xff]  ;;  %v29_v11 = vld [vmem:[#allocation2 + $0x8] sm:$0xff] }
   0xa   :  { %165 = vmatmul.mubr.msk.bf16.vlgmr.msra.gmra.mrb[0].mxu0 %vm58_vm1, %v172_v4 }
  0xdd   :  { %v166_v7 = vpop.f32.mrb[0].mxu0 }
  0xde   :  { %v116_v9 = vadd.f32 %v166_v7, %v30_v5  ;;  %v99_v10 = vpop.f32.mrb[1].mxu0 }
  0xdf   :  { %v114_v12 = vadd.f32 %v99_v10, %v28_v6  ;;  %v167_v13 = vpop.f32.mrb[2].mxu0 }
  0xe0   :  { %121 = vst.msk [vmem:[#allocation2 + $0x10] sm:$0xff] %vm19_vm0, %v116_v9  ;;  %v117_v14 = vadd.f32 %v167_v13, %v31_v8  ;;  %v102_v15 = vpop.f32.mrb[3].mxu0 }
  0xe1   :  { %119 = vst.msk [vmem:[#allocation2] sm:$0xff] %vm19_vm0, %v114_v12  ;;  %v115_v16 = vadd.f32 %v102_v15, %v29_v11 }
  0xe2   :  { %122 = vst.msk [vmem:[#allocation2 + $0x18] sm:$0xff] %vm19_vm0, %v117_v14 }
  0xe3   :  { %120 = vst.msk [vmem:[#allocation2 + $0x8] sm:$0xff] %vm19_vm0, %v115_v16 }
  0xe7   :  { %v128_v18 = vld [vmem:[#allocation2 + $0x10] sm:$0xff] }
  0xe8   :  { %v139_v19 = vadd.f32 %v155_v17, %v128_v18  ;;  %v126_v20 = vld [vmem:[#allocation2] sm:$0xff] }
  0xe9   :  { %v137_v21 = vadd.f32 %v155_v17, %v126_v20  ;;  %v129_v22 = vld [vmem:[#allocation2 + $0x18] sm:$0xff] }
  0xea   :  { %143 = vst.msk [vmem:[%s236_s3 + $0x10] sm:$0xff] %vm19_vm0, %v139_v19  ;;  %v140_v23 = vadd.f32 %v155_v17, %v129_v22  ;;  %v127_v24 = vld [vmem:[#allocation2 + $0x8] sm:$0xff] }
  0xeb   :  { %141 = vst.msk [vmem:[%s236_s3] sm:$0xff] %vm19_vm0, %v137_v21  ;;  %v138_v25 = vadd.f32 %v155_v17, %v127_v24 }
  0xec   :  { %144 = vst.msk [vmem:[%s236_s3 + $0x18] sm:$0xff] %vm19_vm0, %v140_v23 }
  0xed   :  { %142 = vst.msk [vmem:[%s236_s3 + $0x8] sm:$0xff] %vm19_vm0, %v138_v25 }

// kernel: pangu_forward.57
= control target key start
LH: loop header
LB: loop body
LE: loop exit
PB: predicated region body
PF: predicated region fallthrough
CT: control target
= control target key end

     0   :  { %vm19_vm0 = vcmask 130048   ;;  %v173_v1 = vmov 0.0   ;;  %vm58_vm1 = vcmask 261120   ;;  %s233_s1 = inlined_call_operand.vmem [shape: bf16[32,16], index: 1, kind: input, shape index: {}]   ;;  %s234_s0 = inlined_call_operand.vmem [shape: bf16[32,32], index: 0, kind: input, shape index: {}]   ;;  %s235_s2 = inlined_call_operand.vmem [shape: f32[1,16], index: 2, kind: input, shape index: {}]   ;;  %s236_s3 = inlined_call_operand.vmem [shape: f32[32,16], index: 3, kind: output, shape index: {}]  }
   0x1   :  { %v169_v0 = vld [vmem:[%s233_s1] sm:$0xff]   ;;  %22 = vst.msk [vmem:[#allocation2 + $0x10] sm:$0xff] %vm19_vm0, %v173_v1  ;;  %20 = vst.msk [vmem:[#allocation2] sm:$0xff] %vm19_vm0, %v173_v1  ;;  %v170_v2 = vld [vmem:[%s233_s1 + $0x8] sm:$0xff]  }
   0x2   :  { %21 = vst.msk [vmem:[#allocation2 + $0x8] sm:$0xff] %vm19_vm0, %v173_v1  ;;  %23 = vst.msk [vmem:[#allocation2 + $0x18] sm:$0xff] %vm19_vm0, %v173_v1  ;;  %160 = vmatprep.subr.bf16.mxu0 %v169_v0  ;;  %v171_v3 = vld [vmem:[%s234_s0] sm:$0xff]   ;;  %v172_v4 = vld [vmem:[%s234_s0 + $0x8] sm:$0xff]  }
   0x3   :  { %161 = vmatpush3.bf16.msra.mxu0 %v169_v0  ;;  %164 = vmatprep.mubr.msk.bf16.mxu0 %vm58_vm1, %v171_v3  ;;  %v155_v17 = vld [vmem:[%s235_s2] ss:$0 sm:$0xff] }
   0x4   :  { %162 = vmatprep.subr.bf16.mxu0 %v170_v2 }
   0x7   :  { %163 = vmatpush3.bf16.msra.mxu0 %v170_v2 }
   0x8   :  { %v30_v5 = vld [vmem:[#allocation2 + $0x10] sm:$0xff]  ;;  %v28_v6 = vld [vmem:[#allocation2] sm:$0xff] }
   0x9   :  { %v31_v8 = vld [vmem:[#allocation2 + $0x18] sm:$0xff]  ;;  %v29_v11 = vld [vmem:[#allocation2 + $0x8] sm:$0xff] }
   0xa   :  { %165 = vmatmul.mubr.msk.bf16.vlgmr.msra.gmra.mrb[0].mxu0 %vm58_vm1, %v172_v4 }
  0xdd   :  { %v166_v7 = vpop.f32.mrb[0].mxu0 }
  0xde   :  { %v116_v9 = vadd.f32 %v166_v7, %v30_v5  ;;  %v99_v10 = vpop.f32.mrb[1].mxu0 }
  0xdf   :  { %v114_v12 = vadd.f32 %v99_v10, %v28_v6  ;;  %v167_v13 = vpop.f32.mrb[2].mxu0 }
  0xe0   :  { %121 = vst.msk [vmem:[#allocation2 + $0x10] sm:$0xff] %vm19_vm0, %v116_v9  ;;  %v117_v14 = vadd.f32 %v167_v13, %v31_v8  ;;  %v102_v15 = vpop.f32.mrb[3].mxu0 }
  0xe1   :  { %119 = vst.msk [vmem:[#allocation2] sm:$0xff] %vm19_vm0, %v114_v12  ;;  %v115_v16 = vadd.f32 %v102_v15, %v29_v11 }
  0xe2   :  { %122 = vst.msk [vmem:[#allocation2 + $0x18] sm:$0xff] %vm19_vm0, %v117_v14 }
  0xe3   :  { %120 = vst.msk [vmem:[#allocation2 + $0x8] sm:$0xff] %vm19_vm0, %v115_v16 }
  0xe7   :  { %v128_v18 = vld [vmem:[#allocation2 + $0x10] sm:$0xff] }
  0xe8   :  { %v139_v19 = vadd.f32 %v155_v17, %v128_v18  ;;  %v126_v20 = vld [vmem:[#allocation2] sm:$0xff] }
  0xe9   :  { %v137_v21 = vadd.f32 %v155_v17, %v126_v20  ;;  %v129_v22 = vld [vmem:[#allocation2 + $0x18] sm:$0xff] }
  0xea   :  { %143 = vst.msk [vmem:[%s236_s3 + $0x10] sm:$0xff] %vm19_vm0, %v139_v19  ;;  %v140_v23 = vadd.f32 %v155_v17, %v129_v22  ;;  %v127_v24 = vld [vmem:[#allocation2 + $0x8] sm:$0xff] }
  0xeb   :  { %141 = vst.msk [vmem:[%s236_s3] sm:$0xff] %vm19_vm0, %v137_v21  ;;  %v138_v25 = vadd.f32 %v155_v17, %v127_v24 }
  0xec   :  { %144 = vst.msk [vmem:[%s236_s3 + $0x18] sm:$0xff] %vm19_vm0, %v140_v23 }
  0xed   :  { %142 = vst.msk [vmem:[%s236_s3 + $0x8] sm:$0xff] %vm19_vm0, %v138_v25 }

</bundles_post_ra>
